<compile_context>
chip_gen: v5e
topology: v5e:2x2
jax: 0.10.0
libtpu: 0.0.40
codegen_flags: <defaults>
</compile_context>

<pallas_src>
import functools
import numpy as np
import jax
import jax.numpy as jnp
from jax.experimental import pallas as pl
from jax.experimental.pallas import tpu as pltpu

# ----------------------------- model config ---------------------------------
CONTEXT_SIZE = 10
D_MODEL = 50
NUM_HEADS = 3
NUM_LAYERS = 2
VOCAB_SIZE = 65          # stand-in for len(token_map)
QUERY_SIZE = D_MODEL     # Transformer.__init__ passes d_model as query_size
FF_DIM = 4 * D_MODEL
BATCH = 2

LANE = 128


def _round_up(x, m):
    return ((x + m - 1) // m) * m


DP = _round_up(D_MODEL, LANE)                       # padded residual width (128)
HEAD_SLOT = _round_up(max(QUERY_SIZE, D_MODEL), LANE)   # per-head lane slot (128)
FFP = _round_up(FF_DIM, LANE)                       # padded feedforward width (256)
VP = _round_up(VOCAB_SIZE, LANE)                    # padded vocab (128)
QKVW = 3 * NUM_HEADS * HEAD_SLOT                    # fused QKV' output width (1152)

assert HEAD_SLOT == DP, "kernel assumes query_size and d_model share one 128-slot"

# Packed per-layer vector slab layout (all offsets lane-aligned, widths lane-multiple).
OFF_BQKV = 0
OFF_BF1 = OFF_BQKV + QKVW          # feedforward-1 bias (real width FF_DIM)
OFF_BR = OFF_BF1 + FFP             # reducing-layer bias
OFF_BF2 = OFF_BR + DP              # feedforward-2 bias
OFF_G1 = OFF_BF2 + DP              # norm1 gamma
OFF_B1 = OFF_G1 + DP               # norm1 beta
OFF_G2 = OFF_B1 + DP               # norm2 gamma
OFF_B2 = OFF_G2 + DP               # norm2 beta
OFF_BFIN = OFF_B2 + DP             # final-linear bias (same every layer, read from l=0)
PV_TOTAL = OFF_BFIN + VP           # 2304


# ------------------------------- kernel -------------------------------------
def transformer_kernel(x_ref, mask_ref, wqkv_ref, pvecs_ref, wf1_ref, wf2_ref,
                       wfin_ref, out_ref, *, num_layers, num_heads):
    # Single grid step: the whole batch is folded into the row axis (N = B*S).
    N, Dp = x_ref.shape
    H = num_heads
    Sl = HEAD_SLOT
    HSl = H * Sl

    x = x_ref[...]                    # (N, Dp) f32; lanes >= D_MODEL are exactly 0
    add_mask = mask_ref[...]          # (N, N) additive block-diag causal mask (0 / -1e9)
    inv_d = jnp.float32(1.0 / float(D_MODEL))

    def layernorm(v, gamma, beta):
        # Single-pass statistics: two *independent* cross-lane reductions, then
        # var = E[x^2] - mu^2.  Pad lanes of v are zero so sums over the full 128
        # lanes equal sums over the D_MODEL real lanes; divide by D_MODEL.
        s1 = jnp.sum(v, axis=-1, keepdims=True)
        s2 = jnp.sum(v * v, axis=-1, keepdims=True)
        mu = s1 * inv_d
        var = s2 * inv_d - mu * mu
        # gamma/beta pad lanes are zero -> result pad lanes stay exactly zero.
        return (v - mu) * jax.lax.rsqrt(var + 1e-5) * gamma + beta

    for l in range(num_layers):
        # ---------- multi-head self attention (fused QKV', Wr folded into V) ----------
        x_bf = x.astype(jnp.bfloat16)
        # One bf16 MXU op for Q (pre-scaled), K and V' (= Wv @ Wr); f32 accumulate,
        # fused bias add, then down to bf16 (only MXU ops consume it).
        qkv = (jnp.dot(x_bf, wqkv_ref[l], preferred_element_type=jnp.float32)
               + pvecs_ref[l, :, OFF_BQKV:OFF_BQKV + 3 * HSl]).astype(jnp.bfloat16)

        attn = None
        for h in range(H):
            # 128-aligned static lane slices of the fused QKV' result.
            q = qkv[:, h * Sl:(h + 1) * Sl]
            k = qkv[:, HSl + h * Sl: HSl + (h + 1) * Sl]
            v = qkv[:, 2 * HSl + h * Sl: 2 * HSl + (h + 1) * Sl]   # already @ Wr

            s = jax.lax.dot_general(q, k, (((1,), (1,)), ((), ())),
                                    preferred_element_type=jnp.float32)
            # 1/sqrt(d_model) is baked into Wq/bq.  Softmax max-subtraction dropped:
            # logits are bounded (tiny weights) and masked -1e9 entries underflow to
            # exactly 0 either way.  Keep the subtraction if weights can grow.
            p = jnp.exp(s + add_mask)
            p = p * pl.reciprocal(jnp.sum(p, axis=-1, keepdims=True), approx=True)
            ctx = jnp.dot(p.astype(jnp.bfloat16), v,
                          preferred_element_type=jnp.float32)      # (N, Dp)
            attn = ctx if attn is None else attn + ctx
        attn = attn + pvecs_ref[l, :, OFF_BR:OFF_BR + Dp]          # reducing-layer bias
        # dropout -> identity (see TODO above)

        # ------------------------------ residual + norm1 ------------------------------
        ff_in = layernorm(attn + x,
                          pvecs_ref[l, :, OFF_G1:OFF_G1 + Dp],
                          pvecs_ref[l, :, OFF_B1:OFF_B1 + Dp])

        # --------------------------------- feedforward --------------------------------
        h1 = (jnp.dot(ff_in.astype(jnp.bfloat16), wf1_ref[l],
                      preferred_element_type=jnp.float32)
              + pvecs_ref[l, :, OFF_BF1:OFF_BF1 + FFP])
        h1 = jnp.maximum(h1, 0.0)
        ff_out = (jnp.dot(h1.astype(jnp.bfloat16), wf2_ref[l],
                          preferred_element_type=jnp.float32)
                  + pvecs_ref[l, :, OFF_BF2:OFF_BF2 + Dp])
        # dropout -> identity (see TODO above)

        # ------------------------------ residual + norm2 ------------------------------
        x = layernorm(ff_out + ff_in,
                      pvecs_ref[l, :, OFF_G2:OFF_G2 + Dp],
                      pvecs_ref[l, :, OFF_B2:OFF_B2 + Dp])

    # ---------------------- final linear (lane-dense, Vp = 128) ----------------------
    out_ref[...] = (jnp.dot(x.astype(jnp.bfloat16), wfin_ref[...],
                            preferred_element_type=jnp.float32)
                    + pvecs_ref[0, :, OFF_BFIN:OFF_BFIN + VP])


# ------------------------------ wrapper --------------------------------------
def _zero_index_map(ndim):
    return lambda i: (0,) * ndim


def transformer_forward(tokens, packed):
    # Glue: embedding lookup + positional encoding (cheap gather / add).
    B, S = tokens.shape
    N = B * S
    emb = jnp.take(packed["embedding"], tokens.reshape(-1), axis=0)    # (N, DP)
    pos = jnp.tile(packed["pos_encoding"][:S], (B, 1))                 # (N, DP)
    x = (emb + pos).astype(jnp.float32)
    # dropout -> identity (see TODO above)

    # Precomputed block-diagonal causal additive mask (constant w.r.t. tokens).
    r = np.arange(N)
    allowed = (r[:, None] // S == r[None, :] // S) & (r[None, :] % S <= r[:, None] % S)
    add_mask = jnp.asarray(np.where(allowed, 0.0, -1e9).astype(np.float32))

    operands = [x, add_mask, packed["wqkv"], packed["pvecs"],
                packed["wf1"], packed["wf2"], packed["wfin"]]
    in_specs = [pl.BlockSpec(a.shape, _zero_index_map(a.ndim)) for a in operands]

    out = pl.pallas_call(
        functools.partial(transformer_kernel,
                          num_layers=NUM_LAYERS, num_heads=NUM_HEADS),
        out_shape=jax.ShapeDtypeStruct((N, VP), jnp.float32),
        grid=(1,),                                   # whole batch in one step
        in_specs=in_specs,
        out_specs=pl.BlockSpec((N, VP), _zero_index_map(2)),
        compiler_params=pltpu.CompilerParams(dimension_semantics=("arbitrary",)),
    )(*operands)

    # Un-pad vocab and restore (B, S, V).
    return out.reshape(B, S, VP)[:, :, :VOCAB_SIZE]


# --------------------------- parameter init -----------------------------------
def positional_encoding(seq_length, dim):
    pos, i = np.mgrid[:seq_length, :(dim + 1) // 2]
    angle_rads = pos / 10000 ** (2 * i / dim)
    result = np.empty([seq_length, dim], dtype=np.float32)
    result[:, 0::2] = np.sin(angle_rads)
    if dim % 2 == 0:
        result[:, 1::2] = np.cos(angle_rads)
    else:
        result[:, 1::2] = np.cos(np.delete(angle_rads, -1, axis=1))
    return jnp.asarray(result)


def init_params(key):
    """Logical (PyTorch-shaped, pre-transposed to (in, out)) parameters."""
    L, H, D, Q, F, V = NUM_LAYERS, NUM_HEADS, D_MODEL, QUERY_SIZE, FF_DIM, VOCAB_SIZE
    ks = jax.random.split(key, 15)
    s = 0.02
    return {
        "embedding": s * jax.random.normal(ks[0], (V, D), jnp.float32),
        "pos_encoding": positional_encoding(CONTEXT_SIZE, D),
        "wq": s * jax.random.normal(ks[1], (L, H, D, Q), jnp.float32),
        "bq": s * jax.random.normal(ks[2], (L, H, Q), jnp.float32),
        "wk": s * jax.random.normal(ks[3], (L, H, D, Q), jnp.float32),
        "bk": s * jax.random.normal(ks[4], (L, H, Q), jnp.float32),
        "wv": s * jax.random.normal(ks[5], (L, H, D, Q), jnp.float32),
        "bv": s * jax.random.normal(ks[6], (L, H, Q), jnp.float32),
        "wr": s * jax.random.normal(ks[7], (L, H * Q, D), jnp.float32),
        "br": s * jax.random.normal(ks[8], (L, D), jnp.float32),
        "g1": jnp.ones((L, D), jnp.float32),
        "beta1": jnp.zeros((L, D), jnp.float32),
        "g2": jnp.ones((L, D), jnp.float32),
        "beta2": jnp.zeros((L, D), jnp.float32),
        "wf1": s * jax.random.normal(ks[9], (L, D, F), jnp.float32),
        "bf1": s * jax.random.normal(ks[10], (L, F), jnp.float32),
        "wf2": s * jax.random.normal(ks[11], (L, F, D), jnp.float32),
        "bf2": s * jax.random.normal(ks[12], (L, D), jnp.float32),
        "w_fin": s * jax.random.normal(ks[13], (D, V), jnp.float32),
        "b_fin": s * jax.random.normal(ks[14], (V,), jnp.float32),
    }


def pack_params(p):
    """Pack / pad logical params into the kernel's fused, lane-aligned layout."""
    L, H, D, Q, F, V = NUM_LAYERS, NUM_HEADS, D_MODEL, QUERY_SIZE, FF_DIM, VOCAB_SIZE
    Dp, Sl, Fp, Vp = DP, HEAD_SLOT, FFP, VP
    scale = jnp.float32(1.0 / np.sqrt(D))   # reference divides scores by sqrt(d_model)

    def pad_last(a, new):
        pad = [(0, 0)] * (a.ndim - 1) + [(0, new - a.shape[-1])]
        return jnp.pad(a, pad)

    def pad2(a, rows, cols):
        pad = ([(0, 0)] * (a.ndim - 2)
               + [(0, rows - a.shape[-2]), (0, cols - a.shape[-1])])
        return jnp.pad(a, pad)

    # Fold the reducing layer into V (exact):  Wv' = Wv @ Wr ,  bv' = bv @ Wr.
    wr = p["wr"].reshape(L, H, Q, D)
    wv_f = jnp.einsum("lhdq,lhqe->lhde", p["wv"], wr)      # (L,H,D,D)
    bv_f = jnp.einsum("lhq,lhqe->lhe", p["bv"], wr)        # (L,H,D)

    # Bake 1/sqrt(d_model) into Q weights/bias (exact).
    wq = p["wq"] * scale
    bq = p["bq"] * scale

    # Fused QKV' weight: (L, Dp, 3*H*Sl), column order = (q/k/v group, head, slot).
    wq_p = pad2(wq, Dp, Sl)                                # (L,H,Dp,Sl)
    wk_p = pad2(p["wk"], Dp, Sl)
    wv_p = pad2(wv_f, Dp, Sl)
    wqkv = jnp.stack([wq_p, wk_p, wv_p], axis=1)           # (L,3,H,Dp,Sl)
    wqkv = jnp.transpose(wqkv, (0, 3, 1, 2, 4)).reshape(L, Dp, QKVW)

    bq_p = pad_last(bq, Sl)                                # (L,H,Sl)
    bk_p = pad_last(p["bk"], Sl)
    bv_p = pad_last(bv_f, Sl)
    bqkv = jnp.stack([bq_p, bk_p, bv_p], axis=1).reshape(L, QKVW)

    # One packed, lane-aligned slab with every per-layer vector + the final bias.
    pvecs = jnp.zeros((L, PV_TOTAL), jnp.float32)
    pvecs = pvecs.at[:, OFF_BQKV:OFF_BQKV + QKVW].set(bqkv)
    pvecs = pvecs.at[:, OFF_BF1:OFF_BF1 + F].set(p["bf1"])
    pvecs = pvecs.at[:, OFF_BR:OFF_BR + D].set(p["br"])
    pvecs = pvecs.at[:, OFF_BF2:OFF_BF2 + D].set(p["bf2"])
    pvecs = pvecs.at[:, OFF_G1:OFF_G1 + D].set(p["g1"])
    pvecs = pvecs.at[:, OFF_B1:OFF_B1 + D].set(p["beta1"])
    pvecs = pvecs.at[:, OFF_G2:OFF_G2 + D].set(p["g2"])
    pvecs = pvecs.at[:, OFF_B2:OFF_B2 + D].set(p["beta2"])
    pvecs = pvecs.at[:, OFF_BFIN:OFF_BFIN + V].set(jnp.broadcast_to(p["b_fin"], (L, V)))
    pvecs = pvecs[:, None, :]                              # (L,1,PV_TOTAL)

    return {
        "embedding": pad_last(p["embedding"], Dp),         # (V, Dp) f32
        "pos_encoding": pad_last(p["pos_encoding"], Dp),   # (S, Dp) f32
        "wqkv": wqkv.astype(jnp.bfloat16),                 # (L, Dp, 1152) bf16
        "pvecs": pvecs,                                    # (L, 1, 2304) f32
        "wf1": pad2(p["wf1"], Dp, Fp).astype(jnp.bfloat16),
        "wf2": pad2(p["wf2"], Fp, Dp).astype(jnp.bfloat16),
        "wfin": pad2(p["w_fin"], Dp, Vp).astype(jnp.bfloat16),
    }


# --------------------------------- main ---------------------------------------
if __name__ == "__main__":
    key = jax.random.PRNGKey(0)
    k_param, k_tok = jax.random.split(key)
    packed = pack_params(init_params(k_param))
    tokens = jax.random.randint(k_tok, (BATCH, CONTEXT_SIZE), 0, VOCAB_SIZE,
                                dtype=jnp.int32)

    logits = transformer_forward(tokens, packed)
    jax.block_until_ready(logits)
    assert logits.shape == (BATCH, CONTEXT_SIZE, VOCAB_SIZE)
    assert bool(jnp.all(jnp.isfinite(logits)))
    print("KERNEL_OK")
</pallas_src>

<mosaic_0001>
module attributes {stable_mosaic.version = 11 : i64} {
  func.func @transformer_kernel(%arg0: i32, %arg1: memref<20x128xf32, #tpu.memory_space<vmem>>, %arg2: memref<20x20xf32, #tpu.memory_space<vmem>>, %arg3: memref<2x128x1152xbf16, #tpu.memory_space<vmem>>, %arg4: memref<2x1x2304xf32, #tpu.memory_space<vmem>>, %arg5: memref<2x128x256xbf16, #tpu.memory_space<vmem>>, %arg6: memref<2x256x128xbf16, #tpu.memory_space<vmem>>, %arg7: memref<128x128xbf16, #tpu.memory_space<vmem>>, %arg8: memref<20x128xf32, #tpu.memory_space<vmem>>) attributes {dimension_semantics = [#tpu.dimension_semantics<arbitrary>], iteration_bounds = array<i64: 1>, scalar_prefetch = 0 : i64, scratch_operands = 0 : i64, tpu.core_type = #tpu.core_type<tc>, window_params = [{pipeline_mode = #tpu.pipeline_mode<synchronous>, transform_indices = @transform_0, window_bounds = array<i64: 20, 128>}, {pipeline_mode = #tpu.pipeline_mode<synchronous>, transform_indices = @transform_1, window_bounds = array<i64: 20, 20>}, {pipeline_mode = #tpu.pipeline_mode<synchronous>, transform_indices = @transform_2, window_bounds = array<i64: 2, 128, 1152>}, {pipeline_mode = #tpu.pipeline_mode<synchronous>, transform_indices = @transform_3, window_bounds = array<i64: 2, 1, 2304>}, {pipeline_mode = #tpu.pipeline_mode<synchronous>, transform_indices = @transform_4, window_bounds = array<i64: 2, 128, 256>}, {pipeline_mode = #tpu.pipeline_mode<synchronous>, transform_indices = @transform_5, window_bounds = array<i64: 2, 256, 128>}, {pipeline_mode = #tpu.pipeline_mode<synchronous>, transform_indices = @transform_6, window_bounds = array<i64: 128, 128>}, {pipeline_mode = #tpu.pipeline_mode<synchronous>, transform_indices = @transform_7, window_bounds = array<i64: 20, 128>}]} {
    %c0 = arith.constant 0 : index
    %c0_0 = arith.constant 0 : index
    %0 = vector.load %arg1[%c0, %c0_0] : memref<20x128xf32, #tpu.memory_space<vmem>>, vector<20x128xf32>
    %c0_1 = arith.constant 0 : index
    %c0_2 = arith.constant 0 : index
    %1 = vector.load %arg2[%c0_1, %c0_2] : memref<20x20xf32, #tpu.memory_space<vmem>>, vector<20x20xf32>
    %2 = arith.truncf %0 : vector<20x128xf32> to vector<20x128xbf16>
    %c0_3 = arith.constant 0 : index
    %c0_4 = arith.constant 0 : index
    %c0_5 = arith.constant 0 : index
    %3 = vector.load %arg3[%c0_3, %c0_4, %c0_5] : memref<2x128x1152xbf16, #tpu.memory_space<vmem>>, vector<1x128x1152xbf16>
    %4 = vector.shape_cast %3 : vector<1x128x1152xbf16> to vector<128x1152xbf16>
    %cst = arith.constant dense<0.000000e+00> : vector<20x1152xf32>
    %5 = tpu.matmul %2, %4, %cst {dimension_numbers = #tpu.dot_dimension_numbers<[1], [0], [0], [1], [0, 0, 1, 1], [], []>} : vector<20x128xbf16>, vector<128x1152xbf16>, vector<20x1152xf32> -> vector<20x1152xf32>
    %c0_6 = arith.constant 0 : index
    %c0_7 = arith.constant 0 : index
    %c0_8 = arith.constant 0 : index
    %6 = vector.load %arg4[%c0_6, %c0_7, %c0_8] : memref<2x1x2304xf32, #tpu.memory_space<vmem>>, vector<1x1x1152xf32>
    %7 = vector.shape_cast %6 : vector<1x1x1152xf32> to vector<1x1152xf32>
    %8 = vector.broadcast %7 : vector<1x1152xf32> to vector<20x1152xf32>
    %9 = arith.addf %5, %8 : vector<20x1152xf32>
    %10 = arith.truncf %9 : vector<20x1152xf32> to vector<20x1152xbf16>
    %11 = vector.extract_strided_slice %10 {offsets = [0, 0], sizes = [20, 128], strides = [1, 1]} : vector<20x1152xbf16> to vector<20x128xbf16>
    %12 = vector.extract_strided_slice %10 {offsets = [0, 384], sizes = [20, 128], strides = [1, 1]} : vector<20x1152xbf16> to vector<20x128xbf16>
    %13 = vector.extract_strided_slice %10 {offsets = [0, 768], sizes = [20, 128], strides = [1, 1]} : vector<20x1152xbf16> to vector<20x128xbf16>
    %cst_9 = arith.constant dense<0.000000e+00> : vector<20x20xf32>
    %14 = tpu.matmul %11, %12, %cst_9 {dimension_numbers = #tpu.dot_dimension_numbers<[1], [1], [0], [0], [0, 0, 1, 0], [], []>} : vector<20x128xbf16>, vector<20x128xbf16>, vector<20x20xf32> -> vector<20x20xf32>
    %15 = arith.addf %14, %1 : vector<20x20xf32>
    %16 = math.exp %15 : vector<20x20xf32>
    %cst_10 = arith.constant dense<0.000000e+00> : vector<20xf32>
    %17 = vector.multi_reduction <add>, %16, %cst_10 [1] : vector<20x20xf32> to vector<20xf32>
    %18 = vector.shape_cast %17 : vector<20xf32> to vector<20x1xf32>
    %19 = tpu.reciprocal %18 {approx = true} : vector<20x1xf32> -> vector<20x1xf32>
    %20 = vector.broadcast %19 : vector<20x1xf32> to vector<20x20xf32>
    %21 = arith.mulf %16, %20 : vector<20x20xf32>
    %22 = arith.truncf %21 : vector<20x20xf32> to vector<20x20xbf16>
    %cst_11 = arith.constant dense<0.000000e+00> : vector<20x128xf32>
    %23 = tpu.matmul %22, %13, %cst_11 {dimension_numbers = #tpu.dot_dimension_numbers<[1], [0], [0], [1], [0, 0, 1, 1], [], []>} : vector<20x20xbf16>, vector<20x128xbf16>, vector<20x128xf32> -> vector<20x128xf32>
    %24 = vector.extract_strided_slice %10 {offsets = [0, 128], sizes = [20, 128], strides = [1, 1]} : vector<20x1152xbf16> to vector<20x128xbf16>
    %25 = vector.extract_strided_slice %10 {offsets = [0, 512], sizes = [20, 128], strides = [1, 1]} : vector<20x1152xbf16> to vector<20x128xbf16>
    %26 = vector.extract_strided_slice %10 {offsets = [0, 896], sizes = [20, 128], strides = [1, 1]} : vector<20x1152xbf16> to vector<20x128xbf16>
    %cst_12 = arith.constant dense<0.000000e+00> : vector<20x20xf32>
    %27 = tpu.matmul %24, %25, %cst_12 {dimension_numbers = #tpu.dot_dimension_numbers<[1], [1], [0], [0], [0, 0, 1, 0], [], []>} : vector<20x128xbf16>, vector<20x128xbf16>, vector<20x20xf32> -> vector<20x20xf32>
    %28 = arith.addf %27, %1 : vector<20x20xf32>
    %29 = math.exp %28 : vector<20x20xf32>
    %cst_13 = arith.constant dense<0.000000e+00> : vector<20xf32>
    %30 = vector.multi_reduction <add>, %29, %cst_13 [1] : vector<20x20xf32> to vector<20xf32>
    %31 = vector.shape_cast %30 : vector<20xf32> to vector<20x1xf32>
    %32 = tpu.reciprocal %31 {approx = true} : vector<20x1xf32> -> vector<20x1xf32>
    %33 = vector.broadcast %32 : vector<20x1xf32> to vector<20x20xf32>
    %34 = arith.mulf %29, %33 : vector<20x20xf32>
    %35 = arith.truncf %34 : vector<20x20xf32> to vector<20x20xbf16>
    %cst_14 = arith.constant dense<0.000000e+00> : vector<20x128xf32>
    %36 = tpu.matmul %35, %26, %cst_14 {dimension_numbers = #tpu.dot_dimension_numbers<[1], [0], [0], [1], [0, 0, 1, 1], [], []>} : vector<20x20xbf16>, vector<20x128xbf16>, vector<20x128xf32> -> vector<20x128xf32>
    %37 = arith.addf %23, %36 : vector<20x128xf32>
    %38 = vector.extract_strided_slice %10 {offsets = [0, 256], sizes = [20, 128], strides = [1, 1]} : vector<20x1152xbf16> to vector<20x128xbf16>
    %39 = vector.extract_strided_slice %10 {offsets = [0, 640], sizes = [20, 128], strides = [1, 1]} : vector<20x1152xbf16> to vector<20x128xbf16>
    %40 = vector.extract_strided_slice %10 {offsets = [0, 1024], sizes = [20, 128], strides = [1, 1]} : vector<20x1152xbf16> to vector<20x128xbf16>
    %cst_15 = arith.constant dense<0.000000e+00> : vector<20x20xf32>
    %41 = tpu.matmul %38, %39, %cst_15 {dimension_numbers = #tpu.dot_dimension_numbers<[1], [1], [0], [0], [0, 0, 1, 0], [], []>} : vector<20x128xbf16>, vector<20x128xbf16>, vector<20x20xf32> -> vector<20x20xf32>
    %42 = arith.addf %41, %1 : vector<20x20xf32>
    %43 = math.exp %42 : vector<20x20xf32>
    %cst_16 = arith.constant dense<0.000000e+00> : vector<20xf32>
    %44 = vector.multi_reduction <add>, %43, %cst_16 [1] : vector<20x20xf32> to vector<20xf32>
    %45 = vector.shape_cast %44 : vector<20xf32> to vector<20x1xf32>
    %46 = tpu.reciprocal %45 {approx = true} : vector<20x1xf32> -> vector<20x1xf32>
    %47 = vector.broadcast %46 : vector<20x1xf32> to vector<20x20xf32>
    %48 = arith.mulf %43, %47 : vector<20x20xf32>
    %49 = arith.truncf %48 : vector<20x20xf32> to vector<20x20xbf16>
    %cst_17 = arith.constant dense<0.000000e+00> : vector<20x128xf32>
    %50 = tpu.matmul %49, %40, %cst_17 {dimension_numbers = #tpu.dot_dimension_numbers<[1], [0], [0], [1], [0, 0, 1, 1], [], []>} : vector<20x20xbf16>, vector<20x128xbf16>, vector<20x128xf32> -> vector<20x128xf32>
    %51 = arith.addf %37, %50 : vector<20x128xf32>
    %c0_18 = arith.constant 0 : index
    %c0_19 = arith.constant 0 : index
    %c1408 = arith.constant 1408 : index
    %52 = vector.load %arg4[%c0_18, %c0_19, %c1408] : memref<2x1x2304xf32, #tpu.memory_space<vmem>>, vector<1x1x128xf32>
    %53 = vector.shape_cast %52 : vector<1x1x128xf32> to vector<1x128xf32>
    %54 = vector.broadcast %53 : vector<1x128xf32> to vector<20x128xf32>
    %55 = arith.addf %51, %54 : vector<20x128xf32>
    %56 = arith.addf %55, %0 : vector<20x128xf32>
    %c0_20 = arith.constant 0 : index
    %c0_21 = arith.constant 0 : index
    %c1664 = arith.constant 1664 : index
    %57 = vector.load %arg4[%c0_20, %c0_21, %c1664] : memref<2x1x2304xf32, #tpu.memory_space<vmem>>, vector<1x1x128xf32>
    %58 = vector.shape_cast %57 : vector<1x1x128xf32> to vector<1x128xf32>
    %c0_22 = arith.constant 0 : index
    %c0_23 = arith.constant 0 : index
    %c1792 = arith.constant 1792 : index
    %59 = vector.load %arg4[%c0_22, %c0_23, %c1792] : memref<2x1x2304xf32, #tpu.memory_space<vmem>>, vector<1x1x128xf32>
    %60 = vector.shape_cast %59 : vector<1x1x128xf32> to vector<1x128xf32>
    %cst_24 = arith.constant dense<0.000000e+00> : vector<20xf32>
    %61 = vector.multi_reduction <add>, %56, %cst_24 [1] : vector<20x128xf32> to vector<20xf32>
    %62 = vector.shape_cast %61 : vector<20xf32> to vector<20x1xf32>
    %63 = arith.mulf %56, %56 : vector<20x128xf32>
    %cst_25 = arith.constant dense<0.000000e+00> : vector<20xf32>
    %64 = vector.multi_reduction <add>, %63, %cst_25 [1] : vector<20x128xf32> to vector<20xf32>
    %65 = vector.shape_cast %64 : vector<20xf32> to vector<20x1xf32>
    %cst_26 = arith.constant 2.000000e-02 : f32
    %66 = vector.broadcast %cst_26 : f32 to vector<20x1xf32>
    %67 = arith.mulf %62, %66 : vector<20x1xf32>
    %cst_27 = arith.constant 2.000000e-02 : f32
    %68 = vector.broadcast %cst_27 : f32 to vector<20x1xf32>
    %69 = arith.mulf %65, %68 : vector<20x1xf32>
    %70 = arith.mulf %67, %67 : vector<20x1xf32>
    %71 = arith.subf %69, %70 : vector<20x1xf32>
    %72 = vector.broadcast %67 : vector<20x1xf32> to vector<20x128xf32>
    %73 = arith.subf %56, %72 : vector<20x128xf32>
    %cst_28 = arith.constant 9.99999974E-6 : f32
    %74 = vector.broadcast %cst_28 : f32 to vector<20x1xf32>
    %75 = arith.addf %71, %74 : vector<20x1xf32>
    %76 = math.rsqrt %75 : vector<20x1xf32>
    %77 = vector.broadcast %76 : vector<20x1xf32> to vector<20x128xf32>
    %78 = arith.mulf %73, %77 : vector<20x128xf32>
    %79 = vector.broadcast %58 : vector<1x128xf32> to vector<20x128xf32>
    %80 = arith.mulf %78, %79 : vector<20x128xf32>
    %81 = vector.broadcast %60 : vector<1x128xf32> to vector<20x128xf32>
    %82 = arith.addf %80, %81 : vector<20x128xf32>
    %83 = arith.truncf %82 : vector<20x128xf32> to vector<20x128xbf16>
    %c0_29 = arith.constant 0 : index
    %c0_30 = arith.constant 0 : index
    %c0_31 = arith.constant 0 : index
    %84 = vector.load %arg5[%c0_29, %c0_30, %c0_31] : memref<2x128x256xbf16, #tpu.memory_space<vmem>>, vector<1x128x256xbf16>
    %85 = vector.shape_cast %84 : vector<1x128x256xbf16> to vector<128x256xbf16>
    %cst_32 = arith.constant dense<0.000000e+00> : vector<20x256xf32>
    %86 = tpu.matmul %83, %85, %cst_32 {dimension_numbers = #tpu.dot_dimension_numbers<[1], [0], [0], [1], [0, 0, 1, 1], [], []>} : vector<20x128xbf16>, vector<128x256xbf16>, vector<20x256xf32> -> vector<20x256xf32>
    %c0_33 = arith.constant 0 : index
    %c0_34 = arith.constant 0 : index
    %c1152 = arith.constant 1152 : index
    %87 = vector.load %arg4[%c0_33, %c0_34, %c1152] : memref<2x1x2304xf32, #tpu.memory_space<vmem>>, vector<1x1x256xf32>
    %88 = vector.shape_cast %87 : vector<1x1x256xf32> to vector<1x256xf32>
    %89 = vector.broadcast %88 : vector<1x256xf32> to vector<20x256xf32>
    %90 = arith.addf %86, %89 : vector<20x256xf32>
    %cst_35 = arith.constant 0.000000e+00 : f32
    %91 = vector.broadcast %cst_35 : f32 to vector<20x256xf32>
    %92 = arith.maximumf %90, %91 : vector<20x256xf32>
    %93 = arith.truncf %92 : vector<20x256xf32> to vector<20x256xbf16>
    %c0_36 = arith.constant 0 : index
    %c0_37 = arith.constant 0 : index
    %c0_38 = arith.constant 0 : index
    %94 = vector.load %arg6[%c0_36, %c0_37, %c0_38] : memref<2x256x128xbf16, #tpu.memory_space<vmem>>, vector<1x256x128xbf16>
    %95 = vector.shape_cast %94 : vector<1x256x128xbf16> to vector<256x128xbf16>
    %cst_39 = arith.constant dense<0.000000e+00> : vector<20x128xf32>
    %96 = tpu.matmul %93, %95, %cst_39 {dimension_numbers = #tpu.dot_dimension_numbers<[1], [0], [0], [1], [0, 0, 1, 1], [], []>} : vector<20x256xbf16>, vector<256x128xbf16>, vector<20x128xf32> -> vector<20x128xf32>
    %c0_40 = arith.constant 0 : index
    %c0_41 = arith.constant 0 : index
    %c1536 = arith.constant 1536 : index
    %97 = vector.load %arg4[%c0_40, %c0_41, %c1536] : memref<2x1x2304xf32, #tpu.memory_space<vmem>>, vector<1x1x128xf32>
    %98 = vector.shape_cast %97 : vector<1x1x128xf32> to vector<1x128xf32>
    %99 = vector.broadcast %98 : vector<1x128xf32> to vector<20x128xf32>
    %100 = arith.addf %96, %99 : vector<20x128xf32>
    %101 = arith.addf %100, %82 : vector<20x128xf32>
    %c0_42 = arith.constant 0 : index
    %c0_43 = arith.constant 0 : index
    %c1920 = arith.constant 1920 : index
    %102 = vector.load %arg4[%c0_42, %c0_43, %c1920] : memref<2x1x2304xf32, #tpu.memory_space<vmem>>, vector<1x1x128xf32>
    %103 = vector.shape_cast %102 : vector<1x1x128xf32> to vector<1x128xf32>
    %c0_44 = arith.constant 0 : index
    %c0_45 = arith.constant 0 : index
    %c2048 = arith.constant 2048 : index
    %104 = vector.load %arg4[%c0_44, %c0_45, %c2048] : memref<2x1x2304xf32, #tpu.memory_space<vmem>>, vector<1x1x128xf32>
    %105 = vector.shape_cast %104 : vector<1x1x128xf32> to vector<1x128xf32>
    %cst_46 = arith.constant dense<0.000000e+00> : vector<20xf32>
    %106 = vector.multi_reduction <add>, %101, %cst_46 [1] : vector<20x128xf32> to vector<20xf32>
    %107 = vector.shape_cast %106 : vector<20xf32> to vector<20x1xf32>
    %108 = arith.mulf %101, %101 : vector<20x128xf32>
    %cst_47 = arith.constant dense<0.000000e+00> : vector<20xf32>
    %109 = vector.multi_reduction <add>, %108, %cst_47 [1] : vector<20x128xf32> to vector<20xf32>
    %110 = vector.shape_cast %109 : vector<20xf32> to vector<20x1xf32>
    %cst_48 = arith.constant 2.000000e-02 : f32
    %111 = vector.broadcast %cst_48 : f32 to vector<20x1xf32>
    %112 = arith.mulf %107, %111 : vector<20x1xf32>
    %cst_49 = arith.constant 2.000000e-02 : f32
    %113 = vector.broadcast %cst_49 : f32 to vector<20x1xf32>
    %114 = arith.mulf %110, %113 : vector<20x1xf32>
    %115 = arith.mulf %112, %112 : vector<20x1xf32>
    %116 = arith.subf %114, %115 : vector<20x1xf32>
    %117 = vector.broadcast %112 : vector<20x1xf32> to vector<20x128xf32>
    %118 = arith.subf %101, %117 : vector<20x128xf32>
    %cst_50 = arith.constant 9.99999974E-6 : f32
    %119 = vector.broadcast %cst_50 : f32 to vector<20x1xf32>
    %120 = arith.addf %116, %119 : vector<20x1xf32>
    %121 = math.rsqrt %120 : vector<20x1xf32>
    %122 = vector.broadcast %121 : vector<20x1xf32> to vector<20x128xf32>
    %123 = arith.mulf %118, %122 : vector<20x128xf32>
    %124 = vector.broadcast %103 : vector<1x128xf32> to vector<20x128xf32>
    %125 = arith.mulf %123, %124 : vector<20x128xf32>
    %126 = vector.broadcast %105 : vector<1x128xf32> to vector<20x128xf32>
    %127 = arith.addf %125, %126 : vector<20x128xf32>
    %128 = arith.truncf %127 : vector<20x128xf32> to vector<20x128xbf16>
    %c1 = arith.constant 1 : index
    %c0_51 = arith.constant 0 : index
    %c0_52 = arith.constant 0 : index
    %129 = vector.load %arg3[%c1, %c0_51, %c0_52] : memref<2x128x1152xbf16, #tpu.memory_space<vmem>>, vector<1x128x1152xbf16>
    %130 = vector.shape_cast %129 : vector<1x128x1152xbf16> to vector<128x1152xbf16>
    %cst_53 = arith.constant dense<0.000000e+00> : vector<20x1152xf32>
    %131 = tpu.matmul %128, %130, %cst_53 {dimension_numbers = #tpu.dot_dimension_numbers<[1], [0], [0], [1], [0, 0, 1, 1], [], []>} : vector<20x128xbf16>, vector<128x1152xbf16>, vector<20x1152xf32> -> vector<20x1152xf32>
    %c1_54 = arith.constant 1 : index
    %c0_55 = arith.constant 0 : index
    %c0_56 = arith.constant 0 : index
    %132 = vector.load %arg4[%c1_54, %c0_55, %c0_56] : memref<2x1x2304xf32, #tpu.memory_space<vmem>>, vector<1x1x1152xf32>
    %133 = vector.shape_cast %132 : vector<1x1x1152xf32> to vector<1x1152xf32>
    %134 = vector.broadcast %133 : vector<1x1152xf32> to vector<20x1152xf32>
    %135 = arith.addf %131, %134 : vector<20x1152xf32>
    %136 = arith.truncf %135 : vector<20x1152xf32> to vector<20x1152xbf16>
    %137 = vector.extract_strided_slice %136 {offsets = [0, 0], sizes = [20, 128], strides = [1, 1]} : vector<20x1152xbf16> to vector<20x128xbf16>
    %138 = vector.extract_strided_slice %136 {offsets = [0, 384], sizes = [20, 128], strides = [1, 1]} : vector<20x1152xbf16> to vector<20x128xbf16>
    %139 = vector.extract_strided_slice %136 {offsets = [0, 768], sizes = [20, 128], strides = [1, 1]} : vector<20x1152xbf16> to vector<20x128xbf16>
    %cst_57 = arith.constant dense<0.000000e+00> : vector<20x20xf32>
    %140 = tpu.matmul %137, %138, %cst_57 {dimension_numbers = #tpu.dot_dimension_numbers<[1], [1], [0], [0], [0, 0, 1, 0], [], []>} : vector<20x128xbf16>, vector<20x128xbf16>, vector<20x20xf32> -> vector<20x20xf32>
    %141 = arith.addf %140, %1 : vector<20x20xf32>
    %142 = math.exp %141 : vector<20x20xf32>
    %cst_58 = arith.constant dense<0.000000e+00> : vector<20xf32>
    %143 = vector.multi_reduction <add>, %142, %cst_58 [1] : vector<20x20xf32> to vector<20xf32>
    %144 = vector.shape_cast %143 : vector<20xf32> to vector<20x1xf32>
    %145 = tpu.reciprocal %144 {approx = true} : vector<20x1xf32> -> vector<20x1xf32>
    %146 = vector.broadcast %145 : vector<20x1xf32> to vector<20x20xf32>
    %147 = arith.mulf %142, %146 : vector<20x20xf32>
    %148 = arith.truncf %147 : vector<20x20xf32> to vector<20x20xbf16>
    %cst_59 = arith.constant dense<0.000000e+00> : vector<20x128xf32>
    %149 = tpu.matmul %148, %139, %cst_59 {dimension_numbers = #tpu.dot_dimension_numbers<[1], [0], [0], [1], [0, 0, 1, 1], [], []>} : vector<20x20xbf16>, vector<20x128xbf16>, vector<20x128xf32> -> vector<20x128xf32>
    %150 = vector.extract_strided_slice %136 {offsets = [0, 128], sizes = [20, 128], strides = [1, 1]} : vector<20x1152xbf16> to vector<20x128xbf16>
    %151 = vector.extract_strided_slice %136 {offsets = [0, 512], sizes = [20, 128], strides = [1, 1]} : vector<20x1152xbf16> to vector<20x128xbf16>
    %152 = vector.extract_strided_slice %136 {offsets = [0, 896], sizes = [20, 128], strides = [1, 1]} : vector<20x1152xbf16> to vector<20x128xbf16>
    %cst_60 = arith.constant dense<0.000000e+00> : vector<20x20xf32>
    %153 = tpu.matmul %150, %151, %cst_60 {dimension_numbers = #tpu.dot_dimension_numbers<[1], [1], [0], [0], [0, 0, 1, 0], [], []>} : vector<20x128xbf16>, vector<20x128xbf16>, vector<20x20xf32> -> vector<20x20xf32>
    %154 = arith.addf %153, %1 : vector<20x20xf32>
    %155 = math.exp %154 : vector<20x20xf32>
    %cst_61 = arith.constant dense<0.000000e+00> : vector<20xf32>
    %156 = vector.multi_reduction <add>, %155, %cst_61 [1] : vector<20x20xf32> to vector<20xf32>
    %157 = vector.shape_cast %156 : vector<20xf32> to vector<20x1xf32>
    %158 = tpu.reciprocal %157 {approx = true} : vector<20x1xf32> -> vector<20x1xf32>
    %159 = vector.broadcast %158 : vector<20x1xf32> to vector<20x20xf32>
    %160 = arith.mulf %155, %159 : vector<20x20xf32>
    %161 = arith.truncf %160 : vector<20x20xf32> to vector<20x20xbf16>
    %cst_62 = arith.constant dense<0.000000e+00> : vector<20x128xf32>
    %162 = tpu.matmul %161, %152, %cst_62 {dimension_numbers = #tpu.dot_dimension_numbers<[1], [0], [0], [1], [0, 0, 1, 1], [], []>} : vector<20x20xbf16>, vector<20x128xbf16>, vector<20x128xf32> -> vector<20x128xf32>
    %163 = arith.addf %149, %162 : vector<20x128xf32>
    %164 = vector.extract_strided_slice %136 {offsets = [0, 256], sizes = [20, 128], strides = [1, 1]} : vector<20x1152xbf16> to vector<20x128xbf16>
    %165 = vector.extract_strided_slice %136 {offsets = [0, 640], sizes = [20, 128], strides = [1, 1]} : vector<20x1152xbf16> to vector<20x128xbf16>
    %166 = vector.extract_strided_slice %136 {offsets = [0, 1024], sizes = [20, 128], strides = [1, 1]} : vector<20x1152xbf16> to vector<20x128xbf16>
    %cst_63 = arith.constant dense<0.000000e+00> : vector<20x20xf32>
    %167 = tpu.matmul %164, %165, %cst_63 {dimension_numbers = #tpu.dot_dimension_numbers<[1], [1], [0], [0], [0, 0, 1, 0], [], []>} : vector<20x128xbf16>, vector<20x128xbf16>, vector<20x20xf32> -> vector<20x20xf32>
    %168 = arith.addf %167, %1 : vector<20x20xf32>
    %169 = math.exp %168 : vector<20x20xf32>
    %cst_64 = arith.constant dense<0.000000e+00> : vector<20xf32>
    %170 = vector.multi_reduction <add>, %169, %cst_64 [1] : vector<20x20xf32> to vector<20xf32>
    %171 = vector.shape_cast %170 : vector<20xf32> to vector<20x1xf32>
    %172 = tpu.reciprocal %171 {approx = true} : vector<20x1xf32> -> vector<20x1xf32>
    %173 = vector.broadcast %172 : vector<20x1xf32> to vector<20x20xf32>
    %174 = arith.mulf %169, %173 : vector<20x20xf32>
    %175 = arith.truncf %174 : vector<20x20xf32> to vector<20x20xbf16>
    %cst_65 = arith.constant dense<0.000000e+00> : vector<20x128xf32>
    %176 = tpu.matmul %175, %166, %cst_65 {dimension_numbers = #tpu.dot_dimension_numbers<[1], [0], [0], [1], [0, 0, 1, 1], [], []>} : vector<20x20xbf16>, vector<20x128xbf16>, vector<20x128xf32> -> vector<20x128xf32>
    %177 = arith.addf %163, %176 : vector<20x128xf32>
    %c1_66 = arith.constant 1 : index
    %c0_67 = arith.constant 0 : index
    %c1408_68 = arith.constant 1408 : index
    %178 = vector.load %arg4[%c1_66, %c0_67, %c1408_68] : memref<2x1x2304xf32, #tpu.memory_space<vmem>>, vector<1x1x128xf32>
    %179 = vector.shape_cast %178 : vector<1x1x128xf32> to vector<1x128xf32>
    %180 = vector.broadcast %179 : vector<1x128xf32> to vector<20x128xf32>
    %181 = arith.addf %177, %180 : vector<20x128xf32>
    %182 = arith.addf %181, %127 : vector<20x128xf32>
    %c1_69 = arith.constant 1 : index
    %c0_70 = arith.constant 0 : index
    %c1664_71 = arith.constant 1664 : index
    %183 = vector.load %arg4[%c1_69, %c0_70, %c1664_71] : memref<2x1x2304xf32, #tpu.memory_space<vmem>>, vector<1x1x128xf32>
    %184 = vector.shape_cast %183 : vector<1x1x128xf32> to vector<1x128xf32>
    %c1_72 = arith.constant 1 : index
    %c0_73 = arith.constant 0 : index
    %c1792_74 = arith.constant 1792 : index
    %185 = vector.load %arg4[%c1_72, %c0_73, %c1792_74] : memref<2x1x2304xf32, #tpu.memory_space<vmem>>, vector<1x1x128xf32>
    %186 = vector.shape_cast %185 : vector<1x1x128xf32> to vector<1x128xf32>
    %cst_75 = arith.constant dense<0.000000e+00> : vector<20xf32>
    %187 = vector.multi_reduction <add>, %182, %cst_75 [1] : vector<20x128xf32> to vector<20xf32>
    %188 = vector.shape_cast %187 : vector<20xf32> to vector<20x1xf32>
    %189 = arith.mulf %182, %182 : vector<20x128xf32>
    %cst_76 = arith.constant dense<0.000000e+00> : vector<20xf32>
    %190 = vector.multi_reduction <add>, %189, %cst_76 [1] : vector<20x128xf32> to vector<20xf32>
    %191 = vector.shape_cast %190 : vector<20xf32> to vector<20x1xf32>
    %cst_77 = arith.constant 2.000000e-02 : f32
    %192 = vector.broadcast %cst_77 : f32 to vector<20x1xf32>
    %193 = arith.mulf %188, %192 : vector<20x1xf32>
    %cst_78 = arith.constant 2.000000e-02 : f32
    %194 = vector.broadcast %cst_78 : f32 to vector<20x1xf32>
    %195 = arith.mulf %191, %194 : vector<20x1xf32>
    %196 = arith.mulf %193, %193 : vector<20x1xf32>
    %197 = arith.subf %195, %196 : vector<20x1xf32>
    %198 = vector.broadcast %193 : vector<20x1xf32> to vector<20x128xf32>
    %199 = arith.subf %182, %198 : vector<20x128xf32>
    %cst_79 = arith.constant 9.99999974E-6 : f32
    %200 = vector.broadcast %cst_79 : f32 to vector<20x1xf32>
    %201 = arith.addf %197, %200 : vector<20x1xf32>
    %202 = math.rsqrt %201 : vector<20x1xf32>
    %203 = vector.broadcast %202 : vector<20x1xf32> to vector<20x128xf32>
    %204 = arith.mulf %199, %203 : vector<20x128xf32>
    %205 = vector.broadcast %184 : vector<1x128xf32> to vector<20x128xf32>
    %206 = arith.mulf %204, %205 : vector<20x128xf32>
    %207 = vector.broadcast %186 : vector<1x128xf32> to vector<20x128xf32>
    %208 = arith.addf %206, %207 : vector<20x128xf32>
    %209 = arith.truncf %208 : vector<20x128xf32> to vector<20x128xbf16>
    %c1_80 = arith.constant 1 : index
    %c0_81 = arith.constant 0 : index
    %c0_82 = arith.constant 0 : index
    %210 = vector.load %arg5[%c1_80, %c0_81, %c0_82] : memref<2x128x256xbf16, #tpu.memory_space<vmem>>, vector<1x128x256xbf16>
    %211 = vector.shape_cast %210 : vector<1x128x256xbf16> to vector<128x256xbf16>
    %cst_83 = arith.constant dense<0.000000e+00> : vector<20x256xf32>
    %212 = tpu.matmul %209, %211, %cst_83 {dimension_numbers = #tpu.dot_dimension_numbers<[1], [0], [0], [1], [0, 0, 1, 1], [], []>} : vector<20x128xbf16>, vector<128x256xbf16>, vector<20x256xf32> -> vector<20x256xf32>
    %c1_84 = arith.constant 1 : index
    %c0_85 = arith.constant 0 : index
    %c1152_86 = arith.constant 1152 : index
    %213 = vector.load %arg4[%c1_84, %c0_85, %c1152_86] : memref<2x1x2304xf32, #tpu.memory_space<vmem>>, vector<1x1x256xf32>
    %214 = vector.shape_cast %213 : vector<1x1x256xf32> to vector<1x256xf32>
    %215 = vector.broadcast %214 : vector<1x256xf32> to vector<20x256xf32>
    %216 = arith.addf %212, %215 : vector<20x256xf32>
    %cst_87 = arith.constant 0.000000e+00 : f32
    %217 = vector.broadcast %cst_87 : f32 to vector<20x256xf32>
    %218 = arith.maximumf %216, %217 : vector<20x256xf32>
    %219 = arith.truncf %218 : vector<20x256xf32> to vector<20x256xbf16>
    %c1_88 = arith.constant 1 : index
    %c0_89 = arith.constant 0 : index
    %c0_90 = arith.constant 0 : index
    %220 = vector.load %arg6[%c1_88, %c0_89, %c0_90] : memref<2x256x128xbf16, #tpu.memory_space<vmem>>, vector<1x256x128xbf16>
    %221 = vector.shape_cast %220 : vector<1x256x128xbf16> to vector<256x128xbf16>
    %cst_91 = arith.constant dense<0.000000e+00> : vector<20x128xf32>
    %222 = tpu.matmul %219, %221, %cst_91 {dimension_numbers = #tpu.dot_dimension_numbers<[1], [0], [0], [1], [0, 0, 1, 1], [], []>} : vector<20x256xbf16>, vector<256x128xbf16>, vector<20x128xf32> -> vector<20x128xf32>
    %c1_92 = arith.constant 1 : index
    %c0_93 = arith.constant 0 : index
    %c1536_94 = arith.constant 1536 : index
    %223 = vector.load %arg4[%c1_92, %c0_93, %c1536_94] : memref<2x1x2304xf32, #tpu.memory_space<vmem>>, vector<1x1x128xf32>
    %224 = vector.shape_cast %223 : vector<1x1x128xf32> to vector<1x128xf32>
    %225 = vector.broadcast %224 : vector<1x128xf32> to vector<20x128xf32>
    %226 = arith.addf %222, %225 : vector<20x128xf32>
    %227 = arith.addf %226, %208 : vector<20x128xf32>
    %c1_95 = arith.constant 1 : index
    %c0_96 = arith.constant 0 : index
    %c1920_97 = arith.constant 1920 : index
    %228 = vector.load %arg4[%c1_95, %c0_96, %c1920_97] : memref<2x1x2304xf32, #tpu.memory_space<vmem>>, vector<1x1x128xf32>
    %229 = vector.shape_cast %228 : vector<1x1x128xf32> to vector<1x128xf32>
    %c1_98 = arith.constant 1 : index
    %c0_99 = arith.constant 0 : index
    %c2048_100 = arith.constant 2048 : index
    %230 = vector.load %arg4[%c1_98, %c0_99, %c2048_100] : memref<2x1x2304xf32, #tpu.memory_space<vmem>>, vector<1x1x128xf32>
    %231 = vector.shape_cast %230 : vector<1x1x128xf32> to vector<1x128xf32>
    %cst_101 = arith.constant dense<0.000000e+00> : vector<20xf32>
    %232 = vector.multi_reduction <add>, %227, %cst_101 [1] : vector<20x128xf32> to vector<20xf32>
    %233 = vector.shape_cast %232 : vector<20xf32> to vector<20x1xf32>
    %234 = arith.mulf %227, %227 : vector<20x128xf32>
    %cst_102 = arith.constant dense<0.000000e+00> : vector<20xf32>
    %235 = vector.multi_reduction <add>, %234, %cst_102 [1] : vector<20x128xf32> to vector<20xf32>
    %236 = vector.shape_cast %235 : vector<20xf32> to vector<20x1xf32>
    %cst_103 = arith.constant 2.000000e-02 : f32
    %237 = vector.broadcast %cst_103 : f32 to vector<20x1xf32>
    %238 = arith.mulf %233, %237 : vector<20x1xf32>
    %cst_104 = arith.constant 2.000000e-02 : f32
    %239 = vector.broadcast %cst_104 : f32 to vector<20x1xf32>
    %240 = arith.mulf %236, %239 : vector<20x1xf32>
    %241 = arith.mulf %238, %238 : vector<20x1xf32>
    %242 = arith.subf %240, %241 : vector<20x1xf32>
    %243 = vector.broadcast %238 : vector<20x1xf32> to vector<20x128xf32>
    %244 = arith.subf %227, %243 : vector<20x128xf32>
    %cst_105 = arith.constant 9.99999974E-6 : f32
    %245 = vector.broadcast %cst_105 : f32 to vector<20x1xf32>
    %246 = arith.addf %242, %245 : vector<20x1xf32>
    %247 = math.rsqrt %246 : vector<20x1xf32>
    %248 = vector.broadcast %247 : vector<20x1xf32> to vector<20x128xf32>
    %249 = arith.mulf %244, %248 : vector<20x128xf32>
    %250 = vector.broadcast %229 : vector<1x128xf32> to vector<20x128xf32>
    %251 = arith.mulf %249, %250 : vector<20x128xf32>
    %252 = vector.broadcast %231 : vector<1x128xf32> to vector<20x128xf32>
    %253 = arith.addf %251, %252 : vector<20x128xf32>
    %254 = arith.truncf %253 : vector<20x128xf32> to vector<20x128xbf16>
    %c0_106 = arith.constant 0 : index
    %c0_107 = arith.constant 0 : index
    %255 = vector.load %arg7[%c0_106, %c0_107] : memref<128x128xbf16, #tpu.memory_space<vmem>>, vector<128x128xbf16>
    %cst_108 = arith.constant dense<0.000000e+00> : vector<20x128xf32>
    %256 = tpu.matmul %254, %255, %cst_108 {dimension_numbers = #tpu.dot_dimension_numbers<[1], [0], [0], [1], [0, 0, 1, 1], [], []>} : vector<20x128xbf16>, vector<128x128xbf16>, vector<20x128xf32> -> vector<20x128xf32>
    %c0_109 = arith.constant 0 : index
    %c0_110 = arith.constant 0 : index
    %c2176 = arith.constant 2176 : index
    %257 = vector.load %arg4[%c0_109, %c0_110, %c2176] : memref<2x1x2304xf32, #tpu.memory_space<vmem>>, vector<1x1x128xf32>
    %258 = vector.shape_cast %257 : vector<1x1x128xf32> to vector<1x128xf32>
    %259 = vector.broadcast %258 : vector<1x128xf32> to vector<20x128xf32>
    %260 = arith.addf %256, %259 : vector<20x128xf32>
    %c0_111 = arith.constant 0 : index
    %c0_112 = arith.constant 0 : index
    %261 = vector.load %arg8[%c0_111, %c0_112] : memref<20x128xf32, #tpu.memory_space<vmem>>, vector<20x128xf32>
    tpu.vector_store %arg8[%c0_111, %c0_112], %260 {strides = array<i32>} : memref<20x128xf32, #tpu.memory_space<vmem>>, vector<20x128xf32>,
    return
  }
  func.func @transform_0(%arg0: i32) -> (i32, i32) {
    %c0_i32 = arith.constant 0 : i32
    %c0_i32_0 = arith.constant 0 : i32
    %c0_i32_1 = arith.constant 0 : i32
    return %c0_i32, %c0_i32_0 : i32, i32
  }
  func.func @transform_1(%arg0: i32) -> (i32, i32) {
    %c0_i32 = arith.constant 0 : i32
    %c0_i32_0 = arith.constant 0 : i32
    %c0_i32_1 = arith.constant 0 : i32
    return %c0_i32, %c0_i32_0 : i32, i32
  }
  func.func @transform_2(%arg0: i32) -> (i32, i32, i32) {
    %c0_i32 = arith.constant 0 : i32
    %c0_i32_0 = arith.constant 0 : i32
    %c0_i32_1 = arith.constant 0 : i32
    %c0_i32_2 = arith.constant 0 : i32
    return %c0_i32, %c0_i32_0, %c0_i32_1 : i32, i32, i32
  }
  func.func @transform_3(%arg0: i32) -> (i32, i32, i32) {
    %c0_i32 = arith.constant 0 : i32
    %c0_i32_0 = arith.constant 0 : i32
    %c0_i32_1 = arith.constant 0 : i32
    %c0_i32_2 = arith.constant 0 : i32
    return %c0_i32, %c0_i32_0, %c0_i32_1 : i32, i32, i32
  }
  func.func @transform_4(%arg0: i32) -> (i32, i32, i32) {
    %c0_i32 = arith.constant 0 : i32
    %c0_i32_0 = arith.constant 0 : i32
    %c0_i32_1 = arith.constant 0 : i32
    %c0_i32_2 = arith.constant 0 : i32
    return %c0_i32, %c0_i32_0, %c0_i32_1 : i32, i32, i32
  }
  func.func @transform_5(%arg0: i32) -> (i32, i32, i32) {
    %c0_i32 = arith.constant 0 : i32
    %c0_i32_0 = arith.constant 0 : i32
    %c0_i32_1 = arith.constant 0 : i32
    %c0_i32_2 = arith.constant 0 : i32
    return %c0_i32, %c0_i32_0, %c0_i32_1 : i32, i32, i32
  }
  func.func @transform_6(%arg0: i32) -> (i32, i32) {
    %c0_i32 = arith.constant 0 : i32
    %c0_i32_0 = arith.constant 0 : i32
    %c0_i32_1 = arith.constant 0 : i32
    return %c0_i32, %c0_i32_0 : i32, i32
  }
  func.func @transform_7(%arg0: i32) -> (i32, i32) {
    %c0_i32 = arith.constant 0 : i32
    %c0_i32_0 = arith.constant 0 : i32
    %c0_i32_1 = arith.constant 0 : i32
    return %c0_i32, %c0_i32_0 : i32, i32
  }
}

</mosaic_0001>

<bundles_post_ra>
// kernel: tpu_custom_call.1
= control target key start
LH: loop header
LB: loop body
LE: loop exit
PB: predicated region body
PF: predicated region fallthrough
CT: control target
= control target key end

     0   :  { %12 = vsyncpa [#allocation3], 0  ;;  %s5025_s0 = inlined_call_operand.hbm [shape: f32[20,128], index: 0, kind: input, shape index: {}]   ;;  %s5026_s1 = inlined_call_operand.hbm [shape: f32[20,20], index: 1, kind: input, shape index: {}]   ;;  %s5027_s2 = inlined_call_operand.hbm [shape: bf16[2,128,1152], index: 2, kind: input, shape index: {}]   ;;  %s5028_s3 = inlined_call_operand.hbm [shape: f32[2,1,2304], index: 3, kind: input, shape index: {}]   ;;  %s5029_s4 = inlined_call_operand.hbm [shape: bf16[2,128,256], index: 4, kind: input, shape index: {}]   ;;  %s5030_s5 = inlined_call_operand.hbm [shape: bf16[2,256,128], index: 5, kind: input, shape index: {}]   ;;  %s5031_s6 = inlined_call_operand.hbm [shape: bf16[128,128], index: 6, kind: input, shape index: {}]   ;;  %s5032_s7 = inlined_call_operand.hbm [shape: f32[20,128], index: 7, kind: output, shape index: {}]  }
   0x1   :  { %13 = vsyncpa [#allocation6], 0 }
   0x2   :  { %14 = vsyncpa [#allocation9], 0 }
   0x3   :  { %15 = vsyncpa [#allocation12], 0 }
   0x4   :  { %16 = vsyncpa [#allocation4], 0  ;;  %s34_s26 = sshll.u32 %s5026_s1, 4  ;;  %s4548_s27 = smov [#allocation5]   ;;  %s35_s26 = int_to_ptr.hbm [resolvable:$true] %s34_s26 }
   0x5   :  { %s36_s28 = sshll.u32 %s4548_s27, 4  ;;  %s60_s8 = sshll.u32 %s5028_s3, 4  ;;  %s37_s28 = int_to_ptr.vmem [resolvable:$true] %s36_s28  ;;  %s61_s8 = int_to_ptr.hbm [resolvable:$true] %s60_s8 }
   0x6   :  { %s4549_s9 = smov 128   ;;  %s4550_s10 = smov 8  }
   0x7   :  { %42 = dma.hbm_to_vmem [thread:$0]  %s35_s26, 384, %s37_s28, [#allocation6], %s4549_s9, %s4549_s9, %s4550_s10  }
   0x8   :  { %s4551_s11 = smov [#allocation8]   ;;  %s4552_s13 = smov 288  }
   0x9   :  { %s62_s12 = sshll.u32 %s4551_s11, 4  ;;  %s4553_s1 = smov 18   ;;  %s63_s12 = int_to_ptr.vmem [resolvable:$true] %s62_s12 }
   0xa   :  { %68 = dma.hbm_to_vmem [thread:$0]  %s61_s8, 576, %s63_s12, [#allocation9], %s4552_s13, %s4552_s13, %s4553_s1  }
   0xb   :  { %s86_s16 = sshll.u32 %s5030_s5, 4  ;;  %s4554_s17 = smov [#allocation11]   ;;  %s87_s16 = int_to_ptr.hbm [resolvable:$true] %s86_s16 }
   0xc   :  { %s88_s3 = sshll.u32 %s4554_s17, 4  ;;  %s21_s20 = sshll.u32 %s5025_s0, 4  ;;  %s89_s3 = int_to_ptr.vmem [resolvable:$true] %s88_s3  ;;  %s22_s20 = int_to_ptr.hbm [resolvable:$true] %s21_s20 }
   0xd   :  { %s4555_s21 = smov 64   ;;  %s4556_s22 = smov 4  }
   0xe   :  { %94 = dma.hbm_to_vmem [thread:$0]  %s87_s16, 4096, %s89_s3, [#allocation12], %s4555_s21, %s4555_s21, %s4556_s22  }
   0xf   :  { %s4557_s23 = smov [#allocation2]   ;;  %s47_s5 = sshll.u32 %s5027_s2, 4  ;;  %s48_s5 = int_to_ptr.hbm [resolvable:$true] %s47_s5 }
  0x10   :  { %s23_s24 = sshll.u32 %s4557_s23, 4  ;;  %s4558_s0 = smov [#allocation7]   ;;  %s24_s24 = int_to_ptr.vmem [resolvable:$true] %s23_s24 }
  0x11   :  { %29 = dma.hbm_to_vmem [thread:$0]  %s22_s20, 384, %s24_s24, [#allocation3], %s4549_s9, %s4549_s9, %s4550_s10  }
  0x12   :  { %s49_s27 = sshll.u32 %s4558_s0, 4  ;;  %s73_s30 = sshll.u32 %s5029_s4, 4  ;;  %s50_s27 = int_to_ptr.vmem [resolvable:$true] %s49_s27  ;;  %s74_s30 = int_to_ptr.hbm [resolvable:$true] %s73_s30 }
  0x13   :  { %s4559_s8 = smov 576   ;;  %s4560_s11 = smov 36  }
  0x14   :  { %55 = dma.hbm_to_vmem [thread:$0]  %s48_s5, 18432, %s50_s27, [#allocation6], %s4559_s8, %s4559_s8, %s4560_s11  }
  0x15   :  { %s4561_s12 = smov [#allocation10]   ;;  %s99_s14 = sshll.u32 %s5031_s6, 4  ;;  %s100_s14 = int_to_ptr.hbm [resolvable:$true] %s99_s14 }
  0x16   :  { %s75_s13 = sshll.u32 %s4561_s12, 4  ;;  %s4562_s15 = smov [#allocation13]   ;;  %s76_s13 = int_to_ptr.vmem [resolvable:$true] %s75_s13 }
  0x17   :  { %81 = dma.hbm_to_vmem [thread:$0]  %s74_s30, 4096, %s76_s13, [#allocation9], %s4549_s9, %s4549_s9, %s4550_s10  }
  0x18   :  { %s101_s16 = sshll.u32 %s4562_s15, 4  ;;  %s102_s16 = int_to_ptr.vmem [resolvable:$true] %s101_s16 }
  0x19   :  { %107 = dma.hbm_to_vmem [thread:$0]  %s100_s14, 1024, %s102_s16, [#allocation12], %s4555_s21, %s4555_s21, %s4556_s22  }
  0x1a   :  { %4538 = dma.done.wait [#allocation3], 384  }
  0x1b   :  { %4539 = vsyncadd [#allocation3], 4294966912 }
  0x1c   :  { %4540 = dma.done.wait [#allocation6], 18816  }
  0x1d   :  { %4541 = vsyncadd [#allocation6], 4294948480 }
  0x1e   :  { %4542 = dma.done.wait [#allocation9], 4672  }
  0x1f   :  { %4543 = vsyncadd [#allocation9], 4294962624 }
  0x20   :  { %4544 = dma.done.wait [#allocation12], 5120  }
  0x21   :  { %4545 = vsyncadd [#allocation12], 4294962176  ;;  %v3370_v0 = vld [vmem:[#allocation7 + $0x1f8] sm:$0xf]  ;;  %v4059_v1 = vld [vmem:[#allocation7 + $0x218] sm:$0xf0] }
  0x22   :  { %v4055_v2 = vld [vmem:[#allocation7 + $0x1fc] sm:$0xf]  ;;  %v3371_v3 = vor.u32 %v4059_v1, %v3370_v0  ;;  %v3372_v4 = vld [vmem:[#allocation7 + $0x21c] sm:$0xf0]  ;;  %v4060_v6 = vld [vmem:[#allocation7 + $0x220] sm:$0xf0] }
  0x23   :  { %v3378_v5 = vld [vmem:[#allocation7 + $0x200] sm:$0xf]  ;;  %v3375_v7 = vor.u32 %v4055_v2, %v3372_v4  ;;  %v4056_v9 = vld [vmem:[#allocation7 + $0x204] sm:$0xf]  ;;  %v3380_v10 = vld [vmem:[#allocation7 + $0x224] sm:$0xf0] }
  0x24   :  { %v3379_v8 = vor.u32 %v4060_v6, %v3378_v5  ;;  %v3334_v11 = vld [vmem:[#allocation7 + $0x1b0] sm:$0xf]  ;;  %615 = vmatpush.bf16.msra.mxu0 %v3371_v3  ;;  %v3383_v12 = vor.u32 %v4056_v9, %v3380_v10  ;;  %v4050_v13 = vld [vmem:[#allocation7 + $0x1d0] sm:$0xf0]  ;;  %v3336_v15 = vld [vmem:[#allocation7 + $0x1d4] sm:$0xf0] }
  0x25   :  { %v4046_v14 = vld [vmem:[#allocation7 + $0x1b4] sm:$0xf]  ;;  %633 = vmatpush.bf16.msra.mxu1 %v3375_v7  ;;  %v3335_v16 = vor.u32 %v4050_v13, %v3334_v11  ;;  %v3342_v18 = vld [vmem:[#allocation7 + $0x1b8] sm:$0xf]  ;;  %v4051_v19 = vld [vmem:[#allocation7 + $0x1d8] sm:$0xf0] }
  0x26   :  { %651 = vmatpush.bf16.msra.mxu2 %v3379_v8  ;;  %v3339_v17 = vor.u32 %v4046_v14, %v3336_v15  ;;  %v4047_v20 = vld [vmem:[#allocation7 + $0x1bc] sm:$0xf]  ;;  %669 = vmatpush.bf16.msra.mxu3 %v3383_v12  ;;  %v3343_v21 = vor.u32 %v4051_v19, %v3342_v18  ;;  %v3344_v22 = vld [vmem:[#allocation7 + $0x1dc] sm:$0xf0]  ;;  %v3298_v23 = vld [vmem:[#allocation7 + $0x168] sm:$0xf] }
  0x27   :  { %v4041_v24 = vld [vmem:[#allocation7 + $0x188] sm:$0xf0]  ;;  %v3347_v25 = vor.u32 %v4047_v20, %v3344_v22  ;;  %v3300_v27 = vld [vmem:[#allocation7 + $0x18c] sm:$0xf0]  ;;  %v4042_v30 = vld [vmem:[#allocation7 + $0x190] sm:$0xf0] }
  0x28   :  { %v4037_v26 = vld [vmem:[#allocation7 + $0x16c] sm:$0xf]  ;;  %v3306_v28 = vld [vmem:[#allocation7 + $0x170] sm:$0xf]  ;;  %616 = vmatpush.bf16.msra.mxu0 %v3335_v16  ;;  %v3299_v29 = vor.u32 %v4041_v24, %v3298_v23  ;;  %v4038_v31 = vld [vmem:[#allocation7 + $0x174] sm:$0xf] }
  0x29   :  { %v3308_v32 = vld [vmem:[#allocation7 + $0x194] sm:$0xf0]  ;;  %634 = vmatpush.bf16.msra.mxu1 %v3339_v17  ;;  %v3303_v33 = vor.u32 %v4037_v26, %v3300_v27  ;;  %v3307_v34 = vor.u32 %v4042_v30, %v3306_v28  ;;  %v3262_v35 = vld [vmem:[#allocation7 + $0x120] sm:$0xf]  ;;  %v4032_v36 = vld [vmem:[#allocation7 + $0x140] sm:$0xf0] }
  0x2a   :  { %652 = vmatpush.bf16.msra.mxu2 %v3343_v21  ;;  %v4028_v37 = vld [vmem:[#allocation7 + $0x124] sm:$0xf]  ;;  %670 = vmatpush.bf16.msra.mxu3 %v3347_v25  ;;  %v3311_v38 = vor.u32 %v4038_v31, %v3308_v32  ;;  %v3264_v39 = vld [vmem:[#allocation7 + $0x144] sm:$0xf0]  ;;  %v4033_v41 = vld [vmem:[#allocation7 + $0x148] sm:$0xf0]  ;;  %v3263_v44 = vor.u32 %v4032_v36, %v3262_v35 }
  0x2b   :  { %v3270_v40 = vld [vmem:[#allocation7 + $0x128] sm:$0xf]  ;;  %v4029_v42 = vld [vmem:[#allocation7 + $0x12c] sm:$0xf]  ;;  %v3272_v43 = vld [vmem:[#allocation7 + $0x14c] sm:$0xf0]  ;;  %v3267_v45 = vor.u32 %v4028_v37, %v3264_v39 }
  0x2c   :  { %617 = vmatpush.bf16.msra.mxu0 %v3299_v29  ;;  %v3271_v46 = vor.u32 %v4033_v41, %v3270_v40  ;;  %v3226_v47 = vld [vmem:[#allocation7 + $0xd8] sm:$0xf]  ;;  %v4023_v48 = vld [vmem:[#allocation7 + $0xf8] sm:$0xf0]  ;;  %v3275_v50 = vor.u32 %v4029_v42, %v3272_v43  ;;  %v3228_v51 = vld [vmem:[#allocation7 + $0xfc] sm:$0xf0] }
  0x2d   :  { %635 = vmatpush.bf16.msra.mxu1 %v3303_v33  ;;  %v4019_v49 = vld [vmem:[#allocation7 + $0xdc] sm:$0xf]  ;;  %v3234_v52 = vld [vmem:[#allocation7 + $0xe0] sm:$0xf]  ;;  %v4024_v53 = vld [vmem:[#allocation7 + $0x100] sm:$0xf0]  ;;  %v3227_v56 = vor.u32 %v4023_v48, %v3226_v47 }
  0x2e   :  { %653 = vmatpush.bf16.msra.mxu2 %v3307_v34  ;;  %671 = vmatpush.bf16.msra.mxu3 %v3311_v38  ;;  %v4020_v54 = vld [vmem:[#allocation7 + $0xe4] sm:$0xf]  ;;  %v3236_v55 = vld [vmem:[#allocation7 + $0x104] sm:$0xf0]  ;;  %v3231_v57 = vor.u32 %v4019_v49, %v3228_v51  ;;  %v3235_v58 = vor.u32 %v4024_v53, %v3234_v52  ;;  %v3190_v59 = vld [vmem:[#allocation7 + $0x90] sm:$0xf] }
  0x2f   :  { %v4014_v60 = vld [vmem:[#allocation7 + $0xb0] sm:$0xf0]  ;;  %v3239_v62 = vor.u32 %v4020_v54, %v3236_v55  ;;  %v3192_v63 = vld [vmem:[#allocation7 + $0xb4] sm:$0xf0]  ;;  %v4015_v1 = vld [vmem:[#allocation7 + $0xb8] sm:$0xf0] }
  0x30   :  { %618 = vmatpush.bf16.msra.mxu0 %v3263_v44  ;;  %v4010_v61 = vld [vmem:[#allocation7 + $0x94] sm:$0xf]  ;;  %v3198_v0 = vld [vmem:[#allocation7 + $0x98] sm:$0xf]  ;;  %v4011_v2 = vld [vmem:[#allocation7 + $0x9c] sm:$0xf]  ;;  %v3191_v4 = vor.u32 %v4014_v60, %v3190_v59 }
  0x31   :  { %636 = vmatpush.bf16.msra.mxu1 %v3267_v45  ;;  %v3200_v3 = vld [vmem:[#allocation7 + $0xbc] sm:$0xf0]  ;;  %v3195_v5 = vor.u32 %v4010_v61, %v3192_v63  ;;  %v3199_v6 = vor.u32 %v4015_v1, %v3198_v0  ;;  %v3154_v7 = vld [vmem:[#allocation7 + $0x48] sm:$0xf]  ;;  %v4005_v8 = vld [vmem:[#allocation7 + $0x68] sm:$0xf0] }
  0x32   :  { %654 = vmatpush.bf16.msra.mxu2 %v3271_v46  ;;  %672 = vmatpush.bf16.msra.mxu3 %v3275_v50  ;;  %v4001_v9 = vld [vmem:[#allocation7 + $0x4c] sm:$0xf]  ;;  %v3203_v10 = vor.u32 %v4011_v2, %v3200_v3  ;;  %v3156_v11 = vld [vmem:[#allocation7 + $0x6c] sm:$0xf0]  ;;  %v4006_v13 = vld [vmem:[#allocation7 + $0x70] sm:$0xf0]  ;;  %v3155_v16 = vor.u32 %v4005_v8, %v3154_v7 }
  0x33   :  { %v3162_v12 = vld [vmem:[#allocation7 + $0x50] sm:$0xf]  ;;  %v4002_v14 = vld [vmem:[#allocation7 + $0x54] sm:$0xf]  ;;  %v3164_v15 = vld [vmem:[#allocation7 + $0x74] sm:$0xf0]  ;;  %v3159_v19 = vor.u32 %v4001_v9, %v3156_v11 }
  0x34   :  { %619 = vmatpush.bf16.msra.mxu0 %v3227_v56  ;;  %v3118_v17 = vld [vmem:[#allocation7] sm:$0xf]  ;;  %v3996_v18 = vld [vmem:[#allocation7 + $0x20] sm:$0xf0]  ;;  %v3163_v20 = vor.u32 %v4006_v13, %v3162_v12  ;;  %v3120_v22 = vld [vmem:[#allocation7 + $0x24] sm:$0xf0]  ;;  %v3167_v24 = vor.u32 %v4002_v14, %v3164_v15 }
  0x35   :  { %637 = vmatpush.bf16.msra.mxu1 %v3231_v57  ;;  %v3992_v21 = vld [vmem:[#allocation7 + $0x4] sm:$0xf]  ;;  %v3126_v23 = vld [vmem:[#allocation7 + $0x8] sm:$0xf]  ;;  %v3997_v25 = vld [vmem:[#allocation7 + $0x28] sm:$0xf0]  ;;  %v3119_v31 = vor.u32 %v3996_v18, %v3118_v17 }
  0x36   :  { %655 = vmatpush.bf16.msra.mxu2 %v3235_v58  ;;  %673 = vmatpush.bf16.msra.mxu3 %v3239_v62  ;;  %v3993_v26 = vld [vmem:[#allocation7 + $0xc] sm:$0xf]  ;;  %v3128_v27 = vld [vmem:[#allocation7 + $0x2c] sm:$0xf0]  ;;  %v3386_v29 = vld [vmem:[#allocation7 + $0x208] sm:$0xf]  ;;  %v3123_v35 = vor.u32 %v3992_v21, %v3120_v22  ;;  %v3127_v36 = vor.u32 %v3997_v25, %v3126_v23 }
  0x37   :  { %v4640_v28 = vld [vmem:[#allocation2] sm:$0xff]  ;;  %v4061_v30 = vld [vmem:[#allocation7 + $0x228] sm:$0xf0]  ;;  %v4642_v32 = vld [vmem:[#allocation2 + $0x8] sm:$0xff]  ;;  %v3131_v37 = vor.u32 %v3993_v26, %v3128_v27  ;;  %vm928_vm0 = vcmask 1041408   ;;  %vm836_vm1 = vcmask 162816  }
  0x38   :  { %620 = vmatpush.bf16.msra.mxu0 %v3191_v4  ;;  %v4057_v33 = vld [vmem:[#allocation7 + $0x20c] sm:$0xf]  ;;  %v3388_v34 = vld [vmem:[#allocation7 + $0x22c] sm:$0xf0]  ;;  %v3387_v38 = vor.u32 %v4061_v30, %v3386_v29  ;;  %v4646_v39 = vpack.c.bf16 %v4642_v32, %v4640_v28  ;;  %v3350_v41 = vld [vmem:[#allocation7 + $0x1c0] sm:$0xf] }
  0x39   :  { %638 = vmatpush.bf16.msra.mxu1 %v3195_v5  ;;  %v3391_v40 = vor.u32 %v4057_v33, %v3388_v34  ;;  %v4052_v42 = vld [vmem:[#allocation7 + $0x1e0] sm:$0xf0]  ;;  %v3352_v44 = vld [vmem:[#allocation7 + $0x1e4] sm:$0xf0]  ;;  %v3314_v45 = vld [vmem:[#allocation7 + $0x178] sm:$0xf] }
  0x3a   :  { %656 = vmatpush.bf16.msra.mxu2 %v3199_v6  ;;  %674 = vmatpush.bf16.msra.mxu3 %v3203_v10  ;;  %v4048_v43 = vld [vmem:[#allocation7 + $0x1c4] sm:$0xf]  ;;  %v4043_v46 = vld [vmem:[#allocation7 + $0x198] sm:$0xf0]  ;;  %v3351_v47 = vor.u32 %v4052_v42, %v3350_v41  ;;  %v3316_v49 = vld [vmem:[#allocation7 + $0x19c] sm:$0xf0] }
  0x3b   :  { %v4039_v48 = vld [vmem:[#allocation7 + $0x17c] sm:$0xf]  ;;  %v3355_v50 = vor.u32 %v4048_v43, %v3352_v44  ;;  %v3315_v51 = vor.u32 %v4043_v46, %v3314_v45  ;;  %v3278_v53 = vld [vmem:[#allocation7 + $0x130] sm:$0xf]  ;;  %v4034_v54 = vld [vmem:[#allocation7 + $0x150] sm:$0xf0] }
  0x3c   :  { %621 = vmatpush.bf16.msra.mxu0 %v3155_v16  ;;  %v3319_v52 = vor.u32 %v4039_v48, %v3316_v49  ;;  %v4030_v55 = vld [vmem:[#allocation7 + $0x134] sm:$0xf]  ;;  %v3280_v56 = vld [vmem:[#allocation7 + $0x154] sm:$0xf0]  ;;  %v3279_v57 = vor.u32 %v4034_v54, %v3278_v53  ;;  %v3242_v59 = vld [vmem:[#allocation7 + $0xe8] sm:$0xf] }
  0x3d   :  { %639 = vmatpush.bf16.msra.mxu1 %v3159_v19  ;;  %v3283_v58 = vor.u32 %v4030_v55, %v3280_v56  ;;  %v4025_v60 = vld [vmem:[#allocation7 + $0x108] sm:$0xf0]  ;;  %v4652_v61 = vld [vmem:[#allocation2 + $0x10] sm:$0xf]  ;;  %v3244_v63 = vld [vmem:[#allocation7 + $0x10c] sm:$0xf0] }
  0x3e   :  { %657 = vmatpush.bf16.msra.mxu2 %v3163_v20  ;;  %675 = vmatpush.bf16.msra.mxu3 %v3167_v24  ;;  %v4021_v62 = vld [vmem:[#allocation7 + $0xec] sm:$0xf]  ;;  %v3243_v0 = vor.u32 %v4025_v60, %v3242_v59  ;;  %v4656_v1 = vpack.c.bf16 %v4652_v61, %v4652_v61  ;;  %v3206_v3 = vld [vmem:[#allocation7 + $0xa0] sm:$0xf]  ;;  %v4016_v4 = vld [vmem:[#allocation7 + $0xc0] sm:$0xf0] }
  0x3f   :  { %v3247_v2 = vor.u32 %v4021_v62, %v3244_v63  ;;  %v4012_v5 = vld [vmem:[#allocation7 + $0xa4] sm:$0xf]  ;;  %v3208_v6 = vld [vmem:[#allocation7 + $0xc4] sm:$0xf0]  ;;  %v3207_v7 = vor.u32 %v4016_v4, %v3206_v3  ;;  %v3170_v8 = vld [vmem:[#allocation7 + $0x58] sm:$0xf] }
  0x40   :  { %622 = vmatpush.bf16.msra.mxu0 %v3119_v31  ;;  %v3211_v9 = vor.u32 %v4012_v5, %v3208_v6  ;;  %v4007_v10 = vld [vmem:[#allocation7 + $0x78] sm:$0xf0]  ;;  %v3172_v12 = vld [vmem:[#allocation7 + $0x7c] sm:$0xf0]  ;;  %v3394_v13 = vld [vmem:[#allocation7 + $0x210] sm:$0xf] }
  0x41   :  { %640 = vmatpush.bf16.msra.mxu1 %v3123_v35  ;;  %v4003_v11 = vld [vmem:[#allocation7 + $0x5c] sm:$0xf]  ;;  %v4062_v14 = vld [vmem:[#allocation7 + $0x230] sm:$0xf0]  ;;  %v3396_v17 = vld [vmem:[#allocation7 + $0x234] sm:$0xf0]  ;;  %v3171_v20 = vor.u32 %v4007_v10, %v3170_v8 }
  0x42   :  { %658 = vmatpush.bf16.msra.mxu2 %v3127_v36  ;;  %676 = vmatpush.bf16.msra.mxu3 %v3131_v37  ;;  %v4058_v15 = vld [vmem:[#allocation7 + $0x214] sm:$0xf]  ;;  %v3395_v16 = vor.u32 %v4062_v14, %v3394_v13  ;;  %v3358_v18 = vld [vmem:[#allocation7 + $0x1c8] sm:$0xf]  ;;  %v4053_v19 = vld [vmem:[#allocation7 + $0x1e8] sm:$0xf0]  ;;  %v3175_v24 = vor.u32 %v4003_v11, %v3172_v12 }
  0x43   :  { %623 = vmatmul.bf16.vlgmr.msra.gmra.mxu0 %v4646_v39  ;;  %v3399_v21 = vor.u32 %v4058_v15, %v3396_v17  ;;  %v4049_v22 = vld [vmem:[#allocation7 + $0x1cc] sm:$0xf]  ;;  %v3360_v23 = vld [vmem:[#allocation7 + $0x1ec] sm:$0xf0]  ;;  %v3998_v26 = vld [vmem:[#allocation7 + $0x30] sm:$0xf0]  ;;  %v3359_v29 = vor.u32 %v4053_v19, %v3358_v18 }
  0x44   :  { %687 = vmatpush.bf16.msrb.mxu0 %v3387_v38  ;;  %641 = vmatmul.bf16.vlgmr.msra.gmra.mxu1 %v4646_v39  ;;  %v3134_v25 = vld [vmem:[#allocation7 + $0x10] sm:$0xf]  ;;  %v3994_v27 = vld [vmem:[#allocation7 + $0x14] sm:$0xf]  ;;  %v3136_v30 = vld [vmem:[#allocation7 + $0x34] sm:$0xf0]  ;;  %v3363_v31 = vor.u32 %v4049_v22, %v3360_v23 }
  0x45   :  { %705 = vmatpush.bf16.msrb.mxu1 %v3391_v40  ;;  %659 = vmatmul.bf16.vlgmr.msra.gmra.mxu2 %v4646_v39  ;;  %v3322_v33 = vld [vmem:[#allocation7 + $0x180] sm:$0xf]  ;;  %v4044_v34 = vld [vmem:[#allocation7 + $0x1a0] sm:$0xf0]  ;;  %v3324_v36 = vld [vmem:[#allocation7 + $0x1a4] sm:$0xf0]  ;;  %v3135_v37 = vor.u32 %v3998_v26, %v3134_v25  ;;  %v3139_v38 = vor.u32 %v3994_v27, %v3136_v30 }
  0x46   :  { %677 = vmatmul.bf16.vlgmr.msra.gmra.mxu3 %v4646_v39  ;;  %723 = vmatpush.bf16.msrb.mxu2 %v3395_v16  ;;  %v4040_v35 = vld [vmem:[#allocation7 + $0x184] sm:$0xf]  ;;  %v3323_v40 = vor.u32 %v4044_v34, %v3322_v33  ;;  %v3286_v42 = vld [vmem:[#allocation7 + $0x138] sm:$0xf]  ;;  %v4035_v43 = vld [vmem:[#allocation7 + $0x158] sm:$0xf0] }
  0x47   :  { %741 = vmatpush.bf16.msrb.mxu3 %v3399_v21  ;;  %v3327_v41 = vor.u32 %v4040_v35, %v3324_v36  ;;  %v4031_v44 = vld [vmem:[#allocation7 + $0x13c] sm:$0xf]  ;;  %v3287_v45 = vor.u32 %v4035_v43, %v3286_v42  ;;  %v3288_v46 = vld [vmem:[#allocation7 + $0x15c] sm:$0xf0]  ;;  %v3250_v48 = vld [vmem:[#allocation7 + $0xf0] sm:$0xf] }
  0x48   :  { %688 = vmatpush.bf16.msrb.mxu0 %v3351_v47  ;;  %v3291_v47 = vor.u32 %v4031_v44, %v3288_v46  ;;  %v4026_v49 = vld [vmem:[#allocation7 + $0x110] sm:$0xf0]  ;;  %v3214_v54 = vld [vmem:[#allocation7 + $0xa8] sm:$0xf]  ;;  %v4017_v55 = vld [vmem:[#allocation7 + $0xc8] sm:$0xf0] }
  0x49   :  { %706 = vmatpush.bf16.msrb.mxu1 %v3355_v50  ;;  %v4022_v50 = vld [vmem:[#allocation7 + $0xf4] sm:$0xf]  ;;  %v4013_v56 = vld [vmem:[#allocation7 + $0xac] sm:$0xf]  ;;  %v3178_v60 = vld [vmem:[#allocation7 + $0x60] sm:$0xf] }
  0x4a   :  { %724 = vmatpush.bf16.msrb.mxu2 %v3359_v29  ;;  %v4008_v62 = vld [vmem:[#allocation7 + $0x80] sm:$0xf0]  ;;  %v3142_v4 = vld [vmem:[#allocation7 + $0x18] sm:$0xf]  ;;  %v3999_v5 = vld [vmem:[#allocation7 + $0x38] sm:$0xf0] }
  0x4b   :  { %742 = vmatpush.bf16.msrb.mxu3 %v3363_v31  ;;  %v4004_v63 = vld [vmem:[#allocation7 + $0x64] sm:$0xf]  ;;  %v3995_v6 = vld [vmem:[#allocation7 + $0x1c] sm:$0xf]  ;;  %v3144_v8 = vld [vmem:[#allocation7 + $0x3c] sm:$0xf0] }
  0x4c   :  { %689 = vmatpush.bf16.msrb.mxu0 %v3315_v51  ;;  %v3251_v51 = vor.u32 %v4026_v49, %v3250_v48  ;;  %vm843_vm2 = vcmask 158720   ;;  %vm1093_vm3 = vcmask 1043456   ;;  %s4563_s4 = smov [#allocation14]   ;;  %s3100_s18 = sshll.u32 %s5032_s7, 4  ;;  %s3101_s18 = int_to_ptr.hbm [resolvable:$true] %s3100_s18 }
  0x4d   :  { %707 = vmatpush.bf16.msrb.mxu1 %v3319_v52  ;;  %v3252_v52 = vld [vmem:[#allocation7 + $0x114] sm:$0xf0]  ;;  %s3098_s6 = sshll.u32 %s4563_s4, 4  ;;  %s3099_s6 = int_to_ptr.vmem [resolvable:$true] %s3098_s6 }
  0x4e   :  { %725 = vmatpush.bf16.msrb.mxu2 %v3323_v40  ;;  %v3255_v53 = vor.u32 %v4022_v50, %v3252_v52 }
  0x4f   :  { %743 = vmatpush.bf16.msrb.mxu3 %v3327_v41 }
  0x50   :  { %690 = vmatpush.bf16.msrb.mxu0 %v3279_v57  ;;  %v3215_v57 = vor.u32 %v4017_v55, %v3214_v54 }
  0x51   :  { %708 = vmatpush.bf16.msrb.mxu1 %v3283_v58  ;;  %v3216_v58 = vld [vmem:[#allocation7 + $0xcc] sm:$0xf0] }
  0x52   :  { %726 = vmatpush.bf16.msrb.mxu2 %v3287_v45  ;;  %v3219_v59 = vor.u32 %v4013_v56, %v3216_v58 }
  0x53   :  { %628 = vmatmul.bf16.gmra.mxu0 %v4656_v1  ;;  %744 = vmatpush.bf16.msrb.mxu3 %v3291_v47 }
  0x54   :  { %691 = vmatpush.bf16.msrb.mxu0 %v3243_v0  ;;  %646 = vmatmul.bf16.gmra.mxu1 %v4656_v1  ;;  %v3179_v0 = vor.u32 %v4008_v62, %v3178_v60 }
  0x55   :  { %709 = vmatpush.bf16.msrb.mxu1 %v3247_v2  ;;  %664 = vmatmul.bf16.gmra.mxu2 %v4656_v1  ;;  %v3180_v2 = vld [vmem:[#allocation7 + $0x84] sm:$0xf0] }
  0x56   :  { %682 = vmatmul.bf16.gmra.mxu3 %v4656_v1  ;;  %727 = vmatpush.bf16.msrb.mxu2 %v3251_v51  ;;  %v3183_v3 = vor.u32 %v4004_v63, %v3180_v2 }
  0x57   :  { %745 = vmatpush.bf16.msrb.mxu3 %v3255_v53 }
  0x58   :  { %692 = vmatpush.bf16.msrb.mxu0 %v3207_v7  ;;  %v3143_v7 = vor.u32 %v3999_v5, %v3142_v4 }
  0x59   :  { %710 = vmatpush.bf16.msrb.mxu1 %v3211_v9  ;;  %v3147_v9 = vor.u32 %v3995_v6, %v3144_v8 }
  0x5a   :  { %728 = vmatpush.bf16.msrb.mxu2 %v3215_v57 }
  0x5b   :  { %746 = vmatpush.bf16.msrb.mxu3 %v3219_v59 }
  0x5c   :  { %693 = vmatpush.bf16.msrb.mxu0 %v3171_v20  ;;  %v4670_v20 = vld [vmem:[#allocation8] sm:$0xff] }
  0x5d   :  { %711 = vmatpush.bf16.msrb.mxu1 %v3175_v24  ;;  %v231_v21 = vperm.slane %v4670_v20, 2  ;;  %v232_v22 = vperm.slane %v4670_v20, 3  ;;  %v229_v41 = vperm.slane %v4670_v20, 0  ;;  %v230_v42 = vperm.slane %v4670_v20, 1 }
  0x5e   :  { %729 = vmatpush.bf16.msrb.mxu2 %v3179_v0  ;;  %v233_v62 = vperm.slane %v4670_v20, 4  ;;  %v234_v63 = vperm.slane %v4670_v20, 5 }
  0x5f   :  { %747 = vmatpush.bf16.msrb.mxu3 %v3183_v3 }
  0x60   :  { %694 = vmatpush.bf16.msrb.mxu0 %v3135_v37 }
  0x61   :  { %712 = vmatpush.bf16.msrb.mxu1 %v3139_v38 }
  0x62   :  { %730 = vmatpush.bf16.msrb.mxu2 %v3143_v7 }
  0x63   :  { %695 = vmatmul.bf16.vlgmr.msrb.gmra.mxu0 %v4646_v39  ;;  %748 = vmatpush.bf16.msrb.mxu3 %v3147_v9 }
  0x64   :  { %713 = vmatmul.bf16.vlgmr.msrb.gmra.mxu1 %v4646_v39 }
  0x65   :  { %731 = vmatmul.bf16.vlgmr.msrb.gmra.mxu2 %v4646_v39 }
  0x66   :  { %749 = vmatmul.bf16.vlgmr.msrb.gmra.mxu3 %v4646_v39 }
  0x73   :  { %700 = vmatmul.bf16.gmra.mxu0 %v4656_v1 }
  0x74   :  { %718 = vmatmul.bf16.gmra.mxu1 %v4656_v1 }
  0x75   :  { %736 = vmatmul.bf16.gmra.mxu2 %v4656_v1 }
  0x76   :  { %754 = vmatmul.bf16.gmra.mxu3 %v4656_v1 }
  0xc0   :  { %v624_v10 = vpop.f32.mrf.mxu0 }
  0xc1   :  { %v642_v11 = vpop.f32.mrf.mxu1  ;;  %v625_v50 = vadd.f32 %v624_v10, %v229_v41 }
  0xc2   :  { %v643_v51 = vadd.f32 %v642_v11, %v230_v42 }
  0xc4   :  { %v777_v55 = vpack.c.bf16 %v643_v51, %v625_v50  ;;  %v4054_v50 = vld [vmem:[#allocation7 + $0x1f0] sm:$0xf0]  ;;  %v3330_v51 = vld [vmem:[#allocation7 + $0x188] sm:$0xf] }
  0xc6   :  { %v795_v59 = vunpack.c.l.b16 %v777_v55 }
  0xc8   :  { %v660_v12 = vpop.f32.mrf.mxu2  ;;  %v626_v14 = vpop.f32.mrf.mxu0 }
  0xc9   :  { %v678_v13 = vpop.f32.mrf.mxu3  ;;  %v644_v15 = vpop.f32.mrf.mxu1  ;;  %v661_v34 = vadd.f32 %v660_v12, %v231_v21  ;;  %v627_v47 = vadd.f32 %v626_v14, %v229_v41 }
  0xca   :  { %v679_v35 = vadd.f32 %v678_v13, %v232_v22  ;;  %v645_v48 = vadd.f32 %v644_v15, %v230_v42 }
  0xcc   :  { %v4681_v45 = vpack.c.bf16 %v679_v35, %v661_v34  ;;  %v782_v53 = vpack.c.bf16 %v645_v48, %v627_v47  ;;  %v4063_v34 = vld [vmem:[#allocation7 + $0x238] sm:$0xf0] }
  0xce   :  { %v805_v52 = vunpack.c.h.b16 %v4681_v45  ;;  %v796_v58 = vunpack.c.l.b16 %v782_v53 }
  0xd0   :  { %v662_v16 = vpop.f32.mrf.mxu2  ;;  %v629_v18 = vpop.f32.mrf.mxu0  ;;  %v798_v60 = vpack.c.b16 %v796_v58, %v795_v59  ;;  %v3222_v58 = vld [vmem:[#allocation7 + $0xb0] sm:$0xf]  ;;  %v4018_v59 = vld [vmem:[#allocation7 + $0xd0] sm:$0xf0] }
  0xd1   :  { %v680_v17 = vpop.f32.mrf.mxu3  ;;  %v647_v19 = vpop.f32.mrf.mxu1  ;;  %v663_v30 = vadd.f32 %v662_v16, %v231_v21  ;;  %v630_v2 = vadd.f32 %v629_v18, %v229_v41 }
  0xd2   :  { %v681_v31 = vadd.f32 %v680_v17, %v232_v22  ;;  %v648_v3 = vadd.f32 %v647_v19, %v230_v42  ;;  %v983_v42 = vunpack.c.l.b16 %v4681_v45  ;;  %v4036_v45 = vld [vmem:[#allocation7 + $0x160] sm:$0xf0] }
  0xd4   :  { %v4677_v37 = vpack.c.bf16 %v681_v31, %v663_v30  ;;  %v787_v10 = vpack.c.bf16 %v648_v3, %v630_v2  ;;  %v3402_v31 = vld [vmem:[#allocation7 + $0x218] sm:$0xf] }
  0xd5   :  { %v3403_v35 = vor.u32 %v4063_v34, %v3402_v31 }
  0xd6   :  { %v806_v49 = vunpack.c.h.b16 %v4677_v37  ;;  %v797_v18 = vunpack.c.l.b16 %v787_v10  ;;  %v984_v41 = vunpack.c.l.b16 %v4677_v37  ;;  %v3294_v37 = vld [vmem:[#allocation7 + $0x140] sm:$0xf] }
  0xd7   :  { %759 = vmatpush.bf16.msra.mxu0 %v3403_v35  ;;  %4208 = vmatpush.bf16.msra.mxu3 %v3403_v35 }
  0xd8   :  { %v665_v23 = vpop.f32.mrf.mxu2  ;;  %v631_v26 = vpop.f32.mrf.mxu0  ;;  %v808_v54 = vpack.c.b16 %v806_v49, %v805_v52  ;;  %v3366_v49 = vld [vmem:[#allocation7 + $0x1d0] sm:$0xf] }
  0xd9   :  { %v666_v24 = vadd.f32 %v665_v23, %v231_v21  ;;  %v683_v25 = vpop.f32.mrf.mxu3  ;;  %v649_v29 = vpop.f32.mrf.mxu1  ;;  %v3367_v52 = vor.u32 %v4054_v50, %v3366_v49 }
  0xda   :  { %v684_v27 = vadd.f32 %v683_v25, %v232_v22 }
  0xdb   :  { %760 = vmatpush.bf16.msra.mxu0 %v3367_v52  ;;  %4209 = vmatpush.bf16.msra.mxu3 %v3367_v52 }
  0xdc   :  { %v4674_v33 = vpack.c.bf16 %v684_v27, %v666_v24  ;;  %v799_v27 = vpack.c.b16 %v797_v18, %v797_v18  ;;  %v3150_v18 = vld [vmem:[#allocation7 + $0x20] sm:$0xf] }
  0xde   :  { %v807_v36 = vunpack.c.h.b16 %v4674_v33  ;;  %v985_v47 = vunpack.c.l.b16 %v4674_v33 }
  0xe0   :  { %v809_v38 = vpack.c.b16 %v807_v36, %v807_v36  ;;  %v667_v40 = vpop.f32.mrf.mxu2  ;;  %v696_v44 = vpop.f32.mrf.mxu0  ;;  %v856_v36 = vunpack.c.h.b16 %v782_v53  ;;  %v987_v48 = vpack.c.b16 %v985_v47, %v985_v47  ;;  %v4045_v53 = vld [vmem:[#allocation7 + $0x1a8] sm:$0xf0] }
  0xe1   :  { %v685_v43 = vpop.f32.mrf.mxu3  ;;  %v714_v46 = vpop.f32.mrf.mxu1  ;;  %v697_v11 = vadd.f32 %v696_v44, %v233_v62  ;;  %v857_v44 = vunpack.c.h.b16 %v787_v10 }
  0xe2   :  { %818 = vmatpush.bf16.xpose.msra.mxu1 %v809_v38  ;;  %v715_v12 = vadd.f32 %v714_v46, %v234_v63  ;;  %v855_v38 = vunpack.c.h.b16 %v777_v55  ;;  %v986_v43 = vpack.c.b16 %v984_v41, %v983_v42  ;;  %v3258_v55 = vld [vmem:[#allocation7 + $0xf8] sm:$0xf]  ;;  %v140_v41 = vld [vmem:[#allocation5] sm:$0xff] }
  0xe3   :  { %v859_v46 = vpack.c.b16 %v857_v44, %v857_v44 }
  0xe4   :  { %v779_v23 = vpack.c.bf16 %v715_v12, %v697_v11  ;;  %v858_v40 = vpack.c.b16 %v856_v36, %v855_v38 }
  0xe6   :  { %v865_v25 = vunpack.c.l.b16 %v779_v23  ;;  %v990_v26 = vunpack.c.h.b16 %v779_v23 }
  0xe8   :  { %v698_v56 = vpop.f32.mrf.mxu0  ;;  %v732_v2 = vpop.f32.mrf.mxu2 }
  0xe9   :  { %v716_v57 = vpop.f32.mrf.mxu1  ;;  %v699_v7 = vadd.f32 %v698_v56, %v233_v62  ;;  %v3295_v56 = vor.u32 %v4036_v45, %v3294_v37  ;;  %v750_v3 = vpop.f32.mrf.mxu3 }
  0xea   :  { %819 = vmatpush.bf16.xpose.msra.mxu1 %v808_v54  ;;  %v717_v8 = vadd.f32 %v716_v57, %v234_v63  ;;  %v3331_v54 = vor.u32 %v4045_v53, %v3330_v51  ;;  %v4027_v57 = vld [vmem:[#allocation7 + $0x118] sm:$0xf0] }
  0xeb   :  { %v3259_v33 = vor.u32 %v4027_v57, %v3258_v55 }
  0xec   :  { %v784_v15 = vpack.c.bf16 %v717_v8, %v699_v7  ;;  %761 = vmatpush.bf16.msra.mxu0 %v3331_v54  ;;  %4210 = vmatpush.bf16.msra.mxu3 %v3331_v54  ;;  %v236_v7 = vperm.slane %v4670_v20, 7 }
  0xee   :  { %v866_v19 = vunpack.c.l.b16 %v784_v15  ;;  %v991_v24 = vunpack.c.h.b16 %v784_v15 }
  0xf0   :  { %v701_v0 = vpop.f32.mrf.mxu0  ;;  %v868_v29 = vpack.c.b16 %v866_v19, %v865_v25  ;;  %v993_v30 = vpack.c.b16 %v991_v24, %v990_v26  ;;  %762 = vmatpush.bf16.msra.mxu0 %v3295_v56  ;;  %4211 = vmatpush.bf16.msra.mxu3 %v3295_v56  ;;  %v4000_v19 = vld [vmem:[#allocation7 + $0x40] sm:$0xf0] }
  0xf1   :  { %820 = vmatmul.bf16.vlgmr.msra.gmra.mxu1 %v798_v60  ;;  %v702_v4 = vadd.f32 %v701_v0, %v233_v62  ;;  %v719_v5 = vpop.f32.mrf.mxu1  ;;  %v3186_v60 = vld [vmem:[#allocation7 + $0x68] sm:$0xf]  ;;  %v3223_v62 = vor.u32 %v4018_v59, %v3222_v58 }
  0xf2   :  { %v720_v6 = vadd.f32 %v719_v5, %v234_v63  ;;  %v4009_v63 = vld [vmem:[#allocation7 + $0x88] sm:$0xf0]  ;;  %v752_v5 = vpop.f32.mrf.mxu3 }
  0xf3   :  { %v3187_v0 = vor.u32 %v4009_v63, %v3186_v60  ;;  %v753_v11 = vadd.f32 %v752_v5, %v236_v7 }
  0xf4   :  { %v789_v9 = vpack.c.bf16 %v720_v6, %v702_v4  ;;  %763 = vmatpush.bf16.msra.mxu0 %v3259_v33  ;;  %4212 = vmatpush.bf16.msra.mxu3 %v3259_v33  ;;  %v734_v4 = vpop.f32.mrf.mxu2  ;;  %v235_v6 = vperm.slane %v4670_v20, 6 }
  0xf6   :  { %v867_v13 = vunpack.c.l.b16 %v789_v9  ;;  %v992_v14 = vunpack.c.h.b16 %v789_v9  ;;  %v733_v8 = vadd.f32 %v732_v2, %v235_v6  ;;  %v751_v9 = vadd.f32 %v750_v3, %v236_v7 }
  0xf7   :  { %v735_v10 = vadd.f32 %v734_v4, %v235_v6 }
  0xf8   :  { %v869_v16 = vpack.c.b16 %v867_v13, %v867_v13  ;;  %v994_v17 = vpack.c.b16 %v992_v14, %v992_v14  ;;  %v703_v21 = vpop.f32.mrf.mxu0  ;;  %764 = vmatpush.bf16.msra.mxu0 %v3223_v62  ;;  %4213 = vmatpush.bf16.msra.mxu3 %v3223_v62 }
  0xf9   :  { %v721_v22 = vpop.f32.mrf.mxu1 }
  0xfa   :  { %878 = vmatpush.bf16.xpose.msra.mxu2 %v869_v16  ;;  %1003 = vmatpush.bf16.xpose.msrb.mxu1 %v994_v17  ;;  %v755_v14 = vpop.f32.mrf.mxu3  ;;  %v780_v16 = vpack.c.bf16 %v751_v9, %v733_v8  ;;  %v785_v17 = vpack.c.bf16 %v753_v11, %v735_v10 }
  0xfb   :  { %v756_v15 = vadd.f32 %v755_v14, %v236_v7 }
  0xfc   :  { %765 = vmatpush.bf16.msra.mxu0 %v3187_v0  ;;  %4214 = vmatpush.bf16.msra.mxu3 %v3187_v0  ;;  %v737_v12 = vpop.f32.mrf.mxu2  ;;  %v916_v24 = vunpack.c.h.b16 %v780_v16  ;;  %v950_v25 = vunpack.c.l.b16 %v780_v16  ;;  %v917_v26 = vunpack.c.h.b16 %v785_v17  ;;  %v951_v20 = vunpack.c.l.b16 %v785_v17 }
  0xfd   :  { %v738_v13 = vadd.f32 %v737_v12, %v235_v6 }
  0xfe   :  { %v919_v38 = vpack.c.b16 %v917_v26, %v916_v24 }
  0xff   :  { %v790_v21 = vpack.c.bf16 %v756_v15, %v738_v13 }
 0x101   :  { %825 = vmatmul.bf16.gmra.mxu1 %v799_v27  ;;  %v918_v22 = vunpack.c.h.b16 %v790_v21  ;;  %v952_v23 = vunpack.c.l.b16 %v790_v21  ;;  %v3151_v27 = vor.u32 %v4000_v19, %v3150_v18 }
 0x102   :  { %879 = vmatpush.bf16.xpose.msra.mxu2 %v868_v29  ;;  %1004 = vmatpush.bf16.xpose.msrb.mxu1 %v993_v30  ;;  %v757_v34 = vpop.f32.mrf.mxu3 }
 0x103   :  { %v920_v29 = vpack.c.b16 %v918_v22, %v918_v22  ;;  %v954_v30 = vpack.c.b16 %v952_v23, %v952_v23  ;;  %766 = vmatpush.bf16.msra.mxu0 %v3151_v27  ;;  %4215 = vmatpush.bf16.msra.mxu3 %v3151_v27  ;;  %v4232_v27 = vld [vmem:[#allocation8 + $0x8] ss:$0 sm:$0xff] }
 0x104   :  { %v739_v31 = vpop.f32.mrf.mxu2 }
 0x105   :  { %v930_v35 = vsel %vm928_vm0, %v920_v29, 0  ;;  %v963_v36 = vsel %vm928_vm0, %v954_v30, 0 }
 0x106   :  { %772 = vmatmul.bf16.vlgmr.msra.gmra.mxu3 %v4656_v1  ;;  %767 = vmatmul.bf16.vlgmr.msra.gmra.mxu0 %v4646_v39  ;;  %v142_v39 = vld [vmem:[#allocation5 + $0x10] sm:$0xf] }
 0x107   :  { %938 = vmatpush.bf16.msrb.mxu3 %v930_v35  ;;  %971 = vmatpush.bf16.msrb.mxu0 %v963_v36 }
 0x109   :  { %880 = vmatmul.bf16.vlgmr.msra.gmra.mxu2 %v858_v40  ;;  %v953_v40 = vpack.c.b16 %v951_v20, %v950_v25 }
 0x10b   :  { %939 = vmatpush.bf16.msrb.mxu3 %v919_v38  ;;  %972 = vmatpush.bf16.msrb.mxu0 %v953_v40 }
 0x111   :  { %1005 = vmatmul.bf16.vlgmr.msrb.gmra.mxu1 %v986_v43 }
 0x119   :  { %885 = vmatmul.bf16.gmra.mxu2 %v859_v46  ;;  %v141_v46 = vld [vmem:[#allocation5 + $0x8] sm:$0xff] }
 0x121   :  { %1010 = vmatmul.bf16.gmra.mxu1 %v987_v48 }
 0x16e   :  { %v821_v42 = vpop.f32.mrf.mxu1 }
 0x16f   :  { %v822_v43 = vadd.f32 %v821_v42, %v140_v41 }
 0x171   :  { %v830_v44 = vmul.f32 1.442695, %v822_v43 }
 0x173   :  { %4247 = vpow2.f32 %v830_v44 }
 0x176   :  { %v823_v47 = vpop.f32.mrf.mxu1 }
 0x177   :  { %v824_v48 = vadd.f32 %v823_v47, %v141_v46 }
 0x179   :  { %v4696_v49 = vpop.eup %4247  ;;  %v832_v50 = vmul.f32 1.442695, %v824_v48 }
 0x17a   :  { %v837_v51 = vsel %vm836_vm1, %v4696_v49, 0.0 }
 0x17b   :  { %4249 = vpow2.f32 %v832_v50  ;;  %838 = vadd.xlane.f32.xlu2 %v837_v51 }
 0x17e   :  { %v826_v1 = vpop.f32.mrf.mxu1 }
 0x17f   :  { %v827_v52 = vadd.f32 %v826_v1, %v142_v39 }
 0x181   :  { %v4700_v53 = vpop.eup %4249  ;;  %v834_v54 = vmul.f32 1.442695, %v827_v52 }
 0x182   :  { %v840_v37 = vsel %vm836_vm1, %v4700_v53, 0.0 }
 0x183   :  { %4251 = vpow2.f32 %v834_v54  ;;  %841 = vadd.xlane.f32.xlu2 %v840_v37  ;;  %v768_v30 = vpop.f32.mrf.mxu0 }
 0x184   :  { %v769_v35 = vadd.f32 %v4232_v27, %v768_v30 }
 0x186   :  { %v828_v45 = vpop.f32.mrf.mxu1  ;;  %v781_v40 = vpack.c.bf16 %v769_v35, %v769_v35 }
 0x188   :  { %v1041_v44 = vunpack.c.l.b16 %v781_v40 }
 0x189   :  { %v4704_v55 = vpop.eup %4251  ;;  %v773_v20 = vpop.f32.mrf.mxu3 }
 0x18a   :  { %v844_v56 = vsel %vm843_vm2, %v4704_v55, 0.0  ;;  %v774_v29 = vadd.f32 %v4232_v27, %v773_v20 }
 0x18b   :  { %845 = vadd.xlane.f32.xlu2 %v844_v56  ;;  %v770_v42 = vpop.f32.mrf.mxu0 }
 0x18c   :  { %v881_v57 = vpop.f32.mrf.mxu2  ;;  %v791_v31 = vpack.c.bf16 %v774_v29, %v774_v29  ;;  %v771_v43 = vadd.f32 %v4232_v27, %v770_v42 }
 0x18d   :  { %v882_v33 = vadd.f32 %v881_v57, %v140_v41 }
 0x18e   :  { %v1006_v58 = vpop.f32.mrf.mxu1  ;;  %v1043_v36 = vunpack.c.l.b16 %v791_v31 }
 0x18f   :  { %v1007_v59 = vadd.f32 %v1006_v58, %v140_v41  ;;  %v890_v60 = vmul.f32 1.442695, %v882_v33 }
 0x190   :  { %v1045_v41 = vpack.c.b16 %v1043_v36, %v1043_v36 }
 0x191   :  { %v1015_v62 = vmul.f32 1.442695, %v1007_v59  ;;  %4253 = vpow2.f32 %v890_v60  ;;  %v775_v34 = vpop.f32.mrf.mxu3 }
 0x192   :  { %v1054_v47 = vsel %vm928_vm0, %v1045_v41, 0 }
 0x193   :  { %4255 = vpow2.f32 %v1015_v62  ;;  %1062 = vmatpush.bf16.msrb.mxu2 %v1054_v47 }
 0x194   :  { %v883_v63 = vpop.f32.mrf.mxu2 }
 0x195   :  { %v884_v0 = vadd.f32 %v883_v63, %v141_v46 }
 0x196   :  { %v1008_v2 = vpop.f32.mrf.mxu1 }
 0x197   :  { %v1009_v3 = vadd.f32 %v1008_v2, %v141_v46  ;;  %v4708_v4 = vpop.eup %4253  ;;  %v892_v5 = vmul.f32 1.442695, %v884_v0  ;;  %v786_v46 = vpack.c.bf16 %v771_v43, %v771_v43 }
 0x198   :  { %v896_v8 = vsel %vm836_vm1, %v4708_v4, 0.0 }
 0x199   :  { %v4710_v6 = vpop.eup %4255  ;;  %v1017_v7 = vmul.f32 1.442695, %v1009_v3  ;;  %4257 = vpow2.f32 %v892_v5  ;;  %897 = vadd.xlane.f32.xlu0 %v896_v8  ;;  %v1042_v48 = vunpack.c.l.b16 %v786_v46 }
 0x19a   :  { %v1021_v9 = vsel %vm836_vm1, %v4710_v6, 0.0 }
 0x19b   :  { %4259 = vpow2.f32 %v1017_v7  ;;  %1022 = vadd.xlane.f32.xlu1 %v1021_v9  ;;  %v1044_v51 = vpack.c.b16 %v1042_v48, %v1041_v44 }
 0x19c   :  { %v886_v10 = vpop.f32.mrf.mxu2 }
 0x19d   :  { %v887_v11 = vadd.f32 %v886_v10, %v142_v39  ;;  %1063 = vmatpush.bf16.msrb.mxu2 %v1044_v51  ;;  %v4079_v51 = vld [vmem:[#allocation10 + $0x74] sm:$0xf0] }
 0x19e   :  { %v1011_v12 = vpop.f32.mrf.mxu1 }
 0x19f   :  { %v1012_v13 = vadd.f32 %v1011_v12, %v142_v39  ;;  %v4716_v14 = vpop.eup %4257  ;;  %v894_v15 = vmul.f32 1.442695, %v887_v11 }
 0x1a0   :  { %v899_v21 = vsel %vm836_vm1, %v4716_v14, 0.0 }
 0x1a1   :  { %v4718_v16 = vpop.eup %4259  ;;  %v1019_v17 = vmul.f32 1.442695, %v1012_v13  ;;  %4261 = vpow2.f32 %v894_v15  ;;  %900 = vadd.xlane.f32.xlu0 %v899_v21 }
 0x1a2   :  { %v1024_v22 = vsel %vm836_vm1, %v4718_v16, 0.0 }
 0x1a3   :  { %4263 = vpow2.f32 %v1019_v17  ;;  %1025 = vadd.xlane.f32.xlu1 %v1024_v22 }
 0x1a4   :  { %v888_v23 = vpop.f32.mrf.mxu2 }
 0x1a6   :  { %v1013_v18 = vpop.f32.mrf.mxu1 }
 0x1a7   :  { %v4724_v19 = vpop.eup %4261 }
 0x1a8   :  { %v902_v25 = vsel %vm843_vm2, %v4724_v19, 0.0 }
 0x1a9   :  { %v4726_v24 = vpop.eup %4263  ;;  %903 = vadd.xlane.f32.xlu0 %v902_v25  ;;  %v4233_v25 = vld [vmem:[#allocation8 + $0xb] ss:$0 sm:$0xff] }
 0x1aa   :  { %v1027_v26 = vsel %vm843_vm2, %v4726_v24, 0.0 }
 0x1ab   :  { %1028 = vadd.xlane.f32.xlu1 %v1027_v26 }
 0x1ee   :  { %v839_v38 = vpop.xlane.xlu2 %838 }
 0x1ef   :  { %4265 = vrcp.f32 %v839_v38 }
 0x1f5   :  { %v4266_v39 = vpop.eup %4265 }
 0x1f6   :  { %v842_v50 = vpop.xlane.xlu2 %841  ;;  %v850_v52 = vmul.f32 %v4266_v39, %v4696_v49  ;;  %v4078_v39 = vld [vmem:[#allocation10 + $0x74] sm:$0xf] }
 0x1f7   :  { %4267 = vrcp.f32 %v842_v50  ;;  %v3468_v50 = vld [vmem:[#allocation10 + $0x70] sm:$0xf] }
 0x1fd   :  { %v4268_v1 = vpop.eup %4267 }
 0x1fe   :  { %v851_v54 = vmul.f32 %v4268_v1, %v4700_v53  ;;  %v846_v45 = vpop.xlane.xlu2 %845  ;;  %v3469_v1 = vor.u32 %v4079_v51, %v3468_v50 }
 0x1ff   :  { %4269 = vrcp.f32 %v846_v45  ;;  %v4076_v45 = vld [vmem:[#allocation10 + $0x64] sm:$0xf] }
 0x200   :  { %v853_v37 = vpack.c.bf16 %v851_v54, %v850_v52  ;;  %v3470_v52 = vld [vmem:[#allocation10 + $0x78] sm:$0xf0]  ;;  %1274 = vmatpush.bf16.msra.mxu3 %v3469_v1 }
 0x201   :  { %v3473_v54 = vor.u32 %v4078_v39, %v3470_v52 }
 0x202   :  { %3406 = vmatmul.msk.bf16.vlgmr.msrb.gmra.mxu0 %vm836_vm1, %v853_v37  ;;  %v4077_v37 = vld [vmem:[#allocation10 + $0x64] sm:$0xf0] }
 0x203   :  { %1292 = vmatpush.bf16.msra.mxu0 %v3473_v54 }
 0x205   :  { %v4270_v56 = vpop.eup %4269 }
 0x206   :  { %v852_v57 = vmul.f32 %v4270_v56, %v4704_v55 }
 0x208   :  { %v854_v59 = vpack.c.bf16 %v852_v57, %v852_v57  ;;  %v3462_v57 = vld [vmem:[#allocation10 + $0x68] sm:$0xf0] }
 0x20c   :  { %v898_v33 = vpop.xlane.xlu0 %897 }
 0x20d   :  { %4271 = vrcp.f32 %v898_v33  ;;  %v3465_v33 = vor.u32 %v4076_v45, %v3462_v57 }
 0x20e   :  { %v1023_v58 = vpop.xlane.xlu1 %1022 }
 0x20f   :  { %4273 = vrcp.f32 %v1023_v58  ;;  %1293 = vmatpush.bf16.msra.mxu0 %v3465_v33  ;;  %v3452_v58 = vld [vmem:[#allocation10 + $0x50] sm:$0xf] }
 0x212   :  { %3407 = vmatmul.msk.bf16.gmra.mxu0 %vm836_vm1, %v854_v59  ;;  %v4075_v59 = vld [vmem:[#allocation10 + $0x54] sm:$0xf0] }
 0x213   :  { %v4272_v53 = vpop.eup %4271 }
 0x214   :  { %v901_v60 = vpop.xlane.xlu0 %900  ;;  %v908_v2 = vmul.f32 %v4272_v53, %v4708_v4  ;;  %v3454_v53 = vld [vmem:[#allocation10 + $0x58] sm:$0xf0] }
 0x215   :  { %4275 = vrcp.f32 %v901_v60  ;;  %v4274_v62 = vpop.eup %4273  ;;  %v4074_v60 = vld [vmem:[#allocation10 + $0x54] sm:$0xf] }
 0x216   :  { %v1026_v49 = vpop.xlane.xlu1 %1025  ;;  %v1033_v55 = vmul.f32 %v4274_v62, %v4710_v6  ;;  %v3457_v62 = vor.u32 %v4074_v60, %v3454_v53 }
 0x217   :  { %4277 = vrcp.f32 %v1026_v49  ;;  %v3453_v49 = vor.u32 %v4075_v59, %v3452_v58 }
 0x218   :  { %1294 = vmatpush.bf16.msra.mxu0 %v3457_v62  ;;  %v4095_v62 = vld [vmem:[#allocation11 + $0x78] sm:$0xff] }
 0x219   :  { %1470 = vmatpush.bf16.msra.mxu2 %v4095_v62 }
 0x21b   :  { %v4276_v63 = vpop.eup %4275 }
 0x21c   :  { %v909_v3 = vmul.f32 %v4276_v63, %v4716_v14  ;;  %v904_v8 = vpop.xlane.xlu0 %903  ;;  %v3444_v63 = vld [vmem:[#allocation10 + $0x40] sm:$0xf] }
 0x21d   :  { %v4278_v0 = vpop.eup %4277  ;;  %4279 = vrcp.f32 %v904_v8  ;;  %v4071_v8 = vld [vmem:[#allocation10 + $0x34] sm:$0xf0] }
 0x21e   :  { %v1034_v5 = vmul.f32 %v4278_v0, %v4718_v16  ;;  %v911_v7 = vpack.c.bf16 %v909_v3, %v908_v2  ;;  %v1029_v10 = vpop.xlane.xlu1 %1028  ;;  %v4073_v0 = vld [vmem:[#allocation10 + $0x44] sm:$0xf0]  ;;  %v4072_v2 = vld [vmem:[#allocation10 + $0x44] sm:$0xf] }
 0x21f   :  { %4281 = vrcp.f32 %v1029_v10  ;;  %v3445_v3 = vor.u32 %v4073_v0, %v3444_v63  ;;  %v4087_v63 = vld [vmem:[#allocation11 + $0x38] sm:$0xff] }
 0x220   :  { %v1036_v9 = vpack.c.bf16 %v1034_v5, %v1033_v55  ;;  %3404 = vmatmul.msk.bf16.vlgmr.msrb.gmra.mxu3 %vm836_vm1, %v911_v7  ;;  %v3446_v55 = vld [vmem:[#allocation10 + $0x48] sm:$0xf0]  ;;  %v3436_v7 = vld [vmem:[#allocation10 + $0x30] sm:$0xf]  ;;  %1452 = vmatpush.bf16.msra.mxu1 %v4087_v63 }
 0x221   :  { %v3449_v5 = vor.u32 %v4072_v2, %v3446_v55  ;;  %v3437_v10 = vor.u32 %v4071_v8, %v3436_v7  ;;  %v4094_v55 = vld [vmem:[#allocation11 + $0x70] sm:$0xff] }
 0x222   :  { %3408 = vmatmul.msk.bf16.vlgmr.msrb.gmra.mxu2 %vm836_vm1, %v1036_v9  ;;  %v4070_v9 = vld [vmem:[#allocation10 + $0x34] sm:$0xf] }
 0x223   :  { %v4280_v11 = vpop.eup %4279  ;;  %1295 = vmatpush.bf16.msra.mxu0 %v3449_v5  ;;  %v4086_v5 = vld [vmem:[#allocation11 + $0x30] sm:$0xff]  ;;  %1471 = vmatpush.bf16.msra.mxu2 %v4094_v55 }
 0x224   :  { %v910_v4 = vmul.f32 %v4280_v11, %v4724_v19  ;;  %v3438_v11 = vld [vmem:[#allocation10 + $0x38] sm:$0xf0]  ;;  %1453 = vmatpush.bf16.msra.mxu1 %v4086_v5 }
 0x225   :  { %v4282_v12 = vpop.eup %4281 }
 0x226   :  { %v1035_v13 = vmul.f32 %v4282_v12, %v4726_v24  ;;  %v912_v14 = vpack.c.bf16 %v910_v4, %v910_v4  ;;  %v3441_v12 = vor.u32 %v4070_v9, %v3438_v11  ;;  %v3428_v4 = vld [vmem:[#allocation10 + $0x20] sm:$0xf]  ;;  %v4234_v9 = vld [vmem:[#allocation8 + $0xd] ss:$0 sm:$0xff] }
 0x228   :  { %v1037_v6 = vpack.c.bf16 %v1035_v13, %v1035_v13  ;;  %1296 = vmatpush.bf16.msra.mxu0 %v3441_v12  ;;  %v4069_v13 = vld [vmem:[#allocation10 + $0x24] sm:$0xf0] }
 0x230   :  { %3405 = vmatmul.msk.bf16.gmra.mxu3 %vm836_vm1, %v912_v14  ;;  %v4068_v14 = vld [vmem:[#allocation10 + $0x24] sm:$0xf] }
 0x232   :  { %3409 = vmatmul.msk.bf16.gmra.mxu2 %vm836_vm1, %v1037_v6  ;;  %v3429_v6 = vor.u32 %v4069_v13, %v3428_v4  ;;  %v4093_v13 = vld [vmem:[#allocation11 + $0x68] sm:$0xff] }
 0x233   :  { %1472 = vmatpush.bf16.msra.mxu2 %v4093_v13 }
 0x27f   :  { %v974_v15 = vpop.f32.mrf.mxu0 }
 0x287   :  { %v976_v16 = vpop.f32.mrf.mxu0 }
 0x28f   :  { %v979_v17 = vpop.f32.mrf.mxu0 }
 0x297   :  { %v981_v21 = vpop.f32.mrf.mxu0 }
 0x2a3   :  { %v941_v22 = vpop.f32.mrf.mxu3 }
 0x2a4   :  { %v975_v23 = vadd.f32 %v974_v15, %v941_v22  ;;  %v3430_v15 = vld [vmem:[#allocation10 + $0x28] sm:$0xf0] }
 0x2a5   :  { %v1065_v18 = vpop.f32.mrf.mxu2 }
 0x2a6   :  { %v1074_v26 = vadd.f32 %v1065_v18, %v975_v23  ;;  %v3420_v23 = vld [vmem:[#allocation10 + $0x10] sm:$0xf]  ;;  %v4067_v18 = vld [vmem:[#allocation10 + $0x14] sm:$0xf0] }
 0x2a8   :  { %v1081_v27 = vadd.f32 %v4233_v25, %v1074_v26 }
 0x2aa   :  { %v4749_v19 = vadd.f32 %v1081_v27, %v4640_v28 }
 0x2ab   :  { %v943_v24 = vpop.f32.mrf.mxu3 }
 0x2ac   :  { %v977_v20 = vadd.f32 %v976_v16, %v943_v24  ;;  %1089 = vadd.xlane.f32.xlu0 %v4749_v19  ;;  %v1097_v30 = vmul.f32 %v4749_v19, %v4749_v19  ;;  %v3421_v24 = vor.u32 %v4067_v18, %v3420_v23  ;;  %v4092_v23 = vld [vmem:[#allocation11 + $0x60] sm:$0xff] }
 0x2ad   :  { %v1067_v29 = vpop.f32.mrf.mxu2  ;;  %1473 = vmatpush.bf16.msra.mxu2 %v4092_v23 }
 0x2ae   :  { %v1075_v31 = vadd.f32 %v1067_v29, %v977_v20  ;;  %1100 = vadd.xlane.f32.xlu2 %v1097_v30  ;;  %v3422_v20 = vld [vmem:[#allocation10 + $0x18] sm:$0xf0] }
 0x2b0   :  { %v1082_v34 = vadd.f32 %v4233_v25, %v1075_v31  ;;  %v3412_v31 = vld [vmem:[#allocation10] sm:$0xf] }
 0x2b2   :  { %v4755_v35 = vadd.f32 %v1082_v34, %v4642_v32  ;;  %v4065_v34 = vld [vmem:[#allocation10 + $0x4] sm:$0xf0] }
 0x2b3   :  { %v946_v36 = vpop.f32.mrf.mxu3 }
 0x2b4   :  { %v980_v38 = vadd.f32 %v979_v17, %v946_v36  ;;  %1091 = vadd.xlane.f32.xlu1 %v4755_v35  ;;  %v1098_v28 = vmul.f32 %v4755_v35, %v4755_v35  ;;  %v3433_v17 = vor.u32 %v4068_v14, %v3430_v15  ;;  %v4064_v36 = vld [vmem:[#allocation10 + $0x4] sm:$0xf]  ;;  %v4085_v14 = vld [vmem:[#allocation11 + $0x28] sm:$0xff] }
 0x2b5   :  { %v1070_v40 = vpop.f32.mrf.mxu2  ;;  %1454 = vmatpush.bf16.msra.mxu1 %v4085_v14 }
 0x2b6   :  { %v1076_v41 = vadd.f32 %v1070_v40, %v980_v38  ;;  %1102 = vadd.xlane.f32.xlu0 %v1098_v28  ;;  %1297 = vmatpush.bf16.msra.mxu0 %v3433_v17  ;;  %v3413_v40 = vor.u32 %v4065_v34, %v3412_v31  ;;  %v3414_v28 = vld [vmem:[#allocation10 + $0x8] sm:$0xf0]  ;;  %v4235_v17 = vld [vmem:[#allocation8 + $0xe] ss:$0 sm:$0xff] }
 0x2b8   :  { %v1083_v42 = vadd.f32 %v4233_v25, %v1076_v41  ;;  %v4066_v25 = vld [vmem:[#allocation10 + $0x14] sm:$0xf] }
 0x2b9   :  { %v3425_v29 = vor.u32 %v4066_v25, %v3422_v20 }
 0x2ba   :  { %v4761_v43 = vadd.f32 %v1083_v42, %v4652_v61  ;;  %v3460_v61 = vld [vmem:[#allocation10 + $0x60] sm:$0xf]  ;;  %v3417_v42 = vor.u32 %v4064_v36, %v3414_v28  ;;  %v4091_v36 = vld [vmem:[#allocation11 + $0x58] sm:$0xff] }
 0x2bb   :  { %v948_v44 = vpop.f32.mrf.mxu3  ;;  %v3461_v56 = vor.u32 %v4077_v37, %v3460_v61  ;;  %1298 = vmatpush.bf16.msra.mxu0 %v3425_v29  ;;  %1474 = vmatpush.bf16.msra.mxu2 %v4091_v36  ;;  %v4083_v28 = vld [vmem:[#allocation11 + $0x18] sm:$0xff] }
 0x2bc   :  { %v1094_v32 = vsel %vm1093_vm3, %v4761_v43, 0.0  ;;  %v1099_v47 = vmul.f32 %v4761_v43, %v4761_v43  ;;  %v3794_v36 = vld [vmem:[#allocation7 + $0x45c] sm:$0xf0] }
 0x2bd   :  { %v1072_v46 = vpop.f32.mrf.mxu2  ;;  %1095 = vadd.xlane.f32.xlu1 %v1094_v32  ;;  %1275 = vmatpush.bf16.msra.mxu3 %v3461_v56 }
 0x2be   :  { %v1104_v48 = vsel %vm1093_vm3, %v1099_v47, 0.0 }
 0x2bf   :  { %1105 = vadd.xlane.f32.xlu2 %v1104_v48  ;;  %1299 = vmatpush.bf16.msra.mxu0 %v3417_v42  ;;  %v4088_v42 = vld [vmem:[#allocation11 + $0x40] sm:$0xff] }
 0x2c1   :  { %1276 = vmatpush.bf16.msra.mxu3 %v3453_v49 }
 0x2c5   :  { %1277 = vmatpush.bf16.msra.mxu3 %v3445_v3 }
 0x2c9   :  { %1278 = vmatpush.bf16.msra.mxu3 %v3437_v10 }
 0x2cd   :  { %1279 = vmatpush.bf16.msra.mxu3 %v3429_v6 }
 0x2d1   :  { %1280 = vmatpush.bf16.msra.mxu3 %v3421_v24 }
 0x2d5   :  { %1281 = vmatpush.bf16.msra.mxu3 %v3413_v40  ;;  %v4090_v40 = vld [vmem:[#allocation11 + $0x50] sm:$0xff] }
 0x2d6   :  { %1475 = vmatpush.bf16.msra.mxu2 %v4090_v40 }
 0x31f   :  { %v1090_v16 = vpop.xlane.xlu0 %1089 }
 0x320   :  { %v4768_v21 = vmul.f32 0.02, %v1090_v16 }
 0x321   :  { %v1101_v22 = vpop.xlane.xlu2 %1100 }
 0x322   :  { %v1113_v26 = vmul.f32 %v4768_v21, %v4768_v21  ;;  %v1110_v27 = vmul.f32 0.02, %v1101_v22  ;;  %v1119_v3 = vsub.f32 %v4749_v19, %v4768_v21 }
 0x324   :  { %v1116_v30 = vsub.f32 %v1110_v27, %v1113_v26 }
 0x326   :  { %v1122_v38 = vadd.f32 1e-05, %v1116_v30 }
 0x327   :  { %v1092_v41 = vpop.xlane.xlu1 %1091 }
 0x328   :  { %4283 = vrsqrt.f32 %v1122_v38  ;;  %v1108_v44 = vmul.f32 0.02, %v1092_v41  ;;  %vm1131_vm5 = vweird.f32 %v1122_v38  ;;  %v4082_v41 = vld [vmem:[#allocation11 + $0x10] sm:$0xff] }
 0x329   :  { %v1103_v46 = vpop.xlane.xlu0 %1102 }
 0x32a   :  { %v1114_v32 = vmul.f32 %v1108_v44, %v1108_v44  ;;  %v1111_v47 = vmul.f32 0.02, %v1103_v46  ;;  %v1120_v12 = vsub.f32 %v4755_v35, %v1108_v44  ;;  %v4081_v44 = vld [vmem:[#allocation11 + $0x8] sm:$0xff]  ;;  %v4080_v46 = vld [vmem:[#allocation11] sm:$0xff] }
 0x32c   :  { %v1117_v48 = vsub.f32 %v1111_v47, %v1114_v32  ;;  %v1188_v32 = vld [vmem:[#allocation8 + $0x9] sm:$0x3] }
 0x32e   :  { %v4284_v50 = vpop.eup %4283  ;;  %v1123_v51 = vadd.f32 1e-05, %v1117_v48  ;;  %v1191_v48 = vperm.slane %v1188_v32, 1 }
 0x32f   :  { %v1126_v39 = vmul.f32 %v4284_v50, %v1122_v38  ;;  %vm1132_vm4 = vweird.f32 %v4284_v50  ;;  %v4084_v38 = vld [vmem:[#allocation11 + $0x20] sm:$0xff] }
 0x330   :  { %4285 = vrsqrt.f32 %v1123_v51  ;;  %v1096_v1 = vpop.xlane.xlu1 %1095  ;;  %vm1133_vm6 = vmor %vm1131_vm5, %vm1132_vm4  ;;  %vm1141_vm8 = vweird.f32 %v1123_v51  ;;  %1455 = vmatpush.bf16.msra.mxu1 %v4084_v38  ;;  %v3800_v38 = vld [vmem:[#allocation7 + $0x440] sm:$0xf] }
 0x331   :  { %v1127_v52 = vmul.f32 %v4284_v50, %v1126_v39  ;;  %v4772_v54 = vmul.f32 0.02, %v1096_v1  ;;  %v1190_v1 = vperm.slane %v1188_v32, 0  ;;  %v4150_v32 = vld [vmem:[#allocation7 + $0x3f4] sm:$0xf] }
 0x332   :  { %v1106_v61 = vpop.xlane.xlu2 %1105 }
 0x333   :  { %v1128_v37 = vmul.f32 0.5, %v1127_v52  ;;  %v1115_v45 = vmul.f32 %v4772_v54, %v4772_v54  ;;  %v1112_v56 = vmul.f32 0.02, %v1106_v61  ;;  %v1121_v24 = vsub.f32 %v4761_v43, %v4772_v54  ;;  %v4089_v43 = vld [vmem:[#allocation11 + $0x48] sm:$0xff] }
 0x334   :  { %1456 = vmatpush.bf16.msra.mxu1 %v4083_v28  ;;  %1476 = vmatpush.bf16.msra.mxu2 %v4089_v43  ;;  %v4160_v43 = vld [vmem:[#allocation7 + $0x444] sm:$0xf] }
 0x335   :  { %v1129_v57 = vsub.f32 1.5, %v1128_v37  ;;  %v1118_v33 = vsub.f32 %v1112_v56, %v1115_v45 }
 0x336   :  { %v4286_v58 = vpop.eup %4285 }
 0x337   :  { %v1130_v59 = vmul.f32 %v4284_v50, %v1129_v57  ;;  %v1136_v60 = vmul.f32 %v4286_v58, %v1123_v51  ;;  %v1124_v49 = vadd.f32 1e-05, %v1118_v33  ;;  %vm1142_vm7 = vweird.f32 %v4286_v58 }
 0x338   :  { %vm1143_vm9 = vmor %vm1141_vm8, %vm1142_vm7  ;;  %1457 = vmatpush.bf16.msra.mxu1 %v4082_v41  ;;  %1477 = vmatpush.bf16.msra.mxu2 %v4088_v42  ;;  %v3802_v41 = vld [vmem:[#allocation7 + $0x464] sm:$0xf0] }
 0x339   :  { %v1137_v53 = vmul.f32 %v4286_v58, %v1136_v60  ;;  %4287 = vrsqrt.f32 %v1124_v49  ;;  %v1134_v0 = vsel %vm1133_vm6, %v4284_v50, %v1130_v59  ;;  %vm1151_vm11 = vweird.f32 %v1124_v49 }
 0x33a   :  { %v1155_v8 = vmul.f32 %v1134_v0, %v1119_v3  ;;  %v3805_v42 = vor.u32 %v4160_v43, %v3802_v41  ;;  %v4115_v43 = vld [vmem:[#allocation7 + $0x2dc] sm:$0xf]  ;;  %v3622_v41 = vld [vmem:[#allocation7 + $0x2fc] sm:$0xf0] }
 0x33b   :  { %v1138_v2 = vmul.f32 0.5, %v1137_v53 }
 0x33c   :  { %v1161_v16 = vmul.f32 %v4234_v9, %v1155_v8  ;;  %1458 = vmatpush.bf16.msra.mxu1 %v4081_v44  ;;  %v3756_v44 = vld [vmem:[#allocation7 + $0x3f0] sm:$0xf]  ;;  %2101 = vmatpush.bf16.msrb.mxu2 %v3805_v42 }
 0x33d   :  { %v1139_v7 = vsub.f32 1.5, %v1138_v2 }
 0x33e   :  { %v4779_v25 = vadd.f32 %v4235_v17, %v1161_v16 }
 0x33f   :  { %v4288_v10 = vpop.eup %4287  ;;  %v1140_v11 = vmul.f32 %v4286_v58, %v1139_v7  ;;  %v4236_v7 = vld [vmem:[#allocation8 + $0xc] ss:$0 sm:$0xff] }
 0x340   :  { %v1146_v4 = vmul.f32 %v4288_v10, %v1124_v49  ;;  %vm1152_vm10 = vweird.f32 %v4288_v10  ;;  %1459 = vmatpush.bf16.msra.mxu1 %v4080_v46  ;;  %v4154_v46 = vld [vmem:[#allocation7 + $0x410] sm:$0xf0] }
 0x341   :  { %v1144_v19 = vsel %vm1143_vm9, %v4286_v58, %v1140_v11  ;;  %vm1153_vm12 = vmor %vm1151_vm11, %vm1152_vm10 }
 0x342   :  { %v1156_v6 = vmul.f32 %v1144_v19, %v1120_v12  ;;  %v1147_v15 = vmul.f32 %v4288_v10, %v1146_v4 }
 0x344   :  { %v1148_v21 = vmul.f32 0.5, %v1147_v15  ;;  %v1162_v22 = vmul.f32 %v4234_v9, %v1156_v6 }
 0x346   :  { %v1149_v18 = vsub.f32 1.5, %v1148_v21  ;;  %v4781_v35 = vadd.f32 %v4235_v17, %v1162_v22 }
 0x348   :  { %v1150_v26 = vmul.f32 %v4288_v10, %v1149_v18  ;;  %v1170_v27 = vpack.c.bf16 %v4781_v35, %v4779_v25 }
 0x34a   :  { %1282 = vmatmul.bf16.vlgmr.msra.gmra.mxu3 %v1170_v27  ;;  %1300 = vmatmul.bf16.vlgmr.msra.gmra.mxu0 %v1170_v27  ;;  %v1154_v20 = vsel %vm1153_vm12, %v4288_v10, %v1150_v26 }
 0x34b   :  { %v1157_v29 = vmul.f32 %v1154_v20, %v1121_v24  ;;  %v3792_v20 = vld [vmem:[#allocation7 + $0x438] sm:$0xf] }
 0x34d   :  { %v1163_v30 = vmul.f32 %v4234_v9, %v1157_v29  ;;  %v4163_v29 = vld [vmem:[#allocation7 + $0x458] sm:$0xf0] }
 0x34f   :  { %v4787_v31 = vadd.f32 %v4235_v17, %v1163_v30  ;;  %v4159_v30 = vld [vmem:[#allocation7 + $0x43c] sm:$0xf] }
 0x350   :  { %v3797_v40 = vor.u32 %v4159_v30, %v3794_v36  ;;  %v3620_v36 = vld [vmem:[#allocation7 + $0x2d8] sm:$0xf] }
 0x351   :  { %v1171_v34 = vpack.c.bf16 %v4787_v31, %v4787_v31 }
 0x352   :  { %2065 = vmatpush.bf16.msrb.mxu0 %v3797_v40 }
 0x35a   :  { %1287 = vmatmul.bf16.gmra.mxu3 %v1171_v34  ;;  %1305 = vmatmul.bf16.gmra.mxu0 %v1171_v34  ;;  %v3793_v34 = vor.u32 %v4163_v29, %v3792_v20  ;;  %v4118_v20 = vld [vmem:[#allocation7 + $0x2f0] sm:$0xf0] }
 0x35b   :  { %v4114_v29 = vld [vmem:[#allocation7 + $0x2d4] sm:$0xf] }
 0x35c   :  { %2047 = vmatpush.bf16.msrb.mxu3 %v3793_v34  ;;  %v3614_v34 = vld [vmem:[#allocation7 + $0x2f4] sm:$0xf0] }
 0x35d   :  { %v3617_v40 = vor.u32 %v4114_v29, %v3614_v34  ;;  %v4152_v29 = vld [vmem:[#allocation7 + $0x404] sm:$0xf] }
 0x3c7   :  { %v1301_v47 = vpop.f32.mrf.mxu0 }
 0x3c8   :  { %v1302_v51 = vadd.f32 %v1301_v47, %v1191_v48  ;;  %v3757_v47 = vor.u32 %v4154_v46, %v3756_v44  ;;  %v3625_v44 = vor.u32 %v4115_v43, %v3622_v41  ;;  %v4157_v43 = vld [vmem:[#allocation7 + $0x428] sm:$0xf0] }
 0x3c9   :  { %v4153_v41 = vld [vmem:[#allocation7 + $0x40c] sm:$0xf] }
 0x3ca   :  { %v1311_v54 = vmax.f32 %v1302_v51, 0.0  ;;  %v4155_v51 = vld [vmem:[#allocation7 + $0x418] sm:$0xf0]  ;;  %2048 = vmatpush.bf16.msrb.mxu3 %v3757_v47  ;;  %v4109_v47 = vld [vmem:[#allocation7 + $0x2a8] sm:$0xf0] }
 0x3cd   :  { %v1283_v50 = vpop.f32.mrf.mxu3 }
 0x3ce   :  { %v1284_v37 = vadd.f32 %v1283_v50, %v1190_v1  ;;  %v3764_v50 = vld [vmem:[#allocation7 + $0x3f8] sm:$0xf] }
 0x3cf   :  { %v1303_v39 = vpop.f32.mrf.mxu0 }
 0x3d0   :  { %v1304_v52 = vadd.f32 %v1303_v39, %v1191_v48  ;;  %v1310_v58 = vmax.f32 %v1284_v37, 0.0  ;;  %v3720_v37 = vld [vmem:[#allocation7 + $0x3a8] sm:$0xf] }
 0x3d2   :  { %v1313_v61 = vmax.f32 %v1304_v52, 0.0  ;;  %v4151_v52 = vld [vmem:[#allocation7 + $0x3fc] sm:$0xf] }
 0x3d4   :  { %v1317_v45 = vpack.c.bf16 %v1313_v61, %v1311_v54  ;;  %v3766_v54 = vld [vmem:[#allocation7 + $0x41c] sm:$0xf0] }
 0x3d5   :  { %v1285_v56 = vpop.f32.mrf.mxu3  ;;  %v3769_v61 = vor.u32 %v4151_v52, %v3766_v54  ;;  %v3584_v52 = vld [vmem:[#allocation7 + $0x290] sm:$0xf] }
 0x3d6   :  { %v1286_v57 = vadd.f32 %v1285_v56, %v1190_v1  ;;  %1478 = vmatmul.bf16.vlgmr.msra.gmra.mxu2 %v1317_v45  ;;  %v4145_v45 = vld [vmem:[#allocation7 + $0x3c8] sm:$0xf0] }
 0x3d7   :  { %v1306_v33 = vpop.f32.mrf.mxu0  ;;  %v4141_v56 = vld [vmem:[#allocation7 + $0x3ac] sm:$0xf]  ;;  %2102 = vmatpush.bf16.msrb.mxu2 %v3769_v61  ;;  %v4110_v61 = vld [vmem:[#allocation7 + $0x2b0] sm:$0xf0] }
 0x3d8   :  { %v1312_v59 = vmax.f32 %v1286_v57, 0.0  ;;  %v1307_v49 = vadd.f32 %v1306_v33, %v1191_v48  ;;  %v3758_v48 = vld [vmem:[#allocation7 + $0x414] sm:$0xf0]  ;;  %v3721_v57 = vor.u32 %v4145_v45, %v3720_v37  ;;  %v3722_v33 = vld [vmem:[#allocation7 + $0x3cc] sm:$0xf0] }
 0x3d9   :  { %v3761_v39 = vor.u32 %v4150_v32, %v3758_v48  ;;  %v3576_v32 = vld [vmem:[#allocation7 + $0x288] sm:$0xf]  ;;  %v4105_v48 = vld [vmem:[#allocation7 + $0x28c] sm:$0xf]  ;;  %v4106_v37 = vld [vmem:[#allocation7 + $0x294] sm:$0xf] }
 0x3da   :  { %v1316_v60 = vpack.c.bf16 %v1312_v59, %v1310_v58  ;;  %v1315_v63 = vmax.f32 %v1307_v49, 0.0  ;;  %v3728_v58 = vld [vmem:[#allocation7 + $0x3b0] sm:$0xf]  ;;  %v4146_v59 = vld [vmem:[#allocation7 + $0x3d0] sm:$0xf0]  ;;  %2049 = vmatpush.bf16.msrb.mxu3 %v3721_v57  ;;  %v3585_v57 = vor.u32 %v4110_v61, %v3584_v52 }
 0x3db   :  { %2066 = vmatpush.bf16.msrb.mxu0 %v3761_v39  ;;  %v3729_v49 = vor.u32 %v4146_v59, %v3728_v58  ;;  %v3577_v39 = vor.u32 %v4109_v47, %v3576_v32  ;;  %v3586_v45 = vld [vmem:[#allocation7 + $0x2b4] sm:$0xf0]  ;;  %v3540_v58 = vld [vmem:[#allocation7 + $0x240] sm:$0xf]  ;;  %v4100_v59 = vld [vmem:[#allocation7 + $0x260] sm:$0xf0] }
 0x3dc   :  { %1460 = vmatmul.bf16.vlgmr.msra.gmra.mxu1 %v1316_v60  ;;  %v1319_v2 = vpack.c.bf16 %v1315_v63, %v1315_v63  ;;  %v3725_v60 = vor.u32 %v4141_v56, %v3722_v33  ;;  %v3589_v33 = vor.u32 %v4106_v37, %v3586_v45  ;;  %v3738_v61 = vld [vmem:[#allocation7 + $0x3dc] sm:$0xf0] }
 0x3dd   :  { %v1288_v53 = vpop.f32.mrf.mxu3  ;;  %v3744_v37 = vld [vmem:[#allocation7 + $0x3c0] sm:$0xf] }
 0x3de   :  { %v1289_v0 = vadd.f32 %v1288_v53, %v1190_v1  ;;  %v3765_v1 = vor.u32 %v4155_v51, %v3764_v50  ;;  %v4142_v53 = vld [vmem:[#allocation7 + $0x3b4] sm:$0xf] }
 0x3df   :  { %v1308_v62 = vpop.f32.mrf.mxu0  ;;  %2067 = vmatpush.bf16.msrb.mxu0 %v3725_v60  ;;  %v4096_v60 = vld [vmem:[#allocation7 + $0x244] sm:$0xf] }
 0x3e0   :  { %v1314_v55 = vmax.f32 %v1289_v0, 0.0  ;;  %v3730_v62 = vld [vmem:[#allocation7 + $0x3d4] sm:$0xf0]  ;;  %v3684_v0 = vld [vmem:[#allocation7 + $0x360] sm:$0xf] }
 0x3e1   :  { %v3733_v63 = vor.u32 %v4142_v53, %v3730_v62  ;;  %v3541_v53 = vor.u32 %v4100_v59, %v3540_v58  ;;  %v3542_v62 = vld [vmem:[#allocation7 + $0x264] sm:$0xf0] }
 0x3e2   :  { %v1318_v5 = vpack.c.bf16 %v1314_v55, %v1314_v55 }
 0x3e3   :  { %2103 = vmatpush.bf16.msrb.mxu2 %v3733_v63  ;;  %v3548_v63 = vld [vmem:[#allocation7 + $0x248] sm:$0xf] }
 0x3e5   :  { %v1290_v3 = vpop.f32.mrf.mxu3 }
 0x3e6   :  { %1483 = vmatmul.bf16.gmra.mxu2 %v1319_v2  ;;  %v4136_v2 = vld [vmem:[#allocation7 + $0x380] sm:$0xf0] }
 0x3e7   :  { %v4132_v3 = vld [vmem:[#allocation7 + $0x364] sm:$0xf]  ;;  %v3685_v55 = vor.u32 %v4136_v2, %v3684_v0  ;;  %v3545_v2 = vor.u32 %v4096_v60, %v3542_v62  ;;  %v3700_v62 = vld [vmem:[#allocation7 + $0x370] sm:$0xf] }
 0x3e8   :  { %v4144_v60 = vld [vmem:[#allocation7 + $0x3c4] sm:$0xf] }
 0x3e9   :  { %2050 = vmatpush.bf16.msrb.mxu3 %v3685_v55  ;;  %v4097_v55 = vld [vmem:[#allocation7 + $0x24c] sm:$0xf] }
 0x3ec   :  { %1465 = vmatmul.bf16.gmra.mxu1 %v1318_v5  ;;  %v3686_v5 = vld [vmem:[#allocation7 + $0x384] sm:$0xf0] }
 0x459   :  { %v1461_v8 = vpop.f32.mrf.mxu1  ;;  %v1479_v9 = vpop.f32.mrf.mxu2 }
 0x45a   :  { %v1462_v10 = vadd.f32 %v4236_v7, %v1461_v8  ;;  %v4137_v8 = vld [vmem:[#allocation7 + $0x388] sm:$0xf0] }
 0x45c   :  { %v1480_v11 = vadd.f32 %v1479_v9, %v1462_v10  ;;  %v3689_v9 = vor.u32 %v4132_v3, %v3686_v5  ;;  %v4101_v3 = vld [vmem:[#allocation7 + $0x268] sm:$0xf0]  ;;  %v3550_v5 = vld [vmem:[#allocation7 + $0x26c] sm:$0xf0] }
 0x45e   :  { %v4792_v12 = vadd.f32 %v1480_v11, %v4779_v25  ;;  %v4133_v11 = vld [vmem:[#allocation7 + $0x36c] sm:$0xf]  ;;  %2068 = vmatpush.bf16.msrb.mxu0 %v3689_v9 }
 0x460   :  { %1493 = vadd.xlane.f32.xlu0 %v4792_v12  ;;  %v1500_v4 = vmul.f32 %v4792_v12, %v4792_v12 }
 0x461   :  { %v1463_v13 = vpop.f32.mrf.mxu1  ;;  %v1481_v14 = vpop.f32.mrf.mxu2 }
 0x462   :  { %v1464_v19 = vadd.f32 %v4236_v7, %v1463_v13  ;;  %1503 = vadd.xlane.f32.xlu2 %v1500_v4  ;;  %v3694_v4 = vld [vmem:[#allocation7 + $0x38c] sm:$0xf0] }
 0x463   :  { %v3697_v13 = vor.u32 %v4133_v11, %v3694_v4  ;;  %v3808_v11 = vld [vmem:[#allocation7 + $0x448] sm:$0xf]  ;;  %v4165_v4 = vld [vmem:[#allocation7 + $0x468] sm:$0xf0] }
 0x464   :  { %v1482_v6 = vadd.f32 %v1481_v14, %v1464_v19  ;;  %v3648_v14 = vld [vmem:[#allocation7 + $0x318] sm:$0xf]  ;;  %v4127_v19 = vld [vmem:[#allocation7 + $0x338] sm:$0xf0] }
 0x465   :  { %2104 = vmatpush.bf16.msrb.mxu2 %v3697_v13  ;;  %v4161_v13 = vld [vmem:[#allocation7 + $0x44c] sm:$0xf] }
 0x466   :  { %v4798_v15 = vadd.f32 %v1482_v6, %v4781_v35  ;;  %v4123_v6 = vld [vmem:[#allocation7 + $0x31c] sm:$0xf] }
 0x468   :  { %1495 = vadd.xlane.f32.xlu1 %v4798_v15  ;;  %v1501_v16 = vmul.f32 %v4798_v15, %v4798_v15 }
 0x469   :  { %v1466_v17 = vpop.f32.mrf.mxu1  ;;  %v1484_v21 = vpop.f32.mrf.mxu2 }
 0x46a   :  { %v1467_v22 = vadd.f32 %v4236_v7, %v1466_v17  ;;  %1505 = vadd.xlane.f32.xlu0 %v1501_v16  ;;  %v3692_v7 = vld [vmem:[#allocation7 + $0x368] sm:$0xf]  ;;  %v3649_v16 = vor.u32 %v4127_v19, %v3648_v14  ;;  %v3650_v17 = vld [vmem:[#allocation7 + $0x33c] sm:$0xf0] }
 0x46b   :  { %v3693_v10 = vor.u32 %v4137_v8, %v3692_v7  ;;  %v3549_v8 = vor.u32 %v4101_v3, %v3548_v63  ;;  %v4138_v3 = vld [vmem:[#allocation7 + $0x390] sm:$0xf0] }
 0x46c   :  { %v1485_v23 = vadd.f32 %v1484_v21, %v1467_v22  ;;  %v3656_v21 = vld [vmem:[#allocation7 + $0x320] sm:$0xf]  ;;  %v4128_v22 = vld [vmem:[#allocation7 + $0x340] sm:$0xf0]  ;;  %2051 = vmatpush.bf16.msrb.mxu3 %v3649_v16  ;;  %v3810_v16 = vld [vmem:[#allocation7 + $0x46c] sm:$0xf0] }
 0x46e   :  { %v4804_v18 = vadd.f32 %v1485_v23, %v4787_v31  ;;  %v4164_v31 = vld [vmem:[#allocation7 + $0x460] sm:$0xf0]  ;;  %v3653_v23 = vor.u32 %v4123_v6, %v3650_v17  ;;  %v3809_v6 = vor.u32 %v4165_v4, %v3808_v11  ;;  %v3816_v17 = vld [vmem:[#allocation7 + $0x450] sm:$0xf]  ;;  %v4139_v11 = vld [vmem:[#allocation7 + $0x398] sm:$0xf0] }
 0x46f   :  { %v3801_v28 = vor.u32 %v4164_v31, %v3800_v38  ;;  %v4119_v38 = vld [vmem:[#allocation7 + $0x2f8] sm:$0xf0] }
 0x470   :  { %v1497_v25 = vsel %vm1093_vm3, %v4804_v18, 0.0  ;;  %v1502_v35 = vmul.f32 %v4804_v18, %v4804_v18  ;;  %2069 = vmatpush.bf16.msrb.mxu0 %v3653_v23  ;;  %v4162_v23 = vld [vmem:[#allocation7 + $0x454] sm:$0xf] }
 0x471   :  { %v1468_v26 = vpop.f32.mrf.mxu1  ;;  %v1486_v27 = vpop.f32.mrf.mxu2  ;;  %1498 = vadd.xlane.f32.xlu1 %v1497_v25  ;;  %2083 = vmatpush.bf16.msrb.mxu1 %v3801_v28  ;;  %v3657_v25 = vor.u32 %v4128_v22, %v3656_v21  ;;  %v3621_v28 = vor.u32 %v4119_v38, %v3620_v36  ;;  %v3813_v21 = vor.u32 %v4161_v13, %v3810_v16  ;;  %v4166_v22 = vld [vmem:[#allocation7 + $0x470] sm:$0xf0]  ;;  %v3774_v38 = vld [vmem:[#allocation7 + $0x424] sm:$0xf0] }
 0x472   :  { %v1507_v24 = vsel %vm1093_vm3, %v1502_v35, 0.0  ;;  %v4124_v35 = vld [vmem:[#allocation7 + $0x324] sm:$0xf]  ;;  %v3658_v26 = vld [vmem:[#allocation7 + $0x344] sm:$0xf0] }
 0x473   :  { %1508 = vadd.xlane.f32.xlu2 %v1507_v24  ;;  %v3661_v27 = vor.u32 %v4124_v35, %v3658_v26  ;;  %v3612_v24 = vld [vmem:[#allocation7 + $0x2d0] sm:$0xf]  ;;  %v3817_v26 = vor.u32 %v4166_v22, %v3816_v17 }
 0x474   :  { %v3613_v30 = vor.u32 %v4118_v20, %v3612_v24  ;;  %2070 = vmatpush.bf16.msrb.mxu0 %v3617_v40  ;;  %v3772_v24 = vld [vmem:[#allocation7 + $0x400] sm:$0xf]  ;;  %v4156_v20 = vld [vmem:[#allocation7 + $0x420] sm:$0xf0] }
 0x475   :  { %2084 = vmatpush.bf16.msrb.mxu1 %v3765_v1  ;;  %2105 = vmatpush.bf16.msrb.mxu2 %v3661_v27  ;;  %v3578_v1 = vld [vmem:[#allocation7 + $0x2ac] sm:$0xf0]  ;;  %v3773_v36 = vor.u32 %v4156_v20, %v3772_v24 }
 0x476   :  { %2052 = vmatpush.bf16.msrb.mxu3 %v3613_v30  ;;  %v3581_v54 = vor.u32 %v4105_v48, %v3578_v1  ;;  %v3666_v24 = vld [vmem:[#allocation7 + $0x34c] sm:$0xf0] }
 0x477   :  { %v3672_v20 = vld [vmem:[#allocation7 + $0x330] sm:$0xf] }
 0x478   :  { %2071 = vmatpush.bf16.msrb.mxu0 %v3581_v54  ;;  %v4143_v54 = vld [vmem:[#allocation7 + $0x3bc] sm:$0xf] }
 0x479   :  { %2085 = vmatpush.bf16.msrb.mxu1 %v3729_v49  ;;  %2106 = vmatpush.bf16.msrb.mxu2 %v3625_v44  ;;  %v3782_v44 = vld [vmem:[#allocation7 + $0x42c] sm:$0xf0]  ;;  %v3741_v58 = vor.u32 %v4143_v54, %v3738_v61 }
 0x47a   :  { %2053 = vmatpush.bf16.msrb.mxu3 %v3577_v39  ;;  %v3785_v47 = vor.u32 %v4153_v41, %v3782_v44  ;;  %v4147_v39 = vld [vmem:[#allocation7 + $0x3d8] sm:$0xf0]  ;;  %v3674_v41 = vld [vmem:[#allocation7 + $0x354] sm:$0xf0]  ;;  %v3628_v44 = vld [vmem:[#allocation7 + $0x2e0] sm:$0xf] }
 0x47b   :  { %v3638_v54 = vld [vmem:[#allocation7 + $0x30c] sm:$0xf0] }
 0x47c   :  { %2072 = vmatpush.bf16.msrb.mxu0 %v3545_v2 }
 0x47d   :  { %2086 = vmatpush.bf16.msrb.mxu1 %v3693_v10  ;;  %2107 = vmatpush.bf16.msrb.mxu2 %v3589_v33  ;;  %v3553_v10 = vor.u32 %v4097_v55, %v3550_v5  ;;  %v4148_v33 = vld [vmem:[#allocation7 + $0x3e0] sm:$0xf0]  ;;  %v4134_v55 = vld [vmem:[#allocation7 + $0x374] sm:$0xf] }
 0x47e   :  { %2054 = vmatpush.bf16.msrb.mxu3 %v3541_v53  ;;  %v3745_v59 = vor.u32 %v4148_v33, %v3744_v37  ;;  %v3746_v53 = vld [vmem:[#allocation7 + $0x3e4] sm:$0xf0]  ;;  %v4111_v33 = vld [vmem:[#allocation7 + $0x2b8] sm:$0xf0] }
 0x47f   :  { %v3749_v2 = vor.u32 %v4144_v60, %v3746_v53 }
 0x480   :  { %2137 = vmatpush.bf16.msra.mxu0 %v3813_v21 }
 0x481   :  { %2087 = vmatpush.bf16.msrb.mxu1 %v3657_v25  ;;  %2108 = vmatpush.bf16.msrb.mxu2 %v3553_v10  ;;  %v3818_v25 = vld [vmem:[#allocation7 + $0x474] sm:$0xf0] }
 0x482   :  { %2119 = vmatpush.bf16.msra.mxu3 %v3809_v6  ;;  %v3821_v27 = vor.u32 %v4162_v23, %v3818_v25  ;;  %v3708_v10 = vld [vmem:[#allocation7 + $0x378] sm:$0xf]  ;;  %v3710_v6 = vld [vmem:[#allocation7 + $0x39c] sm:$0xf0]  ;;  %v3664_v23 = vld [vmem:[#allocation7 + $0x328] sm:$0xf] }
 0x483   :  { %v3709_v21 = vor.u32 %v4139_v11, %v3708_v10  ;;  %v4129_v25 = vld [vmem:[#allocation7 + $0x348] sm:$0xf0]  ;;  %v4238_v10 = vld [vmem:[#allocation8 + $0x10] ss:$0 sm:$0xff] }
 0x485   :  { %2088 = vmatpush.bf16.msrb.mxu1 %v3621_v28  ;;  %2173 = vmatpush.bf16.msra.mxu2 %v3821_v27  ;;  %v3777_v28 = vor.u32 %v4152_v29, %v3774_v38  ;;  %v3665_v27 = vor.u32 %v4129_v25, %v3664_v23  ;;  %v4130_v29 = vld [vmem:[#allocation7 + $0x350] sm:$0xf0]  ;;  %v4857_v38 = vld [vmem:[#allocation8 + $0xf] ss:$0 sm:$0xff] }
 0x486   :  { %2120 = vmatpush.bf16.msra.mxu3 %v3773_v36 }
 0x487   :  { %2138 = vmatpush.bf16.msra.mxu0 %v3777_v28  ;;  %v3673_v28 = vor.u32 %v4130_v29, %v3672_v20 }
 0x489   :  { %2089 = vmatpush.bf16.msrb.mxu1 %v3585_v57  ;;  %2174 = vmatpush.bf16.msra.mxu2 %v3785_v47 }
 0x48b   :  { %2139 = vmatpush.bf16.msra.mxu0 %v3741_v58  ;;  %v4107_v58 = vld [vmem:[#allocation7 + $0x29c] sm:$0xf] }
 0x48d   :  { %2090 = vmatpush.bf16.msrb.mxu1 %v3549_v8  ;;  %v3701_v8 = vor.u32 %v4138_v3, %v3700_v62  ;;  %2175 = vmatpush.bf16.msra.mxu2 %v3749_v2  ;;  %v3594_v62 = vld [vmem:[#allocation7 + $0x2bc] sm:$0xf0] }
 0x491   :  { %2155 = vmatpush.bf16.msra.mxu1 %v3817_v26 }
 0x4d3   :  { %v1494_v31 = vpop.xlane.xlu0 %1493 }
 0x4d4   :  { %v4811_v42 = vmul.f32 0.02, %v1494_v31  ;;  %v3780_v31 = vld [vmem:[#allocation7 + $0x408] sm:$0xf] }
 0x4d5   :  { %v1504_v46 = vpop.xlane.xlu2 %1503  ;;  %v3781_v32 = vor.u32 %v4157_v43, %v3780_v31  ;;  %v4126_v43 = vld [vmem:[#allocation7 + $0x334] sm:$0xf] }
 0x4d6   :  { %v1516_v50 = vmul.f32 %v4811_v42, %v4811_v42  ;;  %v1513_v51 = vmul.f32 0.02, %v1504_v46  ;;  %v1522_v36 = vsub.f32 %v4792_v12, %v4811_v42  ;;  %v3716_v12 = vld [vmem:[#allocation7 + $0x380] sm:$0xf] }
 0x4d7   :  { %2156 = vmatpush.bf16.msra.mxu1 %v3781_v32  ;;  %v4116_v32 = vld [vmem:[#allocation7 + $0x2e4] sm:$0xf] }
 0x4d8   :  { %v1519_v56 = vsub.f32 %v1513_v51, %v1516_v50  ;;  %v3736_v51 = vld [vmem:[#allocation7 + $0x3b8] sm:$0xf] }
 0x4d9   :  { %v3737_v52 = vor.u32 %v4147_v39, %v3736_v51  ;;  %v3630_v51 = vld [vmem:[#allocation7 + $0x304] sm:$0xf0] }
 0x4da   :  { %v4815_v49 = vadd.f32 1e-05, %v1519_v56  ;;  %v3636_v39 = vld [vmem:[#allocation7 + $0x2e8] sm:$0xf] }
 0x4db   :  { %v1496_v0 = vpop.xlane.xlu1 %1495  ;;  %2121 = vmatpush.bf16.msra.mxu3 %v3737_v52  ;;  %2157 = vmatpush.bf16.msra.mxu1 %v3745_v59  ;;  %v4117_v52 = vld [vmem:[#allocation7 + $0x2ec] sm:$0xf] }
 0x4dc   :  { %4289 = vrsqrt.f32 %v4815_v49  ;;  %v4818_v7 = vmul.f32 0.02, %v1496_v0  ;;  %vm1534_vm14 = vweird.f32 %v4815_v49 }
 0x4dd   :  { %v1506_v9 = vpop.xlane.xlu0 %1505 }
 0x4de   :  { %v1517_v14 = vmul.f32 %v4818_v7, %v4818_v7  ;;  %v1514_v19 = vmul.f32 0.02, %v1506_v9  ;;  %v3702_v9 = vld [vmem:[#allocation7 + $0x394] sm:$0xf0]  ;;  %v1523_v59 = vsub.f32 %v4798_v15, %v4818_v7 }
 0x4df   :  { %2122 = vmatpush.bf16.msra.mxu3 %v3701_v8  ;;  %v3705_v17 = vor.u32 %v4134_v55, %v3702_v9  ;;  %2158 = vmatpush.bf16.msra.mxu1 %v3709_v21  ;;  %v3597_v55 = vor.u32 %v4107_v58, %v3594_v62  ;;  %v4108_v8 = vld [vmem:[#allocation7 + $0x2a4] sm:$0xf]  ;;  %v3602_v9 = vld [vmem:[#allocation7 + $0x2c4] sm:$0xf0]  ;;  %v3558_v21 = vld [vmem:[#allocation7 + $0x274] sm:$0xf0] }
 0x4e0   :  { %v1520_v35 = vsub.f32 %v1514_v19, %v1517_v14  ;;  %v4135_v19 = vld [vmem:[#allocation7 + $0x37c] sm:$0xf]  ;;  %v4104_v58 = vld [vmem:[#allocation7 + $0x280] sm:$0xf0] }
 0x4e1   :  { %v3713_v22 = vor.u32 %v4135_v19, %v3710_v6  ;;  %2140 = vmatpush.bf16.msra.mxu0 %v3705_v17  ;;  %v3605_v19 = vor.u32 %v4108_v8, %v3602_v9 }
 0x4e2   :  { %v4822_v30 = vpop.eup %4289  ;;  %v4824_v34 = vadd.f32 1e-05, %v1520_v35  ;;  %v4125_v35 = vld [vmem:[#allocation7 + $0x32c] sm:$0xf] }
 0x4e3   :  { %v1529_v40 = vmul.f32 %v4822_v30, %v4815_v49  ;;  %vm1535_vm13 = vweird.f32 %v4822_v30  ;;  %2176 = vmatpush.bf16.msra.mxu2 %v3713_v22  ;;  %2123 = vmatpush.bf16.msra.mxu3 %v3665_v27  ;;  %v3564_v22 = vld [vmem:[#allocation7 + $0x258] sm:$0xf]  ;;  %v3566_v27 = vld [vmem:[#allocation7 + $0x27c] sm:$0xf0] }
 0x4e4   :  { %4291 = vrsqrt.f32 %v4824_v34  ;;  %v1499_v46 = vpop.xlane.xlu1 %1498  ;;  %vm4845_vm15 = vmor %vm1534_vm14, %vm1535_vm13  ;;  %vm1544_vm5 = vweird.f32 %v4824_v34  ;;  %2159 = vmatpush.bf16.msra.mxu1 %v3673_v28  ;;  %v4167_v28 = vld [vmem:[#allocation7 + $0x478] sm:$0xf0] }
 0x4e5   :  { %v1530_v48 = vmul.f32 %v4822_v30, %v1529_v40  ;;  %v4830_v50 = vmul.f32 0.02, %v1499_v46  ;;  %v3669_v40 = vor.u32 %v4125_v35, %v3666_v24  ;;  %v4120_v46 = vld [vmem:[#allocation7 + $0x300] sm:$0xf0] }
 0x4e6   :  { %v1509_v1 = vpop.xlane.xlu2 %1508  ;;  %v3629_v42 = vor.u32 %v4120_v46, %v3628_v44  ;;  %v4158_v44 = vld [vmem:[#allocation7 + $0x430] sm:$0xf0] }
 0x4e7   :  { %v1531_v45 = vmul.f32 0.5, %v1530_v48  ;;  %v1518_v56 = vmul.f32 %v4830_v50, %v4830_v50  ;;  %v1515_v57 = vmul.f32 0.02, %v1509_v1  ;;  %2141 = vmatpush.bf16.msra.mxu0 %v3669_v40  ;;  %v3633_v1 = vor.u32 %v4116_v32, %v3630_v51  ;;  %v3824_v40 = vld [vmem:[#allocation7 + $0x458] sm:$0xf] }
 0x4e8   :  { %2124 = vmatpush.bf16.msra.mxu3 %v3629_v42  ;;  %v4140_v42 = vld [vmem:[#allocation7 + $0x3a0] sm:$0xf0] }
 0x4e9   :  { %v1532_v63 = vsub.f32 1.5, %v1531_v45  ;;  %v1521_v0 = vsub.f32 %v1515_v57, %v1518_v56  ;;  %v3641_v56 = vor.u32 %v4117_v52, %v3638_v54  ;;  %v3592_v57 = vld [vmem:[#allocation7 + $0x298] sm:$0xf]  ;;  %v4131_v52 = vld [vmem:[#allocation7 + $0x358] sm:$0xf0] }
 0x4ea   :  { %v4835_v5 = vpop.eup %4291  ;;  %v3593_v53 = vor.u32 %v4111_v33, %v3592_v57  ;;  %v3572_v33 = vld [vmem:[#allocation7 + $0x260] sm:$0xf] }
 0x4eb   :  { %v1533_v4 = vmul.f32 %v4822_v30, %v1532_v63  ;;  %v1539_v13 = vmul.f32 %v4835_v5, %v4824_v34  ;;  %v4841_v14 = vadd.f32 1e-05, %v1521_v0  ;;  %vm1545_vm4 = vweird.f32 %v4835_v5  ;;  %v4121_v34 = vld [vmem:[#allocation7 + $0x308] sm:$0xf0]  ;;  %v3600_v63 = vld [vmem:[#allocation7 + $0x2a0] sm:$0xf]  ;;  %2142 = vmatpush.bf16.msra.mxu0 %v3633_v1 }
 0x4ec   :  { %vm4862_vm6 = vmor %vm1544_vm5, %vm1545_vm4  ;;  %v3637_v45 = vor.u32 %v4121_v34, %v3636_v39  ;;  %v4112_v0 = vld [vmem:[#allocation7 + $0x2c0] sm:$0xf0]  ;;  %2125 = vmatpush.bf16.msra.mxu3 %v3593_v53  ;;  %v3717_v39 = vor.u32 %v4140_v42, %v3716_v12  ;;  %v3680_v34 = vld [vmem:[#allocation7 + $0x338] sm:$0xf] }
 0x4ed   :  { %v1540_v49 = vmul.f32 %v4835_v5, %v1539_v13  ;;  %4293 = vrsqrt.f32 %v4841_v14  ;;  %v1537_v26 = vsel %vm4845_vm15, %v4822_v30, %v1533_v4  ;;  %v3677_v30 = vor.u32 %v4126_v43, %v3674_v41  ;;  %v3556_v4 = vld [vmem:[#allocation7 + $0x250] sm:$0xf]  ;;  %v4102_v13 = vld [vmem:[#allocation7 + $0x270] sm:$0xf0] }
 0x4ee   :  { %v1558_v47 = vmul.f32 %v1537_v26, %v1522_v36  ;;  %2160 = vmatpush.bf16.msra.mxu1 %v3637_v45  ;;  %v3601_v7 = vor.u32 %v4112_v0, %v3600_v63  ;;  %v3557_v17 = vor.u32 %v4102_v13, %v3556_v4  ;;  %v4099_v26 = vld [vmem:[#allocation7 + $0x25c] sm:$0xf]  ;;  %vm1554_vm8 = vweird.f32 %v4841_v14  ;;  %v3608_v45 = vld [vmem:[#allocation7 + $0x2a8] sm:$0xf] }
 0x4ef   :  { %v1541_v31 = vmul.f32 0.5, %v1540_v49  ;;  %2177 = vmatpush.bf16.msra.mxu2 %v3677_v30  ;;  %v4103_v49 = vld [vmem:[#allocation7 + $0x278] sm:$0xf0]  ;;  %2143 = vmatpush.bf16.msra.mxu0 %v3597_v55  ;;  %v1524_v43 = vsub.f32 %v4804_v18, %v4830_v50  ;;  %v3788_v30 = vld [vmem:[#allocation7 + $0x410] sm:$0xf]  ;;  %v3681_v54 = vor.u32 %v4131_v52, %v3680_v34 }
 0x4f0   :  { %v1564_v2 = vmul.f32 %v4857_v38, %v1558_v47  ;;  %2126 = vmatpush.bf16.msra.mxu3 %v3557_v17  ;;  %v3565_v36 = vor.u32 %v4103_v49, %v3564_v22  ;;  %v3789_v32 = vor.u32 %v4158_v44, %v3788_v30  ;;  %v3752_v18 = vld [vmem:[#allocation7 + $0x3c8] sm:$0xf]  ;;  %v4149_v50 = vld [vmem:[#allocation7 + $0x3e8] sm:$0xf0] }
 0x4f1   :  { %v1542_v48 = vsub.f32 1.5, %v1541_v31  ;;  %v3569_v31 = vor.u32 %v4099_v26, %v3566_v27 }
 0x4f2   :  { %v4879_v23 = vadd.f32 %v4238_v10, %v1564_v2  ;;  %2161 = vmatpush.bf16.msra.mxu1 %v3601_v7 }
 0x4f3   :  { %v4866_v61 = vpop.eup %4293  ;;  %v1543_v37 = vmul.f32 %v4835_v5, %v1542_v48  ;;  %2178 = vmatpush.bf16.msra.mxu2 %v3641_v56  ;;  %v3753_v48 = vor.u32 %v4149_v50, %v3752_v18  ;;  %v4113_v56 = vld [vmem:[#allocation7 + $0x2c8] sm:$0xf0] }
 0x4f4   :  { %v1549_v60 = vmul.f32 %v4866_v61, %v4841_v14  ;;  %vm1555_vm7 = vweird.f32 %v4866_v61  ;;  %v3825_v14 = vor.u32 %v4167_v28, %v3824_v40  ;;  %v3609_v57 = vor.u32 %v4113_v56, %v3608_v45 }
 0x4f5   :  { %v1547_v3 = vsel %vm4862_vm6, %v4835_v5, %v1543_v37  ;;  %v4098_v5 = vld [vmem:[#allocation7 + $0x254] sm:$0xf]  ;;  %vm1556_vm9 = vmor %vm1554_vm8, %vm1555_vm7 }
 0x4f6   :  { %v1559_v11 = vmul.f32 %v1547_v3, %v1523_v59  ;;  %v1550_v15 = vmul.f32 %v4866_v61, %v1549_v60  ;;  %v3561_v29 = vor.u32 %v4098_v5, %v3558_v21  ;;  %2162 = vmatpush.bf16.msra.mxu1 %v3565_v36  ;;  %v3573_v59 = vor.u32 %v4104_v58, %v3572_v33 }
 0x4f7   :  { %2179 = vmatpush.bf16.msra.mxu2 %v3605_v19 }
 0x4f8   :  { %v1565_v6 = vmul.f32 %v4857_v38, %v1559_v11  ;;  %v1551_v16 = vmul.f32 0.5, %v1550_v15  ;;  %2144 = vmatpush.bf16.msra.mxu0 %v3561_v29 }
 0x4fa   :  { %v4881_v25 = vadd.f32 %v4238_v10, %v1565_v6  ;;  %v1552_v35 = vsub.f32 1.5, %v1551_v16 }
 0x4fb   :  { %2180 = vmatpush.bf16.msra.mxu2 %v3569_v31 }
 0x4fc   :  { %v4887_v24 = vpack.c.bf16 %v4881_v25, %v4879_v23  ;;  %v1553_v20 = vmul.f32 %v4866_v61, %v1552_v35 }
 0x4fe   :  { %v1557_v41 = vsel %vm1556_vm9, %v4866_v61, %v1553_v20  ;;  %2055 = vmatmul.bf16.vlgmr.msrb.gmra.mxu3 %v4887_v24  ;;  %2073 = vmatmul.bf16.vlgmr.msrb.gmra.mxu0 %v4887_v24  ;;  %v4122_v61 = vld [vmem:[#allocation7 + $0x310] sm:$0xf0] }
 0x4ff   :  { %2091 = vmatmul.bf16.vlgmr.msrb.gmra.mxu1 %v4887_v24  ;;  %2109 = vmatmul.bf16.vlgmr.msrb.gmra.mxu2 %v4887_v24  ;;  %v1560_v46 = vmul.f32 %v1557_v41, %v1524_v43 }
 0x500   :  { %2191 = vmatpush.bf16.msrb.mxu3 %v3825_v14 }
 0x501   :  { %v1566_v47 = vmul.f32 %v4857_v38, %v1560_v46  ;;  %v3644_v38 = vld [vmem:[#allocation7 + $0x2f0] sm:$0xf] }
 0x502   :  { %v3645_v37 = vor.u32 %v4122_v61, %v3644_v38 }
 0x503   :  { %v4898_v51 = vadd.f32 %v4238_v10, %v1566_v47  ;;  %v1657_v10 = vld [vmem:[#allocation8 + $0x12] sm:$0xff] }
 0x504   :  { %2192 = vmatpush.bf16.msrb.mxu3 %v3789_v32  ;;  %v1663_v11 = vperm.slane %v1657_v10, 2  ;;  %v1664_v15 = vperm.slane %v1657_v10, 3  ;;  %v1661_v20 = vperm.slane %v1657_v10, 0  ;;  %v1662_v40 = vperm.slane %v1657_v10, 1 }
 0x505   :  { %v1574_v1 = vpack.c.bf16 %v4898_v51, %v4898_v51  ;;  %v1665_v33 = vperm.slane %v1657_v10, 4  ;;  %v1668_v58 = vperm.slane %v1657_v10, 7 }
 0x508   :  { %2193 = vmatpush.bf16.msrb.mxu3 %v3753_v48 }
 0x50c   :  { %2194 = vmatpush.bf16.msrb.mxu3 %v3717_v39 }
 0x50e   :  { %2060 = vmatmul.bf16.gmra.mxu3 %v1574_v1  ;;  %2078 = vmatmul.bf16.gmra.mxu0 %v1574_v1 }
 0x50f   :  { %2096 = vmatmul.bf16.gmra.mxu1 %v1574_v1  ;;  %2114 = vmatmul.bf16.gmra.mxu2 %v1574_v1 }
 0x510   :  { %2195 = vmatpush.bf16.msrb.mxu3 %v3681_v54 }
 0x514   :  { %2196 = vmatpush.bf16.msrb.mxu3 %v3645_v37 }
 0x518   :  { %2197 = vmatpush.bf16.msrb.mxu3 %v3609_v57  ;;  %v1666_v57 = vperm.slane %v1657_v10, 5 }
 0x51c   :  { %2198 = vmatpush.bf16.msrb.mxu3 %v3573_v59  ;;  %v1667_v59 = vperm.slane %v1657_v10, 6 }
 0x51e   :  { %2127 = vmatmul.bf16.vlgmr.msra.gmra.mxu3 %v4887_v24  ;;  %2145 = vmatmul.bf16.vlgmr.msra.gmra.mxu0 %v4887_v24 }
 0x51f   :  { %2163 = vmatmul.bf16.vlgmr.msra.gmra.mxu1 %v4887_v24  ;;  %2181 = vmatmul.bf16.vlgmr.msra.gmra.mxu2 %v4887_v24 }
 0x52e   :  { %2132 = vmatmul.bf16.gmra.mxu3 %v1574_v1  ;;  %2150 = vmatmul.bf16.gmra.mxu0 %v1574_v1 }
 0x52f   :  { %2168 = vmatmul.bf16.gmra.mxu1 %v1574_v1  ;;  %2186 = vmatmul.bf16.gmra.mxu2 %v1574_v1 }
 0x53e   :  { %2199 = vmatmul.bf16.vlgmr.msrb.gmra.mxu3 %v4887_v24 }
 0x54e   :  { %2204 = vmatmul.bf16.gmra.mxu3 %v1574_v1 }
 0x57b   :  { %v2074_v60 = vpop.f32.mrf.mxu0 }
 0x57c   :  { %v2092_v53 = vpop.f32.mrf.mxu1  ;;  %v2075_v46 = vadd.f32 %v2074_v60, %v1662_v40 }
 0x57d   :  { %v2093_v35 = vadd.f32 %v2092_v53, %v1663_v11 }
 0x581   :  { %v2056_v62 = vpop.f32.mrf.mxu3 }
 0x582   :  { %v2110_v63 = vpop.f32.mrf.mxu2  ;;  %v2057_v14 = vadd.f32 %v2056_v62, %v1661_v20 }
 0x583   :  { %v2076_v0 = vpop.f32.mrf.mxu0  ;;  %v2111_v21 = vadd.f32 %v2110_v63, %v1664_v15 }
 0x584   :  { %v2094_v2 = vpop.f32.mrf.mxu1  ;;  %v2077_v30 = vadd.f32 %v2076_v0, %v1662_v40  ;;  %v4918_v47 = vpack.c.bf16 %v2075_v46, %v2057_v14 }
 0x585   :  { %v2095_v22 = vadd.f32 %v2094_v2, %v1663_v11  ;;  %v4912_v36 = vpack.c.bf16 %v2111_v21, %v2093_v35 }
 0x586   :  { %v2227_v1 = vunpack.c.l.b16 %v4918_v47 }
 0x587   :  { %v2237_v44 = vunpack.c.h.b16 %v4912_v36 }
 0x589   :  { %v2058_v3 = vpop.f32.mrf.mxu3 }
 0x58a   :  { %v2112_v55 = vpop.f32.mrf.mxu2  ;;  %v2059_v28 = vadd.f32 %v2058_v3, %v1661_v20 }
 0x58b   :  { %v2079_v8 = vpop.f32.mrf.mxu0  ;;  %v2113_v17 = vadd.f32 %v2112_v55, %v1664_v15 }
 0x58c   :  { %v2097_v9 = vpop.f32.mrf.mxu1  ;;  %v4916_v32 = vpack.c.bf16 %v2077_v30, %v2059_v28  ;;  %v2080_v45 = vadd.f32 %v2079_v8, %v1662_v40 }
 0x58d   :  { %v2098_v13 = vadd.f32 %v2097_v9, %v1663_v11  ;;  %v4910_v26 = vpack.c.bf16 %v2113_v17, %v2095_v22 }
 0x58e   :  { %v2228_v42 = vunpack.c.l.b16 %v4916_v32 }
 0x58f   :  { %v2238_v41 = vunpack.c.h.b16 %v4910_v26 }
 0x590   :  { %v2230_v34 = vpack.c.b16 %v2228_v42, %v2227_v1 }
 0x591   :  { %v2061_v7 = vpop.f32.mrf.mxu3  ;;  %v2240_v50 = vpack.c.b16 %v2238_v41, %v2237_v44 }
 0x592   :  { %v2115_v4 = vpop.f32.mrf.mxu2  ;;  %v2062_v38 = vadd.f32 %v2061_v7, %v1661_v20 }
 0x593   :  { %v2116_v19 = vadd.f32 %v2115_v4, %v1664_v15  ;;  %v2081_v6 = vpop.f32.mrf.mxu0 }
 0x594   :  { %v2099_v16 = vpop.f32.mrf.mxu1  ;;  %v4922_v56 = vpack.c.bf16 %v2080_v45, %v2062_v38  ;;  %v2413_v45 = vunpack.c.l.b16 %v4910_v26 }
 0x595   :  { %v4907_v5 = vpack.c.bf16 %v2116_v19, %v2098_v13 }
 0x596   :  { %v2229_v9 = vunpack.c.l.b16 %v4922_v56 }
 0x597   :  { %v2239_v49 = vunpack.c.h.b16 %v4907_v5 }
 0x599   :  { %v2241_v27 = vpack.c.b16 %v2239_v49, %v2239_v49  ;;  %v2063_v24 = vpop.f32.mrf.mxu3 }
 0x59a   :  { %v2117_v29 = vpop.f32.mrf.mxu2 }
 0x59b   :  { %2250 = vmatpush.bf16.xpose.msrb.mxu0 %v2241_v27  ;;  %v2146_v31 = vpop.f32.mrf.mxu0  ;;  %v2231_v27 = vpack.c.b16 %v2229_v9, %v2229_v9 }
 0x59c   :  { %v2164_v43 = vpop.f32.mrf.mxu1  ;;  %v2147_v22 = vadd.f32 %v2146_v31, %v1666_v57 }
 0x59d   :  { %v2165_v13 = vadd.f32 %v2164_v43, %v1667_v59 }
 0x5a1   :  { %v2128_v18 = vpop.f32.mrf.mxu3 }
 0x5a2   :  { %v2182_v48 = vpop.f32.mrf.mxu2  ;;  %v2129_v19 = vadd.f32 %v2128_v18, %v1665_v33 }
 0x5a3   :  { %2251 = vmatpush.bf16.xpose.msrb.mxu0 %v2240_v50  ;;  %v2148_v12 = vpop.f32.mrf.mxu0  ;;  %v2183_v11 = vadd.f32 %v2182_v48, %v1668_v58 }
 0x5a4   :  { %v2166_v39 = vpop.f32.mrf.mxu1  ;;  %v2149_v16 = vadd.f32 %v2148_v12, %v1666_v57  ;;  %v2211_v30 = vpack.c.bf16 %v2147_v22, %v2129_v19 }
 0x5a5   :  { %v2167_v15 = vadd.f32 %v2166_v39, %v1667_v59  ;;  %v2212_v24 = vpack.c.bf16 %v2183_v11, %v2165_v13 }
 0x5a6   :  { %v2295_v39 = vunpack.c.l.b16 %v2211_v30 }
 0x5a7   :  { %v2346_v50 = vunpack.c.h.b16 %v2212_v24  ;;  %v2379_v48 = vunpack.c.l.b16 %v2212_v24 }
 0x5a9   :  { %v2130_v52 = vpop.f32.mrf.mxu3 }
 0x5aa   :  { %v2184_v54 = vpop.f32.mrf.mxu2  ;;  %2252 = vmatmul.bf16.vlgmr.msrb.gmra.mxu0 %v2230_v34  ;;  %v2131_v7 = vadd.f32 %v2130_v52, %v1665_v33  ;;  %v2419_v52 = vunpack.c.h.b16 %v2211_v30 }
 0x5ab   :  { %v2151_v61 = vpop.f32.mrf.mxu0  ;;  %v2185_v53 = vadd.f32 %v2184_v54, %v1668_v58 }
 0x5ac   :  { %v2169_v37 = vpop.f32.mrf.mxu1  ;;  %v2152_v62 = vadd.f32 %v2151_v61, %v1666_v57  ;;  %v2216_v20 = vpack.c.bf16 %v2149_v16, %v2131_v7  ;;  %v2285_v57 = vunpack.c.h.b16 %v4918_v47 }
 0x5ad   :  { %v2170_v2 = vadd.f32 %v2169_v37, %v1667_v59  ;;  %v2217_v10 = vpack.c.bf16 %v2185_v53, %v2167_v15  ;;  %v2286_v37 = vunpack.c.h.b16 %v4916_v32  ;;  %v4239_v53 = vld [vmem:[#allocation8 + $0x1a] ss:$0 sm:$0xff] }
 0x5ae   :  { %v2296_v12 = vunpack.c.l.b16 %v2216_v20  ;;  %v2420_v42 = vunpack.c.h.b16 %v2216_v20 }
 0x5af   :  { %v2347_v44 = vunpack.c.h.b16 %v2217_v10  ;;  %v2380_v43 = vunpack.c.l.b16 %v2217_v10 }
 0x5b0   :  { %v2298_v54 = vpack.c.b16 %v2296_v12, %v2295_v39  ;;  %v2422_v61 = vpack.c.b16 %v2420_v42, %v2419_v52 }
 0x5b1   :  { %v2133_v60 = vpop.f32.mrf.mxu3  ;;  %v2349_v1 = vpack.c.b16 %v2347_v44, %v2346_v50  ;;  %v2382_v34 = vpack.c.b16 %v2380_v43, %v2379_v48  ;;  %v4345_v48 = vld [vmem:[#allocation5 + $0x10] sm:$0xf] }
 0x5b2   :  { %v2134_v63 = vadd.f32 %v2133_v60, %v1665_v33  ;;  %v2187_v0 = vpop.f32.mrf.mxu2  ;;  %v2412_v33 = vunpack.c.l.b16 %v4912_v36 }
 0x5b3   :  { %v2188_v3 = vadd.f32 %v2187_v0, %v1668_v58  ;;  %v2153_v55 = vpop.f32.mrf.mxu0  ;;  %v2288_v58 = vpack.c.b16 %v2286_v37, %v2285_v57 }
 0x5b4   :  { %v2221_v8 = vpack.c.bf16 %v2152_v62, %v2134_v63  ;;  %v2171_v4 = vpop.f32.mrf.mxu1  ;;  %v2415_v59 = vpack.c.b16 %v2413_v45, %v2412_v33  ;;  %v2414_v55 = vunpack.c.l.b16 %v4907_v5 }
 0x5b5   :  { %v2222_v6 = vpack.c.bf16 %v2188_v3, %v2170_v2  ;;  %v2287_v3 = vunpack.c.h.b16 %v4922_v56 }
 0x5b6   :  { %v2297_v17 = vunpack.c.l.b16 %v2221_v8  ;;  %v2421_v21 = vunpack.c.h.b16 %v2221_v8  ;;  %v2416_v15 = vpack.c.b16 %v2414_v55, %v2414_v55 }
 0x5b7   :  { %v2348_v49 = vunpack.c.h.b16 %v2222_v6  ;;  %v2381_v35 = vunpack.c.l.b16 %v2222_v6  ;;  %v2289_v11 = vpack.c.b16 %v2287_v3, %v2287_v3  ;;  %v4343_v6 = vld [vmem:[#allocation5] sm:$0xff] }
 0x5b8   :  { %v2299_v29 = vpack.c.b16 %v2297_v17, %v2297_v17  ;;  %v2423_v40 = vpack.c.b16 %v2421_v21, %v2421_v21  ;;  %v4344_v17 = vld [vmem:[#allocation5 + $0x8] sm:$0xff] }
 0x5b9   :  { %v2350_v28 = vpack.c.b16 %v2348_v49, %v2348_v49  ;;  %v2383_v41 = vpack.c.b16 %v2381_v35, %v2381_v35  ;;  %v2135_v14 = vpop.f32.mrf.mxu3 }
 0x5ba   :  { %v2189_v46 = vpop.f32.mrf.mxu2  ;;  %2257 = vmatmul.bf16.gmra.mxu0 %v2231_v27  ;;  %2308 = vmatpush.bf16.xpose.msrb.mxu1 %v2299_v29 }
 0x5bb   :  { %2432 = vmatpush.bf16.xpose.msra.mxu0 %v2423_v40  ;;  %v2359_v18 = vsel %vm928_vm0, %v2350_v28, 0  ;;  %v2392_v31 = vsel %vm928_vm0, %v2383_v41, 0 }
 0x5bc   :  { %2367 = vmatpush.bf16.msrb.mxu2 %v2359_v18  ;;  %2400 = vmatpush.bf16.msra.mxu3 %v2392_v31 }
 0x5c0   :  { %2368 = vmatpush.bf16.msrb.mxu2 %v2349_v1  ;;  %2401 = vmatpush.bf16.msra.mxu3 %v2382_v34 }
 0x5c1   :  { %v2200_v38 = vpop.f32.mrf.mxu3 }
 0x5c2   :  { %2309 = vmatpush.bf16.xpose.msrb.mxu1 %v2298_v54  ;;  %v2201_v2 = vadd.f32 %v4239_v53, %v2200_v38 }
 0x5c3   :  { %2433 = vmatpush.bf16.xpose.msra.mxu0 %v2422_v61 }
 0x5c4   :  { %v2213_v47 = vpack.c.bf16 %v2201_v2, %v2201_v2 }
 0x5c6   :  { %v2470_v13 = vunpack.c.l.b16 %v2213_v47 }
 0x5c9   :  { %v2202_v60 = vpop.f32.mrf.mxu3  ;;  %2310 = vmatmul.bf16.vlgmr.msrb.gmra.mxu1 %v2288_v58 }
 0x5ca   :  { %2434 = vmatmul.bf16.vlgmr.msra.gmra.mxu0 %v2415_v59  ;;  %v2203_v62 = vadd.f32 %v4239_v53, %v2202_v60 }
 0x5cc   :  { %v2218_v26 = vpack.c.bf16 %v2203_v62, %v2203_v62 }
 0x5ce   :  { %v2471_v7 = vunpack.c.l.b16 %v2218_v26 }
 0x5d0   :  { %v2473_v19 = vpack.c.b16 %v2471_v7, %v2470_v13 }
 0x5d1   :  { %v2205_v63 = vpop.f32.mrf.mxu3 }
 0x5d2   :  { %v2206_v0 = vadd.f32 %v4239_v53, %v2205_v63 }
 0x5d4   :  { %v2223_v32 = vpack.c.bf16 %v2206_v0, %v2206_v0 }
 0x5d6   :  { %v2472_v9 = vunpack.c.l.b16 %v2223_v32 }
 0x5d8   :  { %v2474_v36 = vpack.c.b16 %v2472_v9, %v2472_v9 }
 0x5d9   :  { %v2207_v8 = vpop.f32.mrf.mxu3  ;;  %2315 = vmatmul.bf16.gmra.mxu1 %v2289_v11 }
 0x5da   :  { %2439 = vmatmul.bf16.gmra.mxu0 %v2416_v15  ;;  %v2483_v4 = vsel %vm928_vm0, %v2474_v36, 0 }
 0x5db   :  { %2491 = vmatpush.bf16.msra.mxu1 %v2483_v4 }
 0x5df   :  { %2492 = vmatpush.bf16.msra.mxu1 %v2473_v19 }
 0x627   :  { %v2253_v56 = vpop.f32.mrf.mxu0 }
 0x628   :  { %v2254_v16 = vadd.f32 %v4343_v6, %v2253_v56 }
 0x62a   :  { %v2262_v5 = vmul.f32 1.442695, %v2254_v16 }
 0x62c   :  { %4295 = vpow2.f32 %v2262_v5 }
 0x62f   :  { %v2255_v10 = vpop.f32.mrf.mxu0 }
 0x630   :  { %v2256_v21 = vadd.f32 %v4344_v17, %v2255_v10 }
 0x632   :  { %v4934_v22 = vpop.eup %4295  ;;  %v2264_v49 = vmul.f32 1.442695, %v2256_v21 }
 0x633   :  { %v2268_v35 = vsel %vm836_vm1, %v4934_v22, 0.0 }
 0x634   :  { %4297 = vpow2.f32 %v2264_v49  ;;  %2269 = vadd.xlane.f32.xlu0 %v2268_v35 }
 0x637   :  { %v2258_v27 = vpop.f32.mrf.mxu0 }
 0x638   :  { %v2259_v12 = vadd.f32 %v4345_v48, %v2258_v27 }
 0x63a   :  { %v4298_v24 = vpop.eup %4297  ;;  %v2266_v54 = vmul.f32 1.442695, %v2259_v12 }
 0x63b   :  { %v2271_v20 = vsel %vm836_vm1, %v4298_v24, 0.0 }
 0x63c   :  { %2272 = vadd.xlane.f32.xlu1 %v2271_v20 }
 0x63f   :  { %v2260_v29 = vpop.f32.mrf.mxu0 }
 0x646   :  { %v2311_v40 = vpop.f32.mrf.mxu1 }
 0x647   :  { %v2312_v28 = vadd.f32 %v4343_v6, %v2311_v40  ;;  %v2435_v41 = vpop.f32.mrf.mxu0 }
 0x648   :  { %v2436_v14 = vadd.f32 %v4343_v6, %v2435_v41 }
 0x649   :  { %v2320_v30 = vmul.f32 1.442695, %v2312_v28 }
 0x64a   :  { %v2444_v44 = vmul.f32 1.442695, %v2436_v14 }
 0x64b   :  { %4299 = vpow2.f32 %v2320_v30 }
 0x64c   :  { %4301 = vpow2.f32 %v2444_v44 }
 0x64e   :  { %v2313_v43 = vpop.f32.mrf.mxu1 }
 0x64f   :  { %v2314_v46 = vadd.f32 %v4344_v17, %v2313_v43  ;;  %v2437_v18 = vpop.f32.mrf.mxu0 }
 0x650   :  { %v2438_v31 = vadd.f32 %v4344_v17, %v2437_v18 }
 0x651   :  { %v4300_v50 = vpop.eup %4299  ;;  %v2322_v42 = vmul.f32 1.442695, %v2314_v46 }
 0x652   :  { %v4302_v39 = vpop.eup %4301  ;;  %v2446_v1 = vmul.f32 1.442695, %v2438_v31  ;;  %v2326_v34 = vsel %vm836_vm1, %v4300_v50, 0.0 }
 0x653   :  { %4303 = vpow2.f32 %v2322_v42  ;;  %2327 = vadd.xlane.f32.xlu2 %v2326_v34  ;;  %v2450_v52 = vsel %vm836_vm1, %v4302_v39, 0.0  ;;  %v4240_v42 = vld [vmem:[#allocation8 + $0x1d] ss:$0 sm:$0xff] }
 0x654   :  { %4305 = vpow2.f32 %v2446_v1  ;;  %2451 = vadd.xlane.f32.xlu1 %v2450_v52 }
 0x655   :  { %4307 = vpow2.f32 %v2266_v54 }
 0x656   :  { %v2316_v38 = vpop.f32.mrf.mxu1 }
 0x657   :  { %v2317_v61 = vadd.f32 %v4345_v48, %v2316_v38  ;;  %v2440_v37 = vpop.f32.mrf.mxu0 }
 0x658   :  { %v2441_v45 = vadd.f32 %v4345_v48, %v2440_v37 }
 0x659   :  { %v4304_v57 = vpop.eup %4303  ;;  %v2324_v33 = vmul.f32 1.442695, %v2317_v61 }
 0x65a   :  { %v4306_v58 = vpop.eup %4305  ;;  %v2448_v59 = vmul.f32 1.442695, %v2441_v45  ;;  %v2329_v60 = vsel %vm836_vm1, %v4304_v57, 0.0 }
 0x65b   :  { %4309 = vpow2.f32 %v2324_v33  ;;  %2330 = vadd.xlane.f32.xlu0 %v2329_v60  ;;  %v2453_v53 = vsel %vm836_vm1, %v4306_v58, 0.0  ;;  %v4308_v63 = vpop.eup %4307 }
 0x65c   :  { %4311 = vpow2.f32 %v2448_v59  ;;  %2454 = vadd.xlane.f32.xlu2 %v2453_v53  ;;  %v2274_v55 = vsel %vm843_vm2, %v4308_v63, 0.0 }
 0x65e   :  { %v2318_v62 = vpop.f32.mrf.mxu1 }
 0x65f   :  { %v2442_v0 = vpop.f32.mrf.mxu0 }
 0x661   :  { %v4310_v2 = vpop.eup %4309 }
 0x662   :  { %v4312_v3 = vpop.eup %4311  ;;  %v2332_v32 = vsel %vm843_vm2, %v4310_v2, 0.0 }
 0x663   :  { %v2456_v26 = vsel %vm843_vm2, %v4312_v3, 0.0  ;;  %2333 = vadd.xlane.f32.xlu1 %v2332_v32  ;;  %2275 = vadd.xlane.f32.xlu0 %v2274_v55 }
 0x664   :  { %2457 = vadd.xlane.f32.xlu2 %v2456_v26 }
 0x6a7   :  { %v2270_v9 = vpop.xlane.xlu0 %2269 }
 0x6a8   :  { %4313 = vrcp.f32 %v2270_v9  ;;  %v3890_v9 = vld [vmem:[#allocation10 + $0xf0] sm:$0xf] }
 0x6ae   :  { %v4314_v11 = vpop.eup %4313 }
 0x6af   :  { %v2273_v47 = vpop.xlane.xlu1 %2272  ;;  %v2280_v15 = vmul.f32 %v4314_v11, %v4934_v22  ;;  %v4182_v11 = vld [vmem:[#allocation10 + $0xf4] sm:$0xf] }
 0x6b0   :  { %4315 = vrcp.f32 %v2273_v47  ;;  %v4183_v47 = vld [vmem:[#allocation10 + $0xf4] sm:$0xf0] }
 0x6b6   :  { %v4316_v36 = vpop.eup %4315 }
 0x6b7   :  { %v2281_v7 = vmul.f32 %v4316_v36, %v4298_v24  ;;  %v3891_v36 = vor.u32 %v4183_v47, %v3890_v9 }
 0x6b9   :  { %v2283_v8 = vpack.c.bf16 %v2281_v7, %v2280_v15  ;;  %v3892_v15 = vld [vmem:[#allocation10 + $0xf8] sm:$0xf0]  ;;  %2703 = vmatpush.bf16.msra.mxu2 %v3891_v36 }
 0x6ba   :  { %v3895_v7 = vor.u32 %v4182_v11, %v3892_v15 }
 0x6bb   :  { %3828 = vmatmul.msk.bf16.vlgmr.msra.gmra.mxu3 %vm836_vm1, %v2283_v8  ;;  %v4181_v8 = vld [vmem:[#allocation10 + $0xe4] sm:$0xf0] }
 0x6bc   :  { %2721 = vmatpush.bf16.msrb.mxu3 %v3895_v7 }
 0x6c6   :  { %v2328_v4 = vpop.xlane.xlu2 %2327 }
 0x6c7   :  { %v2452_v13 = vpop.xlane.xlu1 %2451  ;;  %4317 = vrcp.f32 %v2328_v4  ;;  %v4180_v4 = vld [vmem:[#allocation10 + $0xe4] sm:$0xf] }
 0x6c8   :  { %4319 = vrcp.f32 %v2452_v13 }
 0x6cd   :  { %v4318_v6 = vpop.eup %4317 }
 0x6ce   :  { %v2331_v19 = vpop.xlane.xlu0 %2330  ;;  %v4320_v16 = vpop.eup %4319  ;;  %v2338_v17 = vmul.f32 %v4318_v6, %v4300_v50  ;;  %v3874_v6 = vld [vmem:[#allocation10 + $0xd0] sm:$0xf] }
 0x6cf   :  { %4321 = vrcp.f32 %v2331_v19  ;;  %v2455_v56 = vpop.xlane.xlu2 %2454  ;;  %v2462_v22 = vmul.f32 %v4320_v16, %v4302_v39  ;;  %v3884_v19 = vld [vmem:[#allocation10 + $0xe8] sm:$0xf0]  ;;  %v4179_v16 = vld [vmem:[#allocation10 + $0xd4] sm:$0xf0] }
 0x6d0   :  { %4323 = vrcp.f32 %v2455_v56  ;;  %v3887_v56 = vor.u32 %v4180_v4, %v3884_v19 }
 0x6d2   :  { %2722 = vmatpush.bf16.msrb.mxu3 %v3887_v56 }
 0x6d5   :  { %v4322_v5 = vpop.eup %4321 }
 0x6d6   :  { %v4324_v10 = vpop.eup %4323  ;;  %v2339_v21 = vmul.f32 %v4322_v5, %v4304_v57  ;;  %v2276_v49 = vpop.xlane.xlu0 %2275  ;;  %v4178_v5 = vld [vmem:[#allocation10 + $0xd4] sm:$0xf] }
 0x6d7   :  { %v2463_v35 = vmul.f32 %v4324_v10, %v4306_v58  ;;  %v2334_v24 = vpop.xlane.xlu1 %2333  ;;  %v2458_v29 = vpop.xlane.xlu2 %2457  ;;  %4325 = vrcp.f32 %v2276_v49  ;;  %v3875_v10 = vor.u32 %v4179_v16, %v3874_v6  ;;  %v3866_v49 = vld [vmem:[#allocation10 + $0xc0] sm:$0xf] }
 0x6d8   :  { %v2341_v27 = vpack.c.bf16 %v2339_v21, %v2338_v17  ;;  %4327 = vrcp.f32 %v2334_v24  ;;  %v3876_v17 = vld [vmem:[#allocation10 + $0xd8] sm:$0xf0]  ;;  %v3868_v24 = vld [vmem:[#allocation10 + $0xc8] sm:$0xf0] }
 0x6d9   :  { %v2465_v20 = vpack.c.bf16 %v2463_v35, %v2462_v22  ;;  %4329 = vrcp.f32 %v2458_v29  ;;  %v3879_v21 = vor.u32 %v4178_v5, %v3876_v17  ;;  %v4177_v22 = vld [vmem:[#allocation10 + $0xc4] sm:$0xf0]  ;;  %v4176_v35 = vld [vmem:[#allocation10 + $0xc4] sm:$0xf]  ;;  %v3858_v29 = vld [vmem:[#allocation10 + $0xb0] sm:$0xf] }
 0x6da   :  { %3826 = vmatmul.msk.bf16.vlgmr.msrb.gmra.mxu2 %vm836_vm1, %v2341_v27  ;;  %v3867_v27 = vor.u32 %v4177_v22, %v3866_v49  ;;  %v4199_v49 = vld [vmem:[#allocation11 + $0xf8] sm:$0xff] }
 0x6db   :  { %3830 = vmatmul.msk.bf16.vlgmr.msra.gmra.mxu1 %vm836_vm1, %v2465_v20  ;;  %2723 = vmatpush.bf16.msrb.mxu3 %v3879_v21  ;;  %v3871_v20 = vor.u32 %v4176_v35, %v3868_v24  ;;  %v4191_v21 = vld [vmem:[#allocation11 + $0xb8] sm:$0xff]  ;;  %v4190_v24 = vld [vmem:[#allocation11 + $0xb0] sm:$0xff] }
 0x6dc   :  { %2882 = vmatpush.bf16.msrb.mxu0 %v4191_v21  ;;  %2900 = vmatpush.bf16.msrb.mxu1 %v4199_v49 }
 0x6dd   :  { %v4326_v40 = vpop.eup %4325 }
 0x6de   :  { %v2282_v28 = vmul.f32 %v4326_v40, %v4308_v63  ;;  %v4328_v41 = vpop.eup %4327  ;;  %v4175_v40 = vld [vmem:[#allocation10 + $0xb4] sm:$0xf0] }
 0x6df   :  { %v4330_v14 = vpop.eup %4329  ;;  %v2340_v44 = vmul.f32 %v4328_v41, %v4310_v2  ;;  %2724 = vmatpush.bf16.msrb.mxu3 %v3871_v20  ;;  %v3859_v41 = vor.u32 %v4175_v40, %v3858_v29  ;;  %v4198_v20 = vld [vmem:[#allocation11 + $0xf0] sm:$0xff]  ;;  %v4241_v40 = vld [vmem:[#allocation8 + $0x1f] ss:$0 sm:$0xff] }
 0x6e0   :  { %v2284_v30 = vpack.c.bf16 %v2282_v28, %v2282_v28  ;;  %v2464_v43 = vmul.f32 %v4330_v14, %v4312_v3  ;;  %v4174_v28 = vld [vmem:[#allocation10 + $0xb4] sm:$0xf]  ;;  %v3860_v14 = vld [vmem:[#allocation10 + $0xb8] sm:$0xf0]  ;;  %2883 = vmatpush.bf16.msrb.mxu0 %v4190_v24  ;;  %2901 = vmatpush.bf16.msrb.mxu1 %v4198_v20 }
 0x6e1   :  { %v2342_v46 = vpack.c.bf16 %v2340_v44, %v2340_v44  ;;  %v3850_v44 = vld [vmem:[#allocation10 + $0xa0] sm:$0xf] }
 0x6e2   :  { %3829 = vmatmul.msk.bf16.gmra.mxu3 %vm836_vm1, %v2284_v30  ;;  %v2466_v18 = vpack.c.bf16 %v2464_v43, %v2464_v43  ;;  %v3863_v30 = vor.u32 %v4174_v28, %v3860_v14  ;;  %v4173_v43 = vld [vmem:[#allocation10 + $0xa4] sm:$0xf0] }
 0x6e4   :  { %2725 = vmatpush.bf16.msrb.mxu3 %v3863_v30 }
 0x6ea   :  { %3827 = vmatmul.msk.bf16.gmra.mxu2 %vm836_vm1, %v2342_v46  ;;  %v4172_v46 = vld [vmem:[#allocation10 + $0xa4] sm:$0xf] }
 0x6eb   :  { %3831 = vmatmul.msk.bf16.gmra.mxu1 %vm836_vm1, %v2466_v18 }
 0x73e   :  { %v2403_v31 = vpop.f32.mrf.mxu3 }
 0x746   :  { %v2405_v39 = vpop.f32.mrf.mxu3 }
 0x758   :  { %v2494_v50 = vpop.f32.mrf.mxu1 }
 0x75d   :  { %v2370_v48 = vpop.f32.mrf.mxu2 }
 0x75e   :  { %v2404_v12 = vadd.f32 %v2403_v31, %v2370_v48  ;;  %v3851_v31 = vor.u32 %v4173_v43, %v3850_v44  ;;  %v4189_v43 = vld [vmem:[#allocation11 + $0xa8] sm:$0xff] }
 0x75f   :  { %2884 = vmatpush.bf16.msrb.mxu0 %v4189_v43 }
 0x760   :  { %v2503_v1 = vadd.f32 %v2494_v50, %v2404_v12  ;;  %v2496_v34 = vpop.f32.mrf.mxu1  ;;  %v3852_v50 = vld [vmem:[#allocation10 + $0xa8] sm:$0xf0] }
 0x761   :  { %v3855_v12 = vor.u32 %v4172_v46, %v3852_v50  ;;  %v4197_v46 = vld [vmem:[#allocation11 + $0xe8] sm:$0xff] }
 0x762   :  { %v2510_v52 = vadd.f32 %v4240_v42, %v2503_v1  ;;  %2902 = vmatpush.bf16.msrb.mxu1 %v4197_v46 }
 0x763   :  { %2726 = vmatpush.bf16.msrb.mxu3 %v3855_v12 }
 0x764   :  { %v4954_v54 = vadd.f32 %v2510_v52, %v4879_v23  ;;  %v4171_v52 = vld [vmem:[#allocation10 + $0x94] sm:$0xf0] }
 0x765   :  { %v2372_v38 = vpop.f32.mrf.mxu2  ;;  %v2408_v45 = vpop.f32.mrf.mxu3 }
 0x766   :  { %v2406_v61 = vadd.f32 %v2405_v39, %v2372_v38  ;;  %2518 = vadd.xlane.f32.xlu0 %v4954_v54  ;;  %v2525_v37 = vmul.f32 %v4954_v54, %v4954_v54 }
 0x768   :  { %v2504_v57 = vadd.f32 %v2496_v34, %v2406_v61  ;;  %v2499_v33 = vpop.f32.mrf.mxu1  ;;  %2528 = vadd.xlane.f32.xlu2 %v2525_v37  ;;  %v3842_v34 = vld [vmem:[#allocation10 + $0x90] sm:$0xf]  ;;  %v4170_v61 = vld [vmem:[#allocation10 + $0x94] sm:$0xf]  ;;  %v3844_v37 = vld [vmem:[#allocation10 + $0x98] sm:$0xf0] }
 0x769   :  { %v3843_v38 = vor.u32 %v4171_v52, %v3842_v34 }
 0x76a   :  { %v2511_v58 = vadd.f32 %v4240_v42, %v2504_v57  ;;  %v3847_v57 = vor.u32 %v4170_v61, %v3844_v37 }
 0x76c   :  { %v4960_v59 = vadd.f32 %v2511_v58, %v4881_v25  ;;  %2727 = vmatpush.bf16.msrb.mxu3 %v3847_v57  ;;  %v3834_v58 = vld [vmem:[#allocation10 + $0x80] sm:$0xf] }
 0x76d   :  { %v2375_v60 = vpop.f32.mrf.mxu2  ;;  %v2410_v62 = vpop.f32.mrf.mxu3 }
 0x76e   :  { %v2409_v53 = vadd.f32 %v2408_v45, %v2375_v60  ;;  %2520 = vadd.xlane.f32.xlu1 %v4960_v59  ;;  %v2526_v23 = vmul.f32 %v4960_v59, %v4960_v59  ;;  %v4169_v60 = vld [vmem:[#allocation10 + $0x84] sm:$0xf0]  ;;  %v4168_v62 = vld [vmem:[#allocation10 + $0x84] sm:$0xf] }
 0x770   :  { %v2505_v63 = vadd.f32 %v2499_v33, %v2409_v53  ;;  %v2501_v0 = vpop.f32.mrf.mxu1  ;;  %2530 = vadd.xlane.f32.xlu0 %v2526_v23  ;;  %v3835_v23 = vor.u32 %v4169_v60, %v3834_v58 }
 0x772   :  { %v2512_v2 = vadd.f32 %v4240_v42, %v2505_v63  ;;  %v3836_v63 = vld [vmem:[#allocation10 + $0x88] sm:$0xf0] }
 0x774   :  { %v4966_v3 = vadd.f32 %v2512_v2, %v4898_v51  ;;  %v3882_v51 = vld [vmem:[#allocation10 + $0xe0] sm:$0xf]  ;;  %v3839_v2 = vor.u32 %v4168_v62, %v3836_v63  ;;  %v4186_v62 = vld [vmem:[#allocation11 + $0x90] sm:$0xff] }
 0x775   :  { %v2377_v32 = vpop.f32.mrf.mxu2  ;;  %v3883_v13 = vor.u32 %v4181_v8, %v3882_v51  ;;  %v4194_v63 = vld [vmem:[#allocation11 + $0xd0] sm:$0xff] }
 0x776   :  { %v2522_v25 = vsel %vm1093_vm3, %v4966_v3, 0.0  ;;  %v2527_v55 = vmul.f32 %v4966_v3, %v4966_v3  ;;  %2728 = vmatpush.bf16.msrb.mxu3 %v3839_v2  ;;  %v4184_v2 = vld [vmem:[#allocation11 + $0x80] sm:$0xff] }
 0x777   :  { %2523 = vadd.xlane.f32.xlu1 %v2522_v25  ;;  %2704 = vmatpush.bf16.msra.mxu2 %v3883_v13 }
 0x778   :  { %v2532_v26 = vsel %vm1093_vm3, %v2527_v55, 0.0 }
 0x779   :  { %2533 = vadd.xlane.f32.xlu2 %v2532_v26 }
 0x77b   :  { %2705 = vmatpush.bf16.msra.mxu2 %v3875_v10 }
 0x77f   :  { %2706 = vmatpush.bf16.msra.mxu2 %v3867_v27 }
 0x783   :  { %2707 = vmatpush.bf16.msra.mxu2 %v3859_v41 }
 0x787   :  { %2708 = vmatpush.bf16.msra.mxu2 %v3851_v31 }
 0x78b   :  { %2709 = vmatpush.bf16.msra.mxu2 %v3843_v38 }
 0x78f   :  { %2710 = vmatpush.bf16.msra.mxu2 %v3835_v23  ;;  %v4195_v23 = vld [vmem:[#allocation11 + $0xd8] sm:$0xff] }
 0x7d9   :  { %v2519_v18 = vpop.xlane.xlu0 %2518 }
 0x7da   :  { %v4973_v48 = vmul.f32 0.02, %v2519_v18 }
 0x7db   :  { %v2529_v42 = vpop.xlane.xlu2 %2528 }
 0x7dc   :  { %v2541_v39 = vmul.f32 %v4973_v48, %v4973_v48  ;;  %v2538_v1 = vmul.f32 0.02, %v2529_v42  ;;  %v2547_v27 = vsub.f32 %v4954_v54, %v4973_v48  ;;  %v4242_v48 = vld [vmem:[#allocation8 + $0x20] ss:$0 sm:$0xff] }
 0x7de   :  { %v2544_v45 = vsub.f32 %v2538_v1, %v2541_v39  ;;  %v4188_v39 = vld [vmem:[#allocation11 + $0xa0] sm:$0xff] }
 0x7df   :  { %v4196_v1 = vld [vmem:[#allocation11 + $0xe0] sm:$0xff]  ;;  %2885 = vmatpush.bf16.msrb.mxu0 %v4188_v39 }
 0x7e0   :  { %v2550_v33 = vadd.f32 1e-05, %v2544_v45  ;;  %2903 = vmatpush.bf16.msrb.mxu1 %v4196_v1 }
 0x7e1   :  { %v2521_v53 = vpop.xlane.xlu1 %2520 }
 0x7e2   :  { %4331 = vrsqrt.f32 %v2550_v33  ;;  %v2536_v0 = vmul.f32 0.02, %v2521_v53  ;;  %vm2559_vm1 = vweird.f32 %v2550_v33  ;;  %v4187_v53 = vld [vmem:[#allocation11 + $0x98] sm:$0xff] }
 0x7e3   :  { %v2531_v32 = vpop.xlane.xlu0 %2530  ;;  %2886 = vmatpush.bf16.msrb.mxu0 %v4187_v53  ;;  %v4202_v53 = vld [vmem:[#allocation13 + $0x10] sm:$0xff] }
 0x7e4   :  { %v2542_v25 = vmul.f32 %v2536_v0, %v2536_v0  ;;  %v2539_v55 = vmul.f32 0.02, %v2531_v32  ;;  %v2548_v30 = vsub.f32 %v4960_v59, %v2536_v0  ;;  %2904 = vmatpush.bf16.msrb.mxu1 %v4195_v23  ;;  %v4193_v0 = vld [vmem:[#allocation11 + $0xc8] sm:$0xff]  ;;  %v4192_v32 = vld [vmem:[#allocation11 + $0xc0] sm:$0xff] }
 0x7e6   :  { %v2545_v26 = vsub.f32 %v2539_v55, %v2542_v25  ;;  %v2617_v25 = vld [vmem:[#allocation8 + $0x1b] sm:$0x3] }
 0x7e7   :  { %2887 = vmatpush.bf16.msrb.mxu0 %v4186_v62 }
 0x7e8   :  { %v4332_v9 = vpop.eup %4331  ;;  %v2551_v47 = vadd.f32 1e-05, %v2545_v26  ;;  %2905 = vmatpush.bf16.msrb.mxu1 %v4194_v63 }
 0x7e9   :  { %v2554_v11 = vmul.f32 %v4332_v9, %v2550_v33  ;;  %vm2560_vm0 = vweird.f32 %v4332_v9 }
 0x7ea   :  { %4333 = vrsqrt.f32 %v2551_v47  ;;  %v2524_v36 = vpop.xlane.xlu1 %2523  ;;  %vm2561_vm2 = vmor %vm2559_vm1, %vm2560_vm0  ;;  %vm2569_vm11 = vweird.f32 %v2551_v47 }
 0x7eb   :  { %v2555_v15 = vmul.f32 %v4332_v9, %v2554_v11  ;;  %v4977_v7 = vmul.f32 0.02, %v2524_v36 }
 0x7ec   :  { %v2534_v51 = vpop.xlane.xlu2 %2533  ;;  %2906 = vmatpush.bf16.msrb.mxu1 %v4193_v0  ;;  %v4201_v0 = vld [vmem:[#allocation13 + $0x8] sm:$0xff] }
 0x7ed   :  { %v2556_v8 = vmul.f32 0.5, %v2555_v15  ;;  %v2543_v4 = vmul.f32 %v4977_v7, %v4977_v7  ;;  %v2540_v13 = vmul.f32 0.02, %v2534_v51  ;;  %v2549_v37 = vsub.f32 %v4966_v3, %v4977_v7  ;;  %v4185_v3 = vld [vmem:[#allocation11 + $0x88] sm:$0xff] }
 0x7ee   :  { %2888 = vmatpush.bf16.msrb.mxu0 %v4185_v3 }
 0x7ef   :  { %v2557_v19 = vsub.f32 1.5, %v2556_v8  ;;  %v2546_v56 = vsub.f32 %v2540_v13, %v2543_v4 }
 0x7f0   :  { %v4334_v6 = vpop.eup %4333  ;;  %2907 = vmatpush.bf16.msrb.mxu1 %v4192_v32 }
 0x7f1   :  { %v2558_v16 = vmul.f32 %v4332_v9, %v2557_v19  ;;  %v2564_v5 = vmul.f32 %v4334_v6, %v2551_v47  ;;  %v2552_v10 = vadd.f32 1e-05, %v2546_v56  ;;  %vm2570_vm10 = vweird.f32 %v4334_v6 }
 0x7f2   :  { %vm2571_vm12 = vmor %vm2569_vm11, %vm2570_vm10  ;;  %2889 = vmatpush.bf16.msrb.mxu0 %v4184_v2  ;;  %v2620_v47 = vperm.slane %v2617_v25, 1 }
 0x7f3   :  { %v2565_v17 = vmul.f32 %v4334_v6, %v2564_v5  ;;  %4335 = vrsqrt.f32 %v2552_v10  ;;  %v2562_v22 = vsel %vm2561_vm2, %v4332_v9, %v2558_v16  ;;  %vm2579_vm14 = vweird.f32 %v2552_v10 }
 0x7f4   :  { %v2583_v28 = vmul.f32 %v2562_v22, %v2547_v27  ;;  %v2619_v9 = vperm.slane %v2617_v25, 0 }
 0x7f5   :  { %v2566_v35 = vmul.f32 0.5, %v2565_v17 }
 0x7f6   :  { %v2589_v18 = vmul.f32 %v4241_v40, %v2583_v28 }
 0x7f7   :  { %v2567_v29 = vsub.f32 1.5, %v2566_v35 }
 0x7f8   :  { %v4984_v59 = vadd.f32 %v4242_v48, %v2589_v18 }
 0x7f9   :  { %v4336_v41 = vpop.eup %4335  ;;  %v2568_v14 = vmul.f32 %v4334_v6, %v2567_v29  ;;  %v4243_v29 = vld [vmem:[#allocation8 + $0x1e] ss:$0 sm:$0xff] }
 0x7fa   :  { %v2574_v44 = vmul.f32 %v4336_v41, %v2552_v10  ;;  %vm2580_vm13 = vweird.f32 %v4336_v41 }
 0x7fb   :  { %v2572_v54 = vsel %vm2571_vm12, %v4334_v6, %v2568_v14  ;;  %vm2581_vm15 = vmor %vm2579_vm14, %vm2580_vm13 }
 0x7fc   :  { %v2584_v31 = vmul.f32 %v2572_v54, %v2548_v30  ;;  %v2575_v50 = vmul.f32 %v4336_v41, %v2574_v44 }
 0x7fe   :  { %v2590_v12 = vmul.f32 %v4241_v40, %v2584_v31  ;;  %v2576_v42 = vmul.f32 0.5, %v2575_v50 }
 0x800   :  { %v2577_v34 = vsub.f32 1.5, %v2576_v42  ;;  %v4986_v52 = vadd.f32 %v4242_v48, %v2590_v12 }
 0x802   :  { %v2578_v38 = vmul.f32 %v4336_v41, %v2577_v34  ;;  %v2598_v61 = vpack.c.bf16 %v4986_v52, %v4984_v59 }
 0x804   :  { %v2582_v45 = vsel %vm2581_vm15, %v4336_v41, %v2578_v38  ;;  %2711 = vmatmul.bf16.vlgmr.msra.gmra.mxu2 %v2598_v61  ;;  %2729 = vmatmul.bf16.vlgmr.msrb.gmra.mxu3 %v2598_v61 }
 0x805   :  { %v2585_v57 = vmul.f32 %v2582_v45, %v2549_v37  ;;  %v4207_v37 = vld [vmem:[#allocation13 + $0x38] sm:$0xff]  ;;  %v4206_v45 = vld [vmem:[#allocation13 + $0x30] sm:$0xff] }
 0x806   :  { %3073 = vmatpush.bf16.msrb.mxu2 %v4207_v37 }
 0x807   :  { %v2591_v33 = vmul.f32 %v4241_v40, %v2585_v57  ;;  %v4205_v57 = vld [vmem:[#allocation13 + $0x28] sm:$0xff] }
 0x809   :  { %v4992_v58 = vadd.f32 %v4242_v48, %v2591_v33  ;;  %v4204_v33 = vld [vmem:[#allocation13 + $0x20] sm:$0xff] }
 0x80a   :  { %3074 = vmatpush.bf16.msrb.mxu2 %v4206_v45 }
 0x80b   :  { %v2599_v60 = vpack.c.bf16 %v4992_v58, %v4992_v58 }
 0x80e   :  { %3075 = vmatpush.bf16.msrb.mxu2 %v4205_v57 }
 0x812   :  { %3076 = vmatpush.bf16.msrb.mxu2 %v4204_v33  ;;  %v4246_v33 = vld [vmem:[#allocation8 + $0x11] ss:$0 sm:$0xff] }
 0x814   :  { %2716 = vmatmul.bf16.gmra.mxu2 %v2599_v60  ;;  %2734 = vmatmul.bf16.gmra.mxu3 %v2599_v60 }
 0x887   :  { %v2712_v55 = vpop.f32.mrf.mxu2  ;;  %v2730_v26 = vpop.f32.mrf.mxu3 }
 0x888   :  { %v2713_v11 = vadd.f32 %v2712_v55, %v2619_v9  ;;  %v2731_v36 = vadd.f32 %v2730_v26, %v2620_v47  ;;  %v4200_v55 = vld [vmem:[#allocation13] sm:$0xff] }
 0x88a   :  { %v2739_v4 = vmax.f32 %v2713_v11, 0.0  ;;  %v2740_v13 = vmax.f32 %v2731_v36, 0.0 }
 0x88f   :  { %v2714_v15 = vpop.f32.mrf.mxu2  ;;  %v2732_v7 = vpop.f32.mrf.mxu3 }
 0x890   :  { %v2715_v51 = vadd.f32 %v2714_v15, %v2619_v9  ;;  %v2733_v8 = vadd.f32 %v2732_v7, %v2620_v47 }
 0x892   :  { %v2741_v19 = vmax.f32 %v2715_v51, 0.0  ;;  %v2742_v56 = vmax.f32 %v2733_v8, 0.0 }
 0x894   :  { %v2745_v6 = vpack.c.bf16 %v2741_v19, %v2739_v4  ;;  %v2746_v16 = vpack.c.bf16 %v2742_v56, %v2740_v13 }
 0x896   :  { %2890 = vmatmul.bf16.vlgmr.msrb.gmra.mxu0 %v2745_v6  ;;  %2908 = vmatmul.bf16.vlgmr.msrb.gmra.mxu1 %v2746_v16 }
 0x897   :  { %v2717_v5 = vpop.f32.mrf.mxu2  ;;  %v2735_v10 = vpop.f32.mrf.mxu3 }
 0x898   :  { %v2718_v17 = vadd.f32 %v2717_v5, %v2619_v9  ;;  %v2736_v21 = vadd.f32 %v2735_v10, %v2620_v47 }
 0x89a   :  { %v2743_v35 = vmax.f32 %v2718_v17, 0.0  ;;  %v2744_v27 = vmax.f32 %v2736_v21, 0.0 }
 0x89c   :  { %v2747_v24 = vpack.c.bf16 %v2743_v35, %v2743_v35  ;;  %v2748_v20 = vpack.c.bf16 %v2744_v27, %v2744_v27 }
 0x89f   :  { %v2719_v49 = vpop.f32.mrf.mxu2  ;;  %v2737_v22 = vpop.f32.mrf.mxu3 }
 0x8a6   :  { %2895 = vmatmul.bf16.gmra.mxu0 %v2747_v24  ;;  %2913 = vmatmul.bf16.gmra.mxu1 %v2748_v20 }
 0x913   :  { %v2891_v40 = vpop.f32.mrf.mxu0  ;;  %v2909_v28 = vpop.f32.mrf.mxu1 }
 0x914   :  { %v2892_v41 = vadd.f32 %v4243_v29, %v2891_v40  ;;  %v4244_v40 = vld [vmem:[#allocation8 + $0x21] ss:$0 sm:$0xff] }
 0x916   :  { %v2910_v14 = vadd.f32 %v2909_v28, %v2892_v41 }
 0x918   :  { %v4997_v30 = vadd.f32 %v2910_v14, %v4984_v59 }
 0x91a   :  { %2923 = vadd.xlane.f32.xlu0 %v4997_v30  ;;  %v2930_v44 = vmul.f32 %v4997_v30, %v4997_v30 }
 0x91b   :  { %v2893_v43 = vpop.f32.mrf.mxu0  ;;  %v2911_v46 = vpop.f32.mrf.mxu1 }
 0x91c   :  { %v2894_v54 = vadd.f32 %v4243_v29, %v2893_v43  ;;  %2933 = vadd.xlane.f32.xlu2 %v2930_v44 }
 0x91e   :  { %v2912_v18 = vadd.f32 %v2911_v46, %v2894_v54 }
 0x920   :  { %v5003_v31 = vadd.f32 %v2912_v18, %v4986_v52 }
 0x922   :  { %2925 = vadd.xlane.f32.xlu1 %v5003_v31  ;;  %v2931_v50 = vmul.f32 %v5003_v31, %v5003_v31 }
 0x923   :  { %v2896_v48 = vpop.f32.mrf.mxu0  ;;  %v2914_v12 = vpop.f32.mrf.mxu1 }
 0x924   :  { %v2897_v42 = vadd.f32 %v4243_v29, %v2896_v48  ;;  %2935 = vadd.xlane.f32.xlu0 %v2931_v50  ;;  %v4245_v48 = vld [vmem:[#allocation8 + $0x22] ss:$0 sm:$0xff] }
 0x926   :  { %v2915_v39 = vadd.f32 %v2914_v12, %v2897_v42 }
 0x928   :  { %v5009_v1 = vadd.f32 %v2915_v39, %v4992_v58  ;;  %v4203_v58 = vld [vmem:[#allocation13 + $0x18] sm:$0xff] }
 0x929   :  { %3077 = vmatpush.bf16.msrb.mxu2 %v4203_v58 }
 0x92a   :  { %v2927_v34 = vsel %vm1093_vm3, %v5009_v1, 0.0  ;;  %v2932_v59 = vmul.f32 %v5009_v1, %v5009_v1 }
 0x92b   :  { %v2898_v52 = vpop.f32.mrf.mxu0  ;;  %v2916_v38 = vpop.f32.mrf.mxu1  ;;  %2928 = vadd.xlane.f32.xlu1 %v2927_v34 }
 0x92c   :  { %v2937_v61 = vsel %vm1093_vm3, %v2932_v59, 0.0 }
 0x92d   :  { %2938 = vadd.xlane.f32.xlu2 %v2937_v61  ;;  %3078 = vmatpush.bf16.msrb.mxu2 %v4202_v53 }
 0x931   :  { %3079 = vmatpush.bf16.msrb.mxu2 %v4201_v0 }
 0x935   :  { %3080 = vmatpush.bf16.msrb.mxu2 %v4200_v55 }
 0x98d   :  { %v2924_v60 = vpop.xlane.xlu0 %2923 }
 0x98e   :  { %v2940_v23 = vmul.f32 0.02, %v2924_v60 }
 0x98f   :  { %v2934_v62 = vpop.xlane.xlu2 %2933 }
 0x990   :  { %v2946_v63 = vmul.f32 %v2940_v23, %v2940_v23  ;;  %v2943_v3 = vmul.f32 0.02, %v2934_v62  ;;  %v2952_v20 = vsub.f32 %v4997_v30, %v2940_v23 }
 0x992   :  { %v2949_v2 = vsub.f32 %v2943_v3, %v2946_v63 }
 0x994   :  { %v2955_v32 = vadd.f32 1e-05, %v2949_v2 }
 0x995   :  { %v2926_v25 = vpop.xlane.xlu1 %2925 }
 0x996   :  { %4337 = vrsqrt.f32 %v2955_v32  ;;  %v2941_v26 = vmul.f32 0.02, %v2926_v25  ;;  %vm2964_vm4 = vweird.f32 %v2955_v32 }
 0x997   :  { %v2936_v9 = vpop.xlane.xlu0 %2935 }
 0x998   :  { %v2947_v47 = vmul.f32 %v2941_v26, %v2941_v26  ;;  %v2944_v11 = vmul.f32 0.02, %v2936_v9  ;;  %v2953_v44 = vsub.f32 %v5003_v31, %v2941_v26 }
 0x99a   :  { %v2950_v36 = vsub.f32 %v2944_v11, %v2947_v47 }
 0x99c   :  { %v4338_v15 = vpop.eup %4337  ;;  %v2956_v7 = vadd.f32 1e-05, %v2950_v36 }
 0x99d   :  { %v2959_v51 = vmul.f32 %v4338_v15, %v2955_v32  ;;  %vm2965_vm3 = vweird.f32 %v4338_v15 }
 0x99e   :  { %4339 = vrsqrt.f32 %v2956_v7  ;;  %v2929_v8 = vpop.xlane.xlu1 %2928  ;;  %vm2966_vm5 = vmor %vm2964_vm4, %vm2965_vm3  ;;  %vm2974_vm7 = vweird.f32 %v2956_v7 }
 0x99f   :  { %v2960_v4 = vmul.f32 %v4338_v15, %v2959_v51  ;;  %v2942_v13 = vmul.f32 0.02, %v2929_v8 }
 0x9a0   :  { %v2939_v19 = vpop.xlane.xlu2 %2938 }
 0x9a1   :  { %v2961_v56 = vmul.f32 0.5, %v2960_v4  ;;  %v2948_v6 = vmul.f32 %v2942_v13, %v2942_v13  ;;  %v2945_v16 = vmul.f32 0.02, %v2939_v19  ;;  %v2954_v38 = vsub.f32 %v5009_v1, %v2942_v13 }
 0x9a3   :  { %v2962_v5 = vsub.f32 1.5, %v2961_v56  ;;  %v2951_v10 = vsub.f32 %v2945_v16, %v2948_v6 }
 0x9a4   :  { %v4340_v17 = vpop.eup %4339 }
 0x9a5   :  { %v2963_v21 = vmul.f32 %v4338_v15, %v2962_v5  ;;  %v2969_v49 = vmul.f32 %v4340_v17, %v2956_v7  ;;  %v2957_v22 = vadd.f32 1e-05, %v2951_v10  ;;  %vm2975_vm6 = vweird.f32 %v4340_v17 }
 0x9a6   :  { %vm2976_vm8 = vmor %vm2974_vm7, %vm2975_vm6 }
 0x9a7   :  { %v2970_v35 = vmul.f32 %v4340_v17, %v2969_v49  ;;  %4341 = vrsqrt.f32 %v2957_v22  ;;  %v2967_v27 = vsel %vm2966_vm5, %v4338_v15, %v2963_v21  ;;  %vm2984_vm0 = vweird.f32 %v2957_v22 }
 0x9a8   :  { %v2988_v28 = vmul.f32 %v2967_v27, %v2952_v20 }
 0x9a9   :  { %v2971_v24 = vmul.f32 0.5, %v2970_v35 }
 0x9aa   :  { %v2994_v54 = vmul.f32 %v4244_v40, %v2988_v28 }
 0x9ab   :  { %v2972_v29 = vsub.f32 1.5, %v2971_v24 }
 0x9ac   :  { %v3000_v30 = vadd.f32 %v4245_v48, %v2994_v54 }
 0x9ad   :  { %v4342_v41 = vpop.eup %4341  ;;  %v2973_v14 = vmul.f32 %v4340_v17, %v2972_v29 }
 0x9ae   :  { %v2979_v43 = vmul.f32 %v4342_v41, %v2957_v22  ;;  %vm2985_vm9 = vweird.f32 %v4342_v41 }
 0x9af   :  { %v2977_v46 = vsel %vm2976_vm8, %v4340_v17, %v2973_v14  ;;  %vm2986_vm1 = vmor %vm2984_vm0, %vm2985_vm9 }
 0x9b0   :  { %v2989_v18 = vmul.f32 %v2977_v46, %v2953_v44  ;;  %v2980_v50 = vmul.f32 %v4342_v41, %v2979_v43 }
 0x9b2   :  { %v2995_v12 = vmul.f32 %v4244_v40, %v2989_v18  ;;  %v2981_v42 = vmul.f32 0.5, %v2980_v50 }
 0x9b4   :  { %v2982_v39 = vsub.f32 1.5, %v2981_v42  ;;  %v3001_v34 = vadd.f32 %v4245_v48, %v2995_v12 }
 0x9b6   :  { %v2983_v59 = vmul.f32 %v4342_v41, %v2982_v39  ;;  %v3003_v52 = vpack.c.bf16 %v3001_v34, %v3000_v30 }
 0x9b8   :  { %3081 = vmatmul.bf16.vlgmr.msrb.gmra.mxu2 %v3003_v52  ;;  %v2987_v31 = vsel %vm2986_vm1, %v4342_v41, %v2983_v59 }
 0x9b9   :  { %v2990_v61 = vmul.f32 %v2987_v31, %v2954_v38 }
 0x9bb   :  { %v2996_v37 = vmul.f32 %v4244_v40, %v2990_v61 }
 0x9bd   :  { %v3002_v45 = vadd.f32 %v4245_v48, %v2996_v37 }
 0x9bf   :  { %v3004_v57 = vpack.c.bf16 %v3002_v45, %v3002_v45 }
 0x9c8   :  { %3086 = vmatmul.bf16.gmra.mxu2 %v3004_v57 }
 0xa3b   :  { %v3082_v58 = vpop.f32.mrf.mxu2 }
 0xa3c   :  { %v3083_v60 = vadd.f32 %v4246_v33, %v3082_v58 }
 0xa3e   :  { %3091 = vst [vmem:[#allocation14] sm:$0xff] %v3083_v60 }
 0xa43   :  { %v3084_v53 = vpop.f32.mrf.mxu2 }
 0xa44   :  { %v3085_v23 = vadd.f32 %v4246_v33, %v3084_v53 }
 0xa46   :  { %3092 = vst [vmem:[#allocation14 + $0x8] sm:$0xff] %v3085_v23 }
 0xa4b   :  { %v3087_v1 = vpop.f32.mrf.mxu2 }
 0xa4c   :  { %v3088_v62 = vadd.f32 %v4246_v33, %v3087_v1 }
 0xa4e   :  { %3093 = vst [vmem:[#allocation14 + $0x10] sm:$0xf] %v3088_v62 }
 0xa4f   :  { %3106 = dma.vmem_to_hbm [thread:$0]  %s3099_s6, 384, %s3101_s18, [#allocation4], %s4549_s9, %s4549_s9, %s4550_s10  }
 0xa53   :  { %v3089_v63 = vpop.f32.mrf.mxu2 }
 0xa54   :  { %4546 = dma.done.wait [#allocation4], 384  }
 0xa55   :  { %4547 = vsyncadd [#allocation4], 4294966912 }
 0xa56   :  { %3111 = vsyncpa [#allocation3], 1 }
 0xa57   :  { %3112 = vsyncpa [#allocation6], 1 }
 0xa58   :  { %3113 = vsyncpa [#allocation9], 1 }
 0xa59   :  { %3114 = vsyncpa [#allocation12], 1 }
 0xa5a   :  { %3115 = vsyncpa [#allocation4], 1 }

</bundles_post_ra>
